<compile_context>
chip_gen: v7x
topology: tpu7x:2x2x1
jax: 0.10.0
libtpu: 0.0.40
codegen_flags: <defaults>
</compile_context>

<pallas_src>
import math
import functools

import jax
import jax.numpy as jnp
from jax import lax
from jax.experimental import pallas as pl
from jax.experimental.pallas import tpu as pltpu

# ----------------------------- model config (small, synthetic) ----------------------
IN_CH, OUT_CH = 16, 16
VEC_IN, CTX_IN = 32, 32
HID = 64
HEADS = 2
HEAD_DIM = HID // HEADS          # = 32 = pe_dim
MLP_RATIO = 4.0
MLP_HID = int(HID * MLP_RATIO)   # 256
DEPTH = 1
DEPTH_SINGLE = 1
AXES_DIM = (8, 12, 12)           # sums to pe_dim = 32
THETA = 10000
COMPUTE_DT = jnp.bfloat16        # MXU input dtype (f32 accumulation everywhere)
# guidance_embed=False, homo_pos_map=None in this synthetic run.
# TODO(synk): the homo_pos_map branch uses data-dependent torch.arange/meshgrid ranges
#             (dynamic shapes) and has no clean JAX/Pallas equivalent; it is skipped
#             (equivalent to homo_pos_map=None).

# ----------------------------- in-kernel helpers (pure value functions) -------------

def _dot(a, b):
    """MXU matmul: bf16 operands, f32 accumulate."""
    return jnp.dot(a.astype(COMPUTE_DT), b.astype(COMPUTE_DT),
                   preferred_element_type=jnp.float32)


def _silu(x):
    return x * jax.nn.sigmoid(x)


def _gelu_tanh(x):
    return 0.5 * x * (1.0 + jnp.tanh(math.sqrt(2.0 / math.pi) * (x + 0.044715 * x * x * x)))


def _layernorm(x, eps=1e-6):
    mu = jnp.mean(x, axis=-1, keepdims=True)
    var = jnp.mean(jnp.square(x - mu), axis=-1, keepdims=True)
    return (x - mu) * lax.rsqrt(var + eps)


def _rmsnorm(x, scale, eps=1e-6):
    return x * lax.rsqrt(jnp.mean(jnp.square(x), axis=-1, keepdims=True) + eps) * scale


def _swap_matrix(d, dtype):
    """(d, d) permutation that swaps adjacent lane pairs: out = x @ P, out[2i]=x[2i+1]."""
    r = lax.broadcasted_iota(jnp.int32, (d, d), 0)
    c = lax.broadcasted_iota(jnp.int32, (d, d), 1)
    return ((r ^ 1) == c).astype(dtype)


def _rope_rotate(x, cos_f, sin_f, pmat):
    """Flux interleaved-pair RoPE: out[2i]=c*x[2i]-s*x[2i+1], out[2i+1]=s*x[2i]+c*x[2i+1].
    cos_f duplicates cos per pair; sin_f carries the (-s,+s) sign; swap via MXU matmul."""
    return cos_f * x + sin_f * _dot(x, pmat)


def _attn_head(q, k, v, cos_f, sin_f, pmat, scale):
    """Single-head attention on (L, D) tiles with RoPE fused."""
    q = _rope_rotate(q, cos_f, sin_f, pmat)
    k = _rope_rotate(k, cos_f, sin_f, pmat)
    # contract last dims directly (no explicit k.T / XLU transpose)
    s = lax.dot_general(q.astype(COMPUTE_DT), k.astype(COMPUTE_DT),
                        (((1,), (1,)), ((), ())),
                        preferred_element_type=jnp.float32) * scale
    m = jnp.max(s, axis=-1, keepdims=True)
    p = jnp.exp(s - m)
    denom = jnp.sum(p, axis=-1, keepdims=True)
    p = p * pl.reciprocal(denom, approx=True)
    return _dot(p, v)


def _full_spec(arr):
    """BlockSpec covering the whole array, independent of the grid index."""
    return pl.BlockSpec(arr.shape, lambda b, n=arr.ndim: (0,) * n)


# ----------------------------- small glue kernels ------------------------------------

def _linear_kernel(x_ref, w_ref, b_ref, o_ref):
    o_ref[...] = _dot(x_ref[...], w_ref[...]) + b_ref[...]


def linear_pallas(x, w, b):
    """x: (..., K) @ w(bf16): (K, N) + b(f32): (1, N) -> (..., N) f32."""
    *lead, K = x.shape
    N = w.shape[1]
    x2 = x.reshape(-1, K)
    M = x2.shape[0]
    out = pl.pallas_call(
        _linear_kernel,
        out_shape=jax.ShapeDtypeStruct((M, N), jnp.float32),
        grid=(1,),
        in_specs=[pl.BlockSpec((M, K), lambda i: (0, 0)),
                  pl.BlockSpec((K, N), lambda i: (0, 0)),
                  pl.BlockSpec((1, N), lambda i: (0, 0))],
        out_specs=pl.BlockSpec((M, N), lambda i: (0, 0)),
        compiler_params=pltpu.CompilerParams(dimension_semantics=("arbitrary",)),
    )(x2, w, b)
    return out.reshape(*lead, N)


def _vec_kernel(t_ref, y_ref, tiw, tib, tow, tob, viw, vib, vow, vob, o_ref):
    t = _dot(_silu(_dot(t_ref[...], tiw[...]) + tib[...]), tow[...]) + tob[...]
    v = _dot(_silu(_dot(y_ref[...], viw[...]) + vib[...]), vow[...]) + vob[...]
    o_ref[...] = t + v


def vec_embed_pallas(p_time, p_vec, t_emb, y):
    """vec = time_in(timestep_emb) + vector_in(y), both MLPEmbedders, fused in one call."""
    B = t_emb.shape[0]
    args = [t_emb, y,
            p_time["in"]["w"], p_time["in"]["b"], p_time["out"]["w"], p_time["out"]["b"],
            p_vec["in"]["w"], p_vec["in"]["b"], p_vec["out"]["w"], p_vec["out"]["b"]]
    return pl.pallas_call(
        _vec_kernel,
        out_shape=jax.ShapeDtypeStruct((B, HID), jnp.float32),
        grid=(1,),
        in_specs=[_full_spec(a) for a in args],
        out_specs=pl.BlockSpec((B, HID), lambda i: (0, 0)),
        compiler_params=pltpu.CompilerParams(dimension_semantics=("arbitrary",)),
    )(*args)


# ----------------------------- fused double-stream block -----------------------------

def _double_block_kernel(
    img_ref, txt_ref, vec_ref, cos_ref, sin_ref,
    i_mod_w, i_mod_b, i_qkv_w, i_qkv_b, i_qs, i_ks, i_proj_w, i_proj_b,
    i_mlp0_w, i_mlp0_b, i_mlp2_w, i_mlp2_b,
    t_mod_w, t_mod_b, t_qkv_w, t_qkv_b, t_qs, t_ks, t_proj_w, t_proj_b,
    t_mlp0_w, t_mlp0_b, t_mlp2_w, t_mlp2_b,
    img_out_ref, txt_out_ref,
):
    D = HEAD_DIM
    img = img_ref[0]                       # (Li, HID) f32
    txt = txt_ref[0]                       # (Lt, HID) f32
    vec = vec_ref[0]                       # (1, HID)
    cos_f = cos_ref[0]                     # (L, D)
    sin_f = sin_ref[0]
    pmat = _swap_matrix(D, COMPUTE_DT)
    L_txt = txt.shape[0]

    # modulation (SiLU + Linear) for both streams
    sv = _silu(vec)
    i_mod = _dot(sv, i_mod_w[...]) + i_mod_b[...]        # (1, 6*HID)
    t_mod = _dot(sv, t_mod_w[...]) + t_mod_b[...]
    i_sh1, i_sc1, i_g1, i_sh2, i_sc2, i_g2 = [i_mod[:, j * HID:(j + 1) * HID] for j in range(6)]
    t_sh1, t_sc1, t_g1, t_sh2, t_sc2, t_g2 = [t_mod[:, j * HID:(j + 1) * HID] for j in range(6)]

    # modulated layernorm + QKV projection
    img_x = (1.0 + i_sc1) * _layernorm(img) + i_sh1
    txt_x = (1.0 + t_sc1) * _layernorm(txt) + t_sh1
    img_qkv = _dot(img_x, i_qkv_w[...]) + i_qkv_b[...]   # (Li, 3*HID)
    txt_qkv = _dot(txt_x, t_qkv_w[...]) + t_qkv_b[...]   # (Lt, 3*HID)

    # per-head QKNorm + RoPE + attention on the concatenated [txt; img] sequence
    scale = 1.0 / math.sqrt(D)
    heads_out = []
    for h in range(HEADS):
        iq = _rmsnorm(img_qkv[:, h * D:(h + 1) * D], i_qs[...])
        ik = _rmsnorm(img_qkv[:, HID + h * D:HID + (h + 1) * D], i_ks[...])
        iv = img_qkv[:, 2 * HID + h * D:2 * HID + (h + 1) * D]
        tq = _rmsnorm(txt_qkv[:, h * D:(h + 1) * D], t_qs[...])
        tk = _rmsnorm(txt_qkv[:, HID + h * D:HID + (h + 1) * D], t_ks[...])
        tv = txt_qkv[:, 2 * HID + h * D:2 * HID + (h + 1) * D]
        q = jnp.concatenate([tq, iq], axis=0)
        k = jnp.concatenate([tk, ik], axis=0)
        v = jnp.concatenate([tv, iv], axis=0)
        heads_out.append(_attn_head(q, k, v, cos_f, sin_f, pmat, scale))
    attn = jnp.concatenate(heads_out, axis=-1)            # (L, HID)
    txt_attn = attn[:L_txt]
    img_attn = attn[L_txt:]

    # attention projection + residual, then modulated MLP + residual (img stream)
    img_new = img + i_g1 * (_dot(img_attn, i_proj_w[...]) + i_proj_b[...])
    img_mlp_in = (1.0 + i_sc2) * _layernorm(img_new) + i_sh2
    img_new = img_new + i_g2 * (
        _dot(_gelu_tanh(_dot(img_mlp_in, i_mlp0_w[...]) + i_mlp0_b[...]), i_mlp2_w[...])
        + i_mlp2_b[...])

    # txt stream
    txt_new = txt + t_g1 * (_dot(txt_attn, t_proj_w[...]) + t_proj_b[...])
    txt_mlp_in = (1.0 + t_sc2) * _layernorm(txt_new) + t_sh2
    txt_new = txt_new + t_g2 * (
        _dot(_gelu_tanh(_dot(txt_mlp_in, t_mlp0_w[...]) + t_mlp0_b[...]), t_mlp2_w[...])
        + t_mlp2_b[...])

    img_out_ref[0] = img_new
    txt_out_ref[0] = txt_new


def double_block_pallas(p, img, txt, vec3, cos_f, sin_f):
    B, Li, _ = img.shape
    Lt = txt.shape[1]
    L = Li + Lt
    weights = [
        p["img_mod"]["w"], p["img_mod"]["b"],
        p["img_qkv"]["w"], p["img_qkv"]["b"],
        p["img_q_scale"], p["img_k_scale"],
        p["img_proj"]["w"], p["img_proj"]["b"],
        p["img_mlp0"]["w"], p["img_mlp0"]["b"],
        p["img_mlp2"]["w"], p["img_mlp2"]["b"],
        p["txt_mod"]["w"], p["txt_mod"]["b"],
        p["txt_qkv"]["w"], p["txt_qkv"]["b"],
        p["txt_q_scale"], p["txt_k_scale"],
        p["txt_proj"]["w"], p["txt_proj"]["b"],
        p["txt_mlp0"]["w"], p["txt_mlp0"]["b"],
        p["txt_mlp2"]["w"], p["txt_mlp2"]["b"],
    ]
    act_specs = [
        pl.BlockSpec((1, Li, HID), lambda b: (b, 0, 0)),
        pl.BlockSpec((1, Lt, HID), lambda b: (b, 0, 0)),
        pl.BlockSpec((1, 1, HID), lambda b: (b, 0, 0)),
        pl.BlockSpec((1, L, HEAD_DIM), lambda b: (b, 0, 0)),
        pl.BlockSpec((1, L, HEAD_DIM), lambda b: (b, 0, 0)),
    ]
    img_out, txt_out = pl.pallas_call(
        _double_block_kernel,
        out_shape=(jax.ShapeDtypeStruct((B, Li, HID), jnp.float32),
                   jax.ShapeDtypeStruct((B, Lt, HID), jnp.float32)),
        grid=(B,),
        in_specs=act_specs + [_full_spec(w) for w in weights],
        out_specs=(pl.BlockSpec((1, Li, HID), lambda b: (b, 0, 0)),
                   pl.BlockSpec((1, Lt, HID), lambda b: (b, 0, 0))),
        compiler_params=pltpu.CompilerParams(dimension_semantics=("parallel",)),
    )(img, txt, vec3, cos_f, sin_f, *weights)
    return img_out, txt_out


# ----------------------------- fused single-stream block -----------------------------

def _single_block_kernel(x_ref, vec_ref, cos_ref, sin_ref,
                         mod_w, mod_b, w_qkv, b_qkv, w_mlp, b_mlp,
                         qs, ks, w2_attn, w2_mlp, b2, o_ref):
    D = HEAD_DIM
    x = x_ref[0]                          # (L, HID)
    vec = vec_ref[0]                      # (1, HID)
    cos_f = cos_ref[0]
    sin_f = sin_ref[0]
    pmat = _swap_matrix(D, COMPUTE_DT)

    sv = _silu(vec)
    mod = _dot(sv, mod_w[...]) + mod_b[...]               # (1, 3*HID)
    shift = mod[:, 0:HID]
    scl = mod[:, HID:2 * HID]
    gate = mod[:, 2 * HID:3 * HID]

    x_mod = (1.0 + scl) * _layernorm(x) + shift
    qkv = _dot(x_mod, w_qkv[...]) + b_qkv[...]            # (L, 3*HID)
    mlp = _dot(x_mod, w_mlp[...]) + b_mlp[...]            # (L, MLP_HID)

    scale = 1.0 / math.sqrt(D)
    heads_out = []
    for h in range(HEADS):
        q = _rmsnorm(qkv[:, h * D:(h + 1) * D], qs[...])
        k = _rmsnorm(qkv[:, HID + h * D:HID + (h + 1) * D], ks[...])
        v = qkv[:, 2 * HID + h * D:2 * HID + (h + 1) * D]
        heads_out.append(_attn_head(q, k, v, cos_f, sin_f, pmat, scale))
    attn = jnp.concatenate(heads_out, axis=-1)            # (L, HID)

    # linear2(cat([attn, gelu(mlp)])) with the weight pre-split by rows
    out = _dot(attn, w2_attn[...]) + _dot(_gelu_tanh(mlp), w2_mlp[...]) + b2[...]
    o_ref[0] = x + gate * out


def single_block_pallas(p, x, vec3, cos_f, sin_f):
    B, L, _ = x.shape
    weights = [p["mod"]["w"], p["mod"]["b"],
               p["lin1_qkv"]["w"], p["lin1_qkv"]["b"],
               p["lin1_mlp"]["w"], p["lin1_mlp"]["b"],
               p["q_scale"], p["k_scale"],
               p["lin2_w_attn"], p["lin2_w_mlp"], p["lin2_b"]]
    act_specs = [
        pl.BlockSpec((1, L, HID), lambda b: (b, 0, 0)),
        pl.BlockSpec((1, 1, HID), lambda b: (b, 0, 0)),
        pl.BlockSpec((1, L, HEAD_DIM), lambda b: (b, 0, 0)),
        pl.BlockSpec((1, L, HEAD_DIM), lambda b: (b, 0, 0)),
    ]
    return pl.pallas_call(
        _single_block_kernel,
        out_shape=jax.ShapeDtypeStruct((B, L, HID), jnp.float32),
        grid=(B,),
        in_specs=act_specs + [_full_spec(w) for w in weights],
        out_specs=pl.BlockSpec((1, L, HID), lambda b: (b, 0, 0)),
        compiler_params=pltpu.CompilerParams(dimension_semantics=("parallel",)),
    )(x, vec3, cos_f, sin_f, *weights)


# ----------------------------- fused final layer --------------------------------------

def _final_kernel(x_ref, vec_ref, ada_w, ada_b, fin_w, fin_b, o_ref):
    sv = _silu(vec_ref[0])                                # (1, HID)
    mod = _dot(sv, ada_w[...]) + ada_b[...]               # (1, 2*HID)
    shift = mod[:, :HID]
    scl = mod[:, HID:]
    x = (1.0 + scl) * _layernorm(x_ref[0]) + shift
    o_ref[0] = _dot(x, fin_w[...]) + fin_b[...]


def final_layer_pallas(params, x, vec3):
    B, Li, _ = x.shape
    weights = [params["final_adaLN"]["w"], params["final_adaLN"]["b"],
               params["final_linear"]["w"], params["final_linear"]["b"]]
    return pl.pallas_call(
        _final_kernel,
        out_shape=jax.ShapeDtypeStruct((B, Li, OUT_CH), jnp.float32),
        grid=(B,),
        in_specs=[pl.BlockSpec((1, Li, HID), lambda b: (b, 0, 0)),
                  pl.BlockSpec((1, 1, HID), lambda b: (b, 0, 0))]
                 + [_full_spec(w) for w in weights],
        out_specs=pl.BlockSpec((1, Li, OUT_CH), lambda b: (b, 0, 0)),
        compiler_params=pltpu.CompilerParams(dimension_semantics=("parallel",)),
    )(x, vec3, *weights)


# ----------------------------- positional / embedding glue (plain JAX) ---------------

def timestep_embedding(t, dim=256, max_period=10000, time_factor=1000.0):
    t = time_factor * t
    half = dim // 2
    freqs = jnp.exp(-math.log(max_period) * jnp.arange(half, dtype=jnp.float32) / half)
    args = t[:, None].astype(jnp.float32) * freqs[None]
    return jnp.concatenate([jnp.cos(args), jnp.sin(args)], axis=-1)


def rope_tables(ids, axes_dim, theta):
    """Precompute lane-friendly (B, L, D) cos / signed-sin tables equivalent to Flux pe."""
    cos_parts, sin_parts = [], []
    for i, d in enumerate(axes_dim):
        s = jnp.arange(0, d, 2, dtype=jnp.float32) / d
        omega = 1.0 / (theta ** s)
        ang = ids[..., i][..., None].astype(jnp.float32) * omega     # (B, L, d/2)
        cos_parts.append(jnp.cos(ang))
        sin_parts.append(jnp.sin(ang))
    cos_h = jnp.concatenate(cos_parts, axis=-1)                      # (B, L, D/2)
    sin_h = jnp.concatenate(sin_parts, axis=-1)
    cos_f = jnp.repeat(cos_h, 2, axis=-1)                            # [c0,c0,c1,c1,...]
    D = cos_f.shape[-1]
    sgn = jnp.tile(jnp.array([-1.0, 1.0], jnp.float32), D // 2)      # [-s,+s,-s,+s,...]
    sin_f = jnp.repeat(sin_h, 2, axis=-1) * sgn
    return cos_f, sin_f


# ----------------------------- parameter init (deterministic) -----------------------

def init_linear(key, din, dout, scale=0.02):
    kw, kb = jax.random.split(key)
    return {"w": (jax.random.normal(kw, (din, dout), jnp.float32) * scale).astype(COMPUTE_DT),
            "b": (jax.random.normal(kb, (dout,), jnp.float32) * scale).reshape(1, dout)}


def init_mlp_embedder(key, din, dh):
    k1, k2 = jax.random.split(key)
    return {"in": init_linear(k1, din, dh), "out": init_linear(k2, dh, dh)}


def init_double_block(key):
    ks = jax.random.split(key, 10)
    ones = jnp.ones((1, HEAD_DIM), jnp.float32)
    return {
        "img_mod": init_linear(ks[0], HID, 6 * HID),
        "img_qkv": init_linear(ks[1], HID, 3 * HID),
        "img_q_scale": ones, "img_k_scale": ones,
        "img_proj": init_linear(ks[2], HID, HID),
        "img_mlp0": init_linear(ks[3], HID, MLP_HID),
        "img_mlp2": init_linear(ks[4], MLP_HID, HID),
        "txt_mod": init_linear(ks[5], HID, 6 * HID),
        "txt_qkv": init_linear(ks[6], HID, 3 * HID),
        "txt_q_scale": ones, "txt_k_scale": ones,
        "txt_proj": init_linear(ks[7], HID, HID),
        "txt_mlp0": init_linear(ks[8], HID, MLP_HID),
        "txt_mlp2": init_linear(ks[9], MLP_HID, HID),
    }


def init_single_block(key):
    ks = jax.random.split(key, 4)
    lin2 = init_linear(ks[3], HID + MLP_HID, HID)
    ones = jnp.ones((1, HEAD_DIM), jnp.float32)
    return {
        "mod": init_linear(ks[0], HID, 3 * HID),
        # linear1 split into the qkv / mlp column blocks (same math, lane-friendly)
        "lin1_qkv": init_linear(ks[1], HID, 3 * HID),
        "lin1_mlp": init_linear(ks[2], HID, MLP_HID),
        # linear2 rows split into the attn / gelu(mlp) contributions
        "lin2_w_attn": lin2["w"][:HID],
        "lin2_w_mlp": lin2["w"][HID:],
        "lin2_b": lin2["b"],
        "q_scale": ones, "k_scale": ones,
    }


def init_flux(key):
    ks = jax.random.split(key, 8 + DEPTH + DEPTH_SINGLE)
    return {
        "img_in": init_linear(ks[0], IN_CH, HID),
        "time_in": init_mlp_embedder(ks[1], 256, HID),
        "vector_in": init_mlp_embedder(ks[2], VEC_IN, HID),
        "txt_in": init_linear(ks[3], CTX_IN, HID),
        "final_adaLN": init_linear(ks[4], HID, 2 * HID),
        "final_linear": init_linear(ks[5], HID, 1 * 1 * OUT_CH),
        # homo_embed_h / homo_embed_w exist in the torch module but are only read in the
        # homo_pos_map branch, which is None here (kept for fidelity, unused).
        "homo_embed_h": jnp.zeros((2, 256), jnp.float32),
        "homo_embed_w": jnp.zeros((2, 256), jnp.float32),
        "double": [init_double_block(ks[8 + i]) for i in range(DEPTH)],
        "single": [init_single_block(ks[8 + DEPTH + i]) for i in range(DEPTH_SINGLE)],
    }


# ----------------------------- forward ------------------------------------------------

def flux_forward(params, img, img_ids, txt, txt_ids, timesteps, y):
    img = linear_pallas(img, params["img_in"]["w"], params["img_in"]["b"])
    txt = linear_pallas(txt, params["txt_in"]["w"], params["txt_in"]["b"])

    # guidance_embed=False -> no guidance branch
    t_emb = timestep_embedding(timesteps, 256)
    vec = vec_embed_pallas(params["time_in"], params["vector_in"], t_emb, y)
    vec3 = vec[:, None, :]                                  # (B, 1, HID)

    ids = jnp.concatenate([txt_ids, img_ids], axis=1)
    cos_f, sin_f = rope_tables(ids, AXES_DIM, THETA)        # (B, L, HEAD_DIM) each

    for bp in params["double"]:
        img, txt = double_block_pallas(bp, img, txt, vec3, cos_f, sin_f)

    x = jnp.concatenate([txt, img], axis=1)
    for bp in params["single"]:
        x = single_block_pallas(bp, x, vec3, cos_f, sin_f)
    img = x[:, txt.shape[1]:, :]

    return final_layer_pallas(params, img, vec3)


# ----------------------------- main ---------------------------------------------------

if __name__ == "__main__":
    key = jax.random.PRNGKey(0)
    kp, k1, k2, k3, k4 = jax.random.split(key, 5)
    params = init_flux(kp)

    B, L_IMG, L_TXT = 2, 16, 8
    img = jax.random.normal(k1, (B, L_IMG, IN_CH), jnp.float32)
    txt = jax.random.normal(k2, (B, L_TXT, CTX_IN), jnp.float32)
    y = jax.random.normal(k3, (B, VEC_IN), jnp.float32)
    timesteps = jax.random.uniform(k4, (B,), jnp.float32)

    # 3-axis positional ids (t, h, w) for a 4x4 latent patch grid, like Flux.
    hh, ww = jnp.meshgrid(jnp.arange(4, dtype=jnp.float32),
                          jnp.arange(4, dtype=jnp.float32), indexing="ij")
    img_ids = jnp.stack([jnp.zeros((4, 4), jnp.float32), hh, ww], axis=-1).reshape(1, L_IMG, 3)
    img_ids = jnp.broadcast_to(img_ids, (B, L_IMG, 3)).astype(jnp.float32)
    txt_ids = jnp.zeros((B, L_TXT, 3), jnp.float32)

    out = jax.jit(flux_forward)(params, img, img_ids, txt, txt_ids, timesteps, y)
    jax.block_until_ready(out)
    assert out.shape == (B, L_IMG, OUT_CH), out.shape
    assert bool(jnp.all(jnp.isfinite(out)))
    print("KERNEL_OK")
</pallas_src>

<mosaic_0001>
module attributes {stable_mosaic.version = 11 : i64} {
  func.func @_vec_kernel(%arg0: i32, %arg1: memref<2x256xf32, #tpu.memory_space<vmem>>, %arg2: memref<2x32xf32, #tpu.memory_space<vmem>>, %arg3: memref<256x64xbf16, #tpu.memory_space<vmem>>, %arg4: memref<1x64xf32, #tpu.memory_space<vmem>>, %arg5: memref<64x64xbf16, #tpu.memory_space<vmem>>, %arg6: memref<1x64xf32, #tpu.memory_space<vmem>>, %arg7: memref<32x64xbf16, #tpu.memory_space<vmem>>, %arg8: memref<1x64xf32, #tpu.memory_space<vmem>>, %arg9: memref<64x64xbf16, #tpu.memory_space<vmem>>, %arg10: memref<1x64xf32, #tpu.memory_space<vmem>>, %arg11: memref<2x64xf32, #tpu.memory_space<vmem>>) attributes {dimension_semantics = [#tpu.dimension_semantics<arbitrary>], iteration_bounds = array<i64: 1>, scalar_prefetch = 0 : i64, scratch_operands = 0 : i64, tpu.core_type = #tpu.core_type<tc>, window_params = [{pipeline_mode = #tpu.pipeline_mode<synchronous>, transform_indices = @transform_0, window_bounds = array<i64: 2, 256>}, {pipeline_mode = #tpu.pipeline_mode<synchronous>, transform_indices = @transform_1, window_bounds = array<i64: 2, 32>}, {pipeline_mode = #tpu.pipeline_mode<synchronous>, transform_indices = @transform_2, window_bounds = array<i64: 256, 64>}, {pipeline_mode = #tpu.pipeline_mode<synchronous>, transform_indices = @transform_3, window_bounds = array<i64: 1, 64>}, {pipeline_mode = #tpu.pipeline_mode<synchronous>, transform_indices = @transform_4, window_bounds = array<i64: 64, 64>}, {pipeline_mode = #tpu.pipeline_mode<synchronous>, transform_indices = @transform_5, window_bounds = array<i64: 1, 64>}, {pipeline_mode = #tpu.pipeline_mode<synchronous>, transform_indices = @transform_6, window_bounds = array<i64: 32, 64>}, {pipeline_mode = #tpu.pipeline_mode<synchronous>, transform_indices = @transform_7, window_bounds = array<i64: 1, 64>}, {pipeline_mode = #tpu.pipeline_mode<synchronous>, transform_indices = @transform_8, window_bounds = array<i64: 64, 64>}, {pipeline_mode = #tpu.pipeline_mode<synchronous>, transform_indices = @transform_9, window_bounds = array<i64: 1, 64>}, {pipeline_mode = #tpu.pipeline_mode<synchronous>, transform_indices = @transform_10, window_bounds = array<i64: 2, 64>}]} {
    %c0 = arith.constant 0 : index
    %c0_0 = arith.constant 0 : index
    %0 = vector.load %arg1[%c0, %c0_0] : memref<2x256xf32, #tpu.memory_space<vmem>>, vector<2x256xf32>
    %c0_1 = arith.constant 0 : index
    %c0_2 = arith.constant 0 : index
    %1 = vector.load %arg3[%c0_1, %c0_2] : memref<256x64xbf16, #tpu.memory_space<vmem>>, vector<256x64xbf16>
    %2 = arith.truncf %0 : vector<2x256xf32> to vector<2x256xbf16>
    %cst = arith.constant dense<0.000000e+00> : vector<2x64xf32>
    %3 = tpu.matmul %2, %1, %cst {dimension_numbers = #tpu.dot_dimension_numbers<[1], [0], [0], [1], [0, 0, 1, 1], [], []>} : vector<2x256xbf16>, vector<256x64xbf16>, vector<2x64xf32> -> vector<2x64xf32>
    %c0_3 = arith.constant 0 : index
    %c0_4 = arith.constant 0 : index
    %4 = vector.load %arg4[%c0_3, %c0_4] : memref<1x64xf32, #tpu.memory_space<vmem>>, vector<1x64xf32>
    %5 = vector.broadcast %4 : vector<1x64xf32> to vector<2x64xf32>
    %6 = arith.addf %3, %5 : vector<2x64xf32>
    %7 = arith.negf %6 : vector<2x64xf32>
    %8 = math.exp %7 : vector<2x64xf32>
    %cst_5 = arith.constant 1.000000e+00 : f32
    %9 = vector.broadcast %cst_5 : f32 to vector<2x64xf32>
    %10 = arith.addf %9, %8 : vector<2x64xf32>
    %11 = arith.divf %9, %10 : vector<2x64xf32>
    %12 = arith.mulf %6, %11 : vector<2x64xf32>
    %c0_6 = arith.constant 0 : index
    %c0_7 = arith.constant 0 : index
    %13 = vector.load %arg5[%c0_6, %c0_7] : memref<64x64xbf16, #tpu.memory_space<vmem>>, vector<64x64xbf16>
    %14 = arith.truncf %12 : vector<2x64xf32> to vector<2x64xbf16>
    %cst_8 = arith.constant dense<0.000000e+00> : vector<2x64xf32>
    %15 = tpu.matmul %14, %13, %cst_8 {dimension_numbers = #tpu.dot_dimension_numbers<[1], [0], [0], [1], [0, 0, 1, 1], [], []>} : vector<2x64xbf16>, vector<64x64xbf16>, vector<2x64xf32> -> vector<2x64xf32>
    %c0_9 = arith.constant 0 : index
    %c0_10 = arith.constant 0 : index
    %16 = vector.load %arg6[%c0_9, %c0_10] : memref<1x64xf32, #tpu.memory_space<vmem>>, vector<1x64xf32>
    %17 = vector.broadcast %16 : vector<1x64xf32> to vector<2x64xf32>
    %18 = arith.addf %15, %17 : vector<2x64xf32>
    %c0_11 = arith.constant 0 : index
    %c0_12 = arith.constant 0 : index
    %19 = vector.load %arg2[%c0_11, %c0_12] : memref<2x32xf32, #tpu.memory_space<vmem>>, vector<2x32xf32>
    %c0_13 = arith.constant 0 : index
    %c0_14 = arith.constant 0 : index
    %20 = vector.load %arg7[%c0_13, %c0_14] : memref<32x64xbf16, #tpu.memory_space<vmem>>, vector<32x64xbf16>
    %21 = arith.truncf %19 : vector<2x32xf32> to vector<2x32xbf16>
    %cst_15 = arith.constant dense<0.000000e+00> : vector<2x64xf32>
    %22 = tpu.matmul %21, %20, %cst_15 {dimension_numbers = #tpu.dot_dimension_numbers<[1], [0], [0], [1], [0, 0, 1, 1], [], []>} : vector<2x32xbf16>, vector<32x64xbf16>, vector<2x64xf32> -> vector<2x64xf32>
    %c0_16 = arith.constant 0 : index
    %c0_17 = arith.constant 0 : index
    %23 = vector.load %arg8[%c0_16, %c0_17] : memref<1x64xf32, #tpu.memory_space<vmem>>, vector<1x64xf32>
    %24 = vector.broadcast %23 : vector<1x64xf32> to vector<2x64xf32>
    %25 = arith.addf %22, %24 : vector<2x64xf32>
    %26 = arith.negf %25 : vector<2x64xf32>
    %27 = math.exp %26 : vector<2x64xf32>
    %cst_18 = arith.constant 1.000000e+00 : f32
    %28 = vector.broadcast %cst_18 : f32 to vector<2x64xf32>
    %29 = arith.addf %28, %27 : vector<2x64xf32>
    %30 = arith.divf %28, %29 : vector<2x64xf32>
    %31 = arith.mulf %25, %30 : vector<2x64xf32>
    %c0_19 = arith.constant 0 : index
    %c0_20 = arith.constant 0 : index
    %32 = vector.load %arg9[%c0_19, %c0_20] : memref<64x64xbf16, #tpu.memory_space<vmem>>, vector<64x64xbf16>
    %33 = arith.truncf %31 : vector<2x64xf32> to vector<2x64xbf16>
    %cst_21 = arith.constant dense<0.000000e+00> : vector<2x64xf32>
    %34 = tpu.matmul %33, %32, %cst_21 {dimension_numbers = #tpu.dot_dimension_numbers<[1], [0], [0], [1], [0, 0, 1, 1], [], []>} : vector<2x64xbf16>, vector<64x64xbf16>, vector<2x64xf32> -> vector<2x64xf32>
    %c0_22 = arith.constant 0 : index
    %c0_23 = arith.constant 0 : index
    %35 = vector.load %arg10[%c0_22, %c0_23] : memref<1x64xf32, #tpu.memory_space<vmem>>, vector<1x64xf32>
    %36 = vector.broadcast %35 : vector<1x64xf32> to vector<2x64xf32>
    %37 = arith.addf %34, %36 : vector<2x64xf32>
    %38 = arith.addf %18, %37 : vector<2x64xf32>
    %c0_24 = arith.constant 0 : index
    %c0_25 = arith.constant 0 : index
    %39 = vector.load %arg11[%c0_24, %c0_25] : memref<2x64xf32, #tpu.memory_space<vmem>>, vector<2x64xf32>
    tpu.vector_store %arg11[%c0_24, %c0_25], %38 {strides = array<i32>} : memref<2x64xf32, #tpu.memory_space<vmem>>, vector<2x64xf32>,
    return
  }
  func.func @transform_0(%arg0: i32) -> (i32, i32) {
    %c0_i32 = arith.constant 0 : i32
    %c0_i32_0 = arith.constant 0 : i32
    %c0_i32_1 = arith.constant 0 : i32
    return %c0_i32, %c0_i32_0 : i32, i32
  }
  func.func @transform_1(%arg0: i32) -> (i32, i32) {
    %c0_i32 = arith.constant 0 : i32
    %c0_i32_0 = arith.constant 0 : i32
    %c0_i32_1 = arith.constant 0 : i32
    return %c0_i32, %c0_i32_0 : i32, i32
  }
  func.func @transform_2(%arg0: i32) -> (i32, i32) {
    %c0_i32 = arith.constant 0 : i32
    %c0_i32_0 = arith.constant 0 : i32
    %c0_i32_1 = arith.constant 0 : i32
    return %c0_i32, %c0_i32_0 : i32, i32
  }
  func.func @transform_3(%arg0: i32) -> (i32, i32) {
    %c0_i32 = arith.constant 0 : i32
    %c0_i32_0 = arith.constant 0 : i32
    %c0_i32_1 = arith.constant 0 : i32
    return %c0_i32, %c0_i32_0 : i32, i32
  }
  func.func @transform_4(%arg0: i32) -> (i32, i32) {
    %c0_i32 = arith.constant 0 : i32
    %c0_i32_0 = arith.constant 0 : i32
    %c0_i32_1 = arith.constant 0 : i32
    return %c0_i32, %c0_i32_0 : i32, i32
  }
  func.func @transform_5(%arg0: i32) -> (i32, i32) {
    %c0_i32 = arith.constant 0 : i32
    %c0_i32_0 = arith.constant 0 : i32
    %c0_i32_1 = arith.constant 0 : i32
    return %c0_i32, %c0_i32_0 : i32, i32
  }
  func.func @transform_6(%arg0: i32) -> (i32, i32) {
    %c0_i32 = arith.constant 0 : i32
    %c0_i32_0 = arith.constant 0 : i32
    %c0_i32_1 = arith.constant 0 : i32
    return %c0_i32, %c0_i32_0 : i32, i32
  }
  func.func @transform_7(%arg0: i32) -> (i32, i32) {
    %c0_i32 = arith.constant 0 : i32
    %c0_i32_0 = arith.constant 0 : i32
    %c0_i32_1 = arith.constant 0 : i32
    return %c0_i32, %c0_i32_0 : i32, i32
  }
  func.func @transform_8(%arg0: i32) -> (i32, i32) {
    %c0_i32 = arith.constant 0 : i32
    %c0_i32_0 = arith.constant 0 : i32
    %c0_i32_1 = arith.constant 0 : i32
    return %c0_i32, %c0_i32_0 : i32, i32
  }
  func.func @transform_9(%arg0: i32) -> (i32, i32) {
    %c0_i32 = arith.constant 0 : i32
    %c0_i32_0 = arith.constant 0 : i32
    %c0_i32_1 = arith.constant 0 : i32
    return %c0_i32, %c0_i32_0 : i32, i32
  }
  func.func @transform_10(%arg0: i32) -> (i32, i32) {
    %c0_i32 = arith.constant 0 : i32
    %c0_i32_0 = arith.constant 0 : i32
    %c0_i32_1 = arith.constant 0 : i32
    return %c0_i32, %c0_i32_0 : i32, i32
  }
}

module attributes {stable_mosaic.version = 11 : i64} {
  func.func @_linear_kernel(%arg0: i32, %arg1: memref<32x16xf32, #tpu.memory_space<vmem>>, %arg2: memref<16x64xbf16, #tpu.memory_space<vmem>>, %arg3: memref<1x64xf32, #tpu.memory_space<vmem>>, %arg4: memref<32x64xf32, #tpu.memory_space<vmem>>) attributes {dimension_semantics = [#tpu.dimension_semantics<arbitrary>], iteration_bounds = array<i64: 1>, scalar_prefetch = 0 : i64, scratch_operands = 0 : i64, tpu.core_type = #tpu.core_type<tc>, window_params = [{pipeline_mode = #tpu.pipeline_mode<synchronous>, transform_indices = @transform_0, window_bounds = array<i64: 32, 16>}, {pipeline_mode = #tpu.pipeline_mode<synchronous>, transform_indices = @transform_1, window_bounds = array<i64: 16, 64>}, {pipeline_mode = #tpu.pipeline_mode<synchronous>, transform_indices = @transform_2, window_bounds = array<i64: 1, 64>}, {pipeline_mode = #tpu.pipeline_mode<synchronous>, transform_indices = @transform_3, window_bounds = array<i64: 32, 64>}]} {
    %c0 = arith.constant 0 : index
    %c0_0 = arith.constant 0 : index
    %0 = vector.load %arg1[%c0, %c0_0] : memref<32x16xf32, #tpu.memory_space<vmem>>, vector<32x16xf32>
    %c0_1 = arith.constant 0 : index
    %c0_2 = arith.constant 0 : index
    %1 = vector.load %arg2[%c0_1, %c0_2] : memref<16x64xbf16, #tpu.memory_space<vmem>>, vector<16x64xbf16>
    %2 = arith.truncf %0 : vector<32x16xf32> to vector<32x16xbf16>
    %cst = arith.constant dense<0.000000e+00> : vector<32x64xf32>
    %3 = tpu.matmul %2, %1, %cst {dimension_numbers = #tpu.dot_dimension_numbers<[1], [0], [0], [1], [0, 0, 1, 1], [], []>} : vector<32x16xbf16>, vector<16x64xbf16>, vector<32x64xf32> -> vector<32x64xf32>
    %c0_3 = arith.constant 0 : index
    %c0_4 = arith.constant 0 : index
    %4 = vector.load %arg3[%c0_3, %c0_4] : memref<1x64xf32, #tpu.memory_space<vmem>>, vector<1x64xf32>
    %5 = vector.broadcast %4 : vector<1x64xf32> to vector<32x64xf32>
    %6 = arith.addf %3, %5 : vector<32x64xf32>
    %c0_5 = arith.constant 0 : index
    %c0_6 = arith.constant 0 : index
    %7 = vector.load %arg4[%c0_5, %c0_6] : memref<32x64xf32, #tpu.memory_space<vmem>>, vector<32x64xf32>
    tpu.vector_store %arg4[%c0_5, %c0_6], %6 {strides = array<i32>} : memref<32x64xf32, #tpu.memory_space<vmem>>, vector<32x64xf32>,
    return
  }
  func.func @transform_0(%arg0: i32) -> (i32, i32) {
    %c0_i32 = arith.constant 0 : i32
    %c0_i32_0 = arith.constant 0 : i32
    %c0_i32_1 = arith.constant 0 : i32
    return %c0_i32, %c0_i32_0 : i32, i32
  }
  func.func @transform_1(%arg0: i32) -> (i32, i32) {
    %c0_i32 = arith.constant 0 : i32
    %c0_i32_0 = arith.constant 0 : i32
    %c0_i32_1 = arith.constant 0 : i32
    return %c0_i32, %c0_i32_0 : i32, i32
  }
  func.func @transform_2(%arg0: i32) -> (i32, i32) {
    %c0_i32 = arith.constant 0 : i32
    %c0_i32_0 = arith.constant 0 : i32
    %c0_i32_1 = arith.constant 0 : i32
    return %c0_i32, %c0_i32_0 : i32, i32
  }
  func.func @transform_3(%arg0: i32) -> (i32, i32) {
    %c0_i32 = arith.constant 0 : i32
    %c0_i32_0 = arith.constant 0 : i32
    %c0_i32_1 = arith.constant 0 : i32
    return %c0_i32, %c0_i32_0 : i32, i32
  }
}

module attributes {stable_mosaic.version = 11 : i64} {
  func.func @_linear_kernel(%arg0: i32, %arg1: memref<16x32xf32, #tpu.memory_space<vmem>>, %arg2: memref<32x64xbf16, #tpu.memory_space<vmem>>, %arg3: memref<1x64xf32, #tpu.memory_space<vmem>>, %arg4: memref<16x64xf32, #tpu.memory_space<vmem>>) attributes {dimension_semantics = [#tpu.dimension_semantics<arbitrary>], iteration_bounds = array<i64: 1>, scalar_prefetch = 0 : i64, scratch_operands = 0 : i64, tpu.core_type = #tpu.core_type<tc>, window_params = [{pipeline_mode = #tpu.pipeline_mode<synchronous>, transform_indices = @transform_0, window_bounds = array<i64: 16, 32>}, {pipeline_mode = #tpu.pipeline_mode<synchronous>, transform_indices = @transform_1, window_bounds = array<i64: 32, 64>}, {pipeline_mode = #tpu.pipeline_mode<synchronous>, transform_indices = @transform_2, window_bounds = array<i64: 1, 64>}, {pipeline_mode = #tpu.pipeline_mode<synchronous>, transform_indices = @transform_3, window_bounds = array<i64: 16, 64>}]} {
    %c0 = arith.constant 0 : index
    %c0_0 = arith.constant 0 : index
    %0 = vector.load %arg1[%c0, %c0_0] : memref<16x32xf32, #tpu.memory_space<vmem>>, vector<16x32xf32>
    %c0_1 = arith.constant 0 : index
    %c0_2 = arith.constant 0 : index
    %1 = vector.load %arg2[%c0_1, %c0_2] : memref<32x64xbf16, #tpu.memory_space<vmem>>, vector<32x64xbf16>
    %2 = arith.truncf %0 : vector<16x32xf32> to vector<16x32xbf16>
    %cst = arith.constant dense<0.000000e+00> : vector<16x64xf32>
    %3 = tpu.matmul %2, %1, %cst {dimension_numbers = #tpu.dot_dimension_numbers<[1], [0], [0], [1], [0, 0, 1, 1], [], []>} : vector<16x32xbf16>, vector<32x64xbf16>, vector<16x64xf32> -> vector<16x64xf32>
    %c0_3 = arith.constant 0 : index
    %c0_4 = arith.constant 0 : index
    %4 = vector.load %arg3[%c0_3, %c0_4] : memref<1x64xf32, #tpu.memory_space<vmem>>, vector<1x64xf32>
    %5 = vector.broadcast %4 : vector<1x64xf32> to vector<16x64xf32>
    %6 = arith.addf %3, %5 : vector<16x64xf32>
    %c0_5 = arith.constant 0 : index
    %c0_6 = arith.constant 0 : index
    %7 = vector.load %arg4[%c0_5, %c0_6] : memref<16x64xf32, #tpu.memory_space<vmem>>, vector<16x64xf32>
    tpu.vector_store %arg4[%c0_5, %c0_6], %6 {strides = array<i32>} : memref<16x64xf32, #tpu.memory_space<vmem>>, vector<16x64xf32>,
    return
  }
  func.func @transform_0(%arg0: i32) -> (i32, i32) {
    %c0_i32 = arith.constant 0 : i32
    %c0_i32_0 = arith.constant 0 : i32
    %c0_i32_1 = arith.constant 0 : i32
    return %c0_i32, %c0_i32_0 : i32, i32
  }
  func.func @transform_1(%arg0: i32) -> (i32, i32) {
    %c0_i32 = arith.constant 0 : i32
    %c0_i32_0 = arith.constant 0 : i32
    %c0_i32_1 = arith.constant 0 : i32
    return %c0_i32, %c0_i32_0 : i32, i32
  }
  func.func @transform_2(%arg0: i32) -> (i32, i32) {
    %c0_i32 = arith.constant 0 : i32
    %c0_i32_0 = arith.constant 0 : i32
    %c0_i32_1 = arith.constant 0 : i32
    return %c0_i32, %c0_i32_0 : i32, i32
  }
  func.func @transform_3(%arg0: i32) -> (i32, i32) {
    %c0_i32 = arith.constant 0 : i32
    %c0_i32_0 = arith.constant 0 : i32
    %c0_i32_1 = arith.constant 0 : i32
    return %c0_i32, %c0_i32_0 : i32, i32
  }
}

module attributes {stable_mosaic.version = 11 : i64} {
  func.func @_double_block_kernel(%arg0: i32, %arg1: memref<1x16x64xf32, #tpu.memory_space<vmem>>, %arg2: memref<1x8x64xf32, #tpu.memory_space<vmem>>, %arg3: memref<1x1x64xf32, #tpu.memory_space<vmem>>, %arg4: memref<1x24x32xf32, #tpu.memory_space<vmem>>, %arg5: memref<1x24x32xf32, #tpu.memory_space<vmem>>, %arg6: memref<64x384xbf16, #tpu.memory_space<vmem>>, %arg7: memref<1x384xf32, #tpu.memory_space<vmem>>, %arg8: memref<64x192xbf16, #tpu.memory_space<vmem>>, %arg9: memref<1x192xf32, #tpu.memory_space<vmem>>, %arg10: memref<1x32xf32, #tpu.memory_space<vmem>>, %arg11: memref<1x32xf32, #tpu.memory_space<vmem>>, %arg12: memref<64x64xbf16, #tpu.memory_space<vmem>>, %arg13: memref<1x64xf32, #tpu.memory_space<vmem>>, %arg14: memref<64x256xbf16, #tpu.memory_space<vmem>>, %arg15: memref<1x256xf32, #tpu.memory_space<vmem>>, %arg16: memref<256x64xbf16, #tpu.memory_space<vmem>>, %arg17: memref<1x64xf32, #tpu.memory_space<vmem>>, %arg18: memref<64x384xbf16, #tpu.memory_space<vmem>>, %arg19: memref<1x384xf32, #tpu.memory_space<vmem>>, %arg20: memref<64x192xbf16, #tpu.memory_space<vmem>>, %arg21: memref<1x192xf32, #tpu.memory_space<vmem>>, %arg22: memref<1x32xf32, #tpu.memory_space<vmem>>, %arg23: memref<1x32xf32, #tpu.memory_space<vmem>>, %arg24: memref<64x64xbf16, #tpu.memory_space<vmem>>, %arg25: memref<1x64xf32, #tpu.memory_space<vmem>>, %arg26: memref<64x256xbf16, #tpu.memory_space<vmem>>, %arg27: memref<1x256xf32, #tpu.memory_space<vmem>>, %arg28: memref<256x64xbf16, #tpu.memory_space<vmem>>, %arg29: memref<1x64xf32, #tpu.memory_space<vmem>>, %arg30: memref<1x16x64xf32, #tpu.memory_space<vmem>>, %arg31: memref<1x8x64xf32, #tpu.memory_space<vmem>>) attributes {dimension_semantics = [#tpu.dimension_semantics<parallel>], iteration_bounds = array<i64: 2>, scalar_prefetch = 0 : i64, scratch_operands = 0 : i64, tpu.core_type = #tpu.core_type<tc>, window_params = [{transform_indices = @transform_0, window_bounds = array<i64: 1, 16, 64>}, {transform_indices = @transform_1, window_bounds = array<i64: 1, 8, 64>}, {transform_indices = @transform_2, window_bounds = array<i64: 1, 1, 64>}, {transform_indices = @transform_3, window_bounds = array<i64: 1, 24, 32>}, {transform_indices = @transform_4, window_bounds = array<i64: 1, 24, 32>}, {pipeline_mode = #tpu.pipeline_mode<synchronous>, transform_indices = @transform_5, window_bounds = array<i64: 64, 384>}, {pipeline_mode = #tpu.pipeline_mode<synchronous>, transform_indices = @transform_6, window_bounds = array<i64: 1, 384>}, {pipeline_mode = #tpu.pipeline_mode<synchronous>, transform_indices = @transform_7, window_bounds = array<i64: 64, 192>}, {pipeline_mode = #tpu.pipeline_mode<synchronous>, transform_indices = @transform_8, window_bounds = array<i64: 1, 192>}, {pipeline_mode = #tpu.pipeline_mode<synchronous>, transform_indices = @transform_9, window_bounds = array<i64: 1, 32>}, {pipeline_mode = #tpu.pipeline_mode<synchronous>, transform_indices = @transform_10, window_bounds = array<i64: 1, 32>}, {pipeline_mode = #tpu.pipeline_mode<synchronous>, transform_indices = @transform_11, window_bounds = array<i64: 64, 64>}, {pipeline_mode = #tpu.pipeline_mode<synchronous>, transform_indices = @transform_12, window_bounds = array<i64: 1, 64>}, {pipeline_mode = #tpu.pipeline_mode<synchronous>, transform_indices = @transform_13, window_bounds = array<i64: 64, 256>}, {pipeline_mode = #tpu.pipeline_mode<synchronous>, transform_indices = @transform_14, window_bounds = array<i64: 1, 256>}, {pipeline_mode = #tpu.pipeline_mode<synchronous>, transform_indices = @transform_15, window_bounds = array<i64: 256, 64>}, {pipeline_mode = #tpu.pipeline_mode<synchronous>, transform_indices = @transform_16, window_bounds = array<i64: 1, 64>}, {pipeline_mode = #tpu.pipeline_mode<synchronous>, transform_indices = @transform_17, window_bounds = array<i64: 64, 384>}, {pipeline_mode = #tpu.pipeline_mode<synchronous>, transform_indices = @transform_18, window_bounds = array<i64: 1, 384>}, {pipeline_mode = #tpu.pipeline_mode<synchronous>, transform_indices = @transform_19, window_bounds = array<i64: 64, 192>}, {pipeline_mode = #tpu.pipeline_mode<synchronous>, transform_indices = @transform_20, window_bounds = array<i64: 1, 192>}, {pipeline_mode = #tpu.pipeline_mode<synchronous>, transform_indices = @transform_21, window_bounds = array<i64: 1, 32>}, {pipeline_mode = #tpu.pipeline_mode<synchronous>, transform_indices = @transform_22, window_bounds = array<i64: 1, 32>}, {pipeline_mode = #tpu.pipeline_mode<synchronous>, transform_indices = @transform_23, window_bounds = array<i64: 64, 64>}, {pipeline_mode = #tpu.pipeline_mode<synchronous>, transform_indices = @transform_24, window_bounds = array<i64: 1, 64>}, {pipeline_mode = #tpu.pipeline_mode<synchronous>, transform_indices = @transform_25, window_bounds = array<i64: 64, 256>}, {pipeline_mode = #tpu.pipeline_mode<synchronous>, transform_indices = @transform_26, window_bounds = array<i64: 1, 256>}, {pipeline_mode = #tpu.pipeline_mode<synchronous>, transform_indices = @transform_27, window_bounds = array<i64: 256, 64>}, {pipeline_mode = #tpu.pipeline_mode<synchronous>, transform_indices = @transform_28, window_bounds = array<i64: 1, 64>}, {transform_indices = @transform_29, window_bounds = array<i64: 1, 16, 64>}, {transform_indices = @transform_30, window_bounds = array<i64: 1, 8, 64>}]} {
    %c0 = arith.constant 0 : index
    %c0_0 = arith.constant 0 : index
    %c0_1 = arith.constant 0 : index
    %0 = vector.load %arg1[%c0, %c0_0, %c0_1] : memref<1x16x64xf32, #tpu.memory_space<vmem>>, vector<1x16x64xf32>
    %1 = vector.shape_cast %0 : vector<1x16x64xf32> to vector<16x64xf32>
    %c0_2 = arith.constant 0 : index
    %c0_3 = arith.constant 0 : index
    %c0_4 = arith.constant 0 : index
    %2 = vector.load %arg2[%c0_2, %c0_3, %c0_4] : memref<1x8x64xf32, #tpu.memory_space<vmem>>, vector<1x8x64xf32>
    %3 = vector.shape_cast %2 : vector<1x8x64xf32> to vector<8x64xf32>
    %c0_5 = arith.constant 0 : index
    %c0_6 = arith.constant 0 : index
    %c0_7 = arith.constant 0 : index
    %4 = vector.load %arg3[%c0_5, %c0_6, %c0_7] : memref<1x1x64xf32, #tpu.memory_space<vmem>>, vector<1x1x64xf32>
    %5 = vector.shape_cast %4 : vector<1x1x64xf32> to vector<1x64xf32>
    %c0_8 = arith.constant 0 : index
    %c0_9 = arith.constant 0 : index
    %c0_10 = arith.constant 0 : index
    %6 = vector.load %arg4[%c0_8, %c0_9, %c0_10] : memref<1x24x32xf32, #tpu.memory_space<vmem>>, vector<1x24x32xf32>
    %7 = vector.shape_cast %6 : vector<1x24x32xf32> to vector<24x32xf32>
    %c0_11 = arith.constant 0 : index
    %c0_12 = arith.constant 0 : index
    %c0_13 = arith.constant 0 : index
    %8 = vector.load %arg5[%c0_11, %c0_12, %c0_13] : memref<1x24x32xf32, #tpu.memory_space<vmem>>, vector<1x24x32xf32>
    %9 = vector.shape_cast %8 : vector<1x24x32xf32> to vector<24x32xf32>
    %10 = tpu.iota {dimensions = array<i32: 0>} : vector<32x32xi32>
    %11 = tpu.iota {dimensions = array<i32: 1>} : vector<32x32xi32>
    %c1_i32 = arith.constant 1 : i32
    %12 = vector.broadcast %c1_i32 : i32 to vector<32x32xi32>
    %13 = arith.xori %10, %12 : vector<32x32xi32>
    %14 = arith.cmpi eq, %13, %11 : vector<32x32xi32>
    %15 = arith.extui %14 : vector<32x32xi1> to vector<32x32xi32>
    %16 = arith.sitofp %15 : vector<32x32xi32> to vector<32x32xf32>
    %17 = arith.truncf %16 : vector<32x32xf32> to vector<32x32xbf16>
    %18 = arith.negf %5 : vector<1x64xf32>
    %19 = math.exp %18 : vector<1x64xf32>
    %cst = arith.constant 1.000000e+00 : f32
    %20 = vector.broadcast %cst : f32 to vector<1x64xf32>
    %21 = arith.addf %20, %19 : vector<1x64xf32>
    %22 = arith.divf %20, %21 : vector<1x64xf32>
    %23 = arith.mulf %5, %22 : vector<1x64xf32>
    %c0_14 = arith.constant 0 : index
    %c0_15 = arith.constant 0 : index
    %24 = vector.load %arg6[%c0_14, %c0_15] : memref<64x384xbf16, #tpu.memory_space<vmem>>, vector<64x384xbf16>
    %25 = arith.truncf %23 : vector<1x64xf32> to vector<1x64xbf16>
    %cst_16 = arith.constant dense<0.000000e+00> : vector<1x384xf32>
    %26 = tpu.matmul %25, %24, %cst_16 {dimension_numbers = #tpu.dot_dimension_numbers<[1], [0], [0], [1], [0, 0, 1, 1], [], []>} : vector<1x64xbf16>, vector<64x384xbf16>, vector<1x384xf32> -> vector<1x384xf32>
    %c0_17 = arith.constant 0 : index
    %c0_18 = arith.constant 0 : index
    %27 = vector.load %arg7[%c0_17, %c0_18] : memref<1x384xf32, #tpu.memory_space<vmem>>, vector<1x384xf32>
    %28 = arith.addf %26, %27 : vector<1x384xf32>
    %c0_19 = arith.constant 0 : index
    %c0_20 = arith.constant 0 : index
    %29 = vector.load %arg18[%c0_19, %c0_20] : memref<64x384xbf16, #tpu.memory_space<vmem>>, vector<64x384xbf16>
    %30 = arith.truncf %23 : vector<1x64xf32> to vector<1x64xbf16>
    %cst_21 = arith.constant dense<0.000000e+00> : vector<1x384xf32>
    %31 = tpu.matmul %30, %29, %cst_21 {dimension_numbers = #tpu.dot_dimension_numbers<[1], [0], [0], [1], [0, 0, 1, 1], [], []>} : vector<1x64xbf16>, vector<64x384xbf16>, vector<1x384xf32> -> vector<1x384xf32>
    %c0_22 = arith.constant 0 : index
    %c0_23 = arith.constant 0 : index
    %32 = vector.load %arg19[%c0_22, %c0_23] : memref<1x384xf32, #tpu.memory_space<vmem>>, vector<1x384xf32>
    %33 = arith.addf %31, %32 : vector<1x384xf32>
    %34 = vector.extract_strided_slice %28 {offsets = [0, 0], sizes = [1, 64], strides = [1, 1]} : vector<1x384xf32> to vector<1x64xf32>
    %35 = vector.extract_strided_slice %28 {offsets = [0, 64], sizes = [1, 64], strides = [1, 1]} : vector<1x384xf32> to vector<1x64xf32>
    %36 = vector.extract_strided_slice %28 {offsets = [0, 128], sizes = [1, 64], strides = [1, 1]} : vector<1x384xf32> to vector<1x64xf32>
    %37 = vector.extract_strided_slice %28 {offsets = [0, 192], sizes = [1, 64], strides = [1, 1]} : vector<1x384xf32> to vector<1x64xf32>
    %38 = vector.extract_strided_slice %28 {offsets = [0, 256], sizes = [1, 64], strides = [1, 1]} : vector<1x384xf32> to vector<1x64xf32>
    %39 = vector.extract_strided_slice %28 {offsets = [0, 320], sizes = [1, 64], strides = [1, 1]} : vector<1x384xf32> to vector<1x64xf32>
    %40 = vector.extract_strided_slice %33 {offsets = [0, 0], sizes = [1, 64], strides = [1, 1]} : vector<1x384xf32> to vector<1x64xf32>
    %41 = vector.extract_strided_slice %33 {offsets = [0, 64], sizes = [1, 64], strides = [1, 1]} : vector<1x384xf32> to vector<1x64xf32>
    %42 = vector.extract_strided_slice %33 {offsets = [0, 128], sizes = [1, 64], strides = [1, 1]} : vector<1x384xf32> to vector<1x64xf32>
    %43 = vector.extract_strided_slice %33 {offsets = [0, 192], sizes = [1, 64], strides = [1, 1]} : vector<1x384xf32> to vector<1x64xf32>
    %44 = vector.extract_strided_slice %33 {offsets = [0, 256], sizes = [1, 64], strides = [1, 1]} : vector<1x384xf32> to vector<1x64xf32>
    %45 = vector.extract_strided_slice %33 {offsets = [0, 320], sizes = [1, 64], strides = [1, 1]} : vector<1x384xf32> to vector<1x64xf32>
    %cst_24 = arith.constant 1.000000e+00 : f32
    %46 = vector.broadcast %cst_24 : f32 to vector<1x64xf32>
    %47 = arith.addf %46, %35 : vector<1x64xf32>
    %cst_25 = arith.constant dense<0.000000e+00> : vector<16xf32>
    %48 = vector.multi_reduction <add>, %1, %cst_25 [1] : vector<16x64xf32> to vector<16xf32>
    %49 = vector.shape_cast %48 : vector<16xf32> to vector<16x1xf32>
    %cst_26 = arith.constant 6.400000e+01 : f32
    %50 = vector.broadcast %cst_26 : f32 to vector<16x1xf32>
    %51 = arith.divf %49, %50 : vector<16x1xf32>
    %52 = vector.broadcast %51 : vector<16x1xf32> to vector<16x64xf32>
    %53 = arith.subf %1, %52 : vector<16x64xf32>
    %54 = arith.mulf %53, %53 : vector<16x64xf32>
    %cst_27 = arith.constant dense<0.000000e+00> : vector<16xf32>
    %55 = vector.multi_reduction <add>, %54, %cst_27 [1] : vector<16x64xf32> to vector<16xf32>
    %56 = vector.shape_cast %55 : vector<16xf32> to vector<16x1xf32>
    %cst_28 = arith.constant 6.400000e+01 : f32
    %57 = vector.broadcast %cst_28 : f32 to vector<16x1xf32>
    %58 = arith.divf %56, %57 : vector<16x1xf32>
    %59 = vector.broadcast %51 : vector<16x1xf32> to vector<16x64xf32>
    %60 = arith.subf %1, %59 : vector<16x64xf32>
    %cst_29 = arith.constant 9.99999997E-7 : f32
    %61 = vector.broadcast %cst_29 : f32 to vector<16x1xf32>
    %62 = arith.addf %58, %61 : vector<16x1xf32>
    %63 = math.rsqrt %62 : vector<16x1xf32>
    %64 = vector.broadcast %63 : vector<16x1xf32> to vector<16x64xf32>
    %65 = arith.mulf %60, %64 : vector<16x64xf32>
    %66 = vector.broadcast %47 : vector<1x64xf32> to vector<16x64xf32>
    %67 = arith.mulf %66, %65 : vector<16x64xf32>
    %68 = vector.broadcast %34 : vector<1x64xf32> to vector<16x64xf32>
    %69 = arith.addf %67, %68 : vector<16x64xf32>
    %cst_30 = arith.constant 1.000000e+00 : f32
    %70 = vector.broadcast %cst_30 : f32 to vector<1x64xf32>
    %71 = arith.addf %70, %41 : vector<1x64xf32>
    %cst_31 = arith.constant dense<0.000000e+00> : vector<8xf32>
    %72 = vector.multi_reduction <add>, %3, %cst_31 [1] : vector<8x64xf32> to vector<8xf32>
    %73 = vector.shape_cast %72 : vector<8xf32> to vector<8x1xf32>
    %cst_32 = arith.constant 6.400000e+01 : f32
    %74 = vector.broadcast %cst_32 : f32 to vector<8x1xf32>
    %75 = arith.divf %73, %74 : vector<8x1xf32>
    %76 = vector.broadcast %75 : vector<8x1xf32> to vector<8x64xf32>
    %77 = arith.subf %3, %76 : vector<8x64xf32>
    %78 = arith.mulf %77, %77 : vector<8x64xf32>
    %cst_33 = arith.constant dense<0.000000e+00> : vector<8xf32>
    %79 = vector.multi_reduction <add>, %78, %cst_33 [1] : vector<8x64xf32> to vector<8xf32>
    %80 = vector.shape_cast %79 : vector<8xf32> to vector<8x1xf32>
    %cst_34 = arith.constant 6.400000e+01 : f32
    %81 = vector.broadcast %cst_34 : f32 to vector<8x1xf32>
    %82 = arith.divf %80, %81 : vector<8x1xf32>
    %83 = vector.broadcast %75 : vector<8x1xf32> to vector<8x64xf32>
    %84 = arith.subf %3, %83 : vector<8x64xf32>
    %cst_35 = arith.constant 9.99999997E-7 : f32
    %85 = vector.broadcast %cst_35 : f32 to vector<8x1xf32>
    %86 = arith.addf %82, %85 : vector<8x1xf32>
    %87 = math.rsqrt %86 : vector<8x1xf32>
    %88 = vector.broadcast %87 : vector<8x1xf32> to vector<8x64xf32>
    %89 = arith.mulf %84, %88 : vector<8x64xf32>
    %90 = vector.broadcast %71 : vector<1x64xf32> to vector<8x64xf32>
    %91 = arith.mulf %90, %89 : vector<8x64xf32>
    %92 = vector.broadcast %40 : vector<1x64xf32> to vector<8x64xf32>
    %93 = arith.addf %91, %92 : vector<8x64xf32>
    %c0_36 = arith.constant 0 : index
    %c0_37 = arith.constant 0 : index
    %94 = vector.load %arg8[%c0_36, %c0_37] : memref<64x192xbf16, #tpu.memory_space<vmem>>, vector<64x192xbf16>
    %95 = arith.truncf %69 : vector<16x64xf32> to vector<16x64xbf16>
    %cst_38 = arith.constant dense<0.000000e+00> : vector<16x192xf32>
    %96 = tpu.matmul %95, %94, %cst_38 {dimension_numbers = #tpu.dot_dimension_numbers<[1], [0], [0], [1], [0, 0, 1, 1], [], []>} : vector<16x64xbf16>, vector<64x192xbf16>, vector<16x192xf32> -> vector<16x192xf32>
    %c0_39 = arith.constant 0 : index
    %c0_40 = arith.constant 0 : index
    %97 = vector.load %arg9[%c0_39, %c0_40] : memref<1x192xf32, #tpu.memory_space<vmem>>, vector<1x192xf32>
    %98 = vector.broadcast %97 : vector<1x192xf32> to vector<16x192xf32>
    %99 = arith.addf %96, %98 : vector<16x192xf32>
    %c0_41 = arith.constant 0 : index
    %c0_42 = arith.constant 0 : index
    %100 = vector.load %arg20[%c0_41, %c0_42] : memref<64x192xbf16, #tpu.memory_space<vmem>>, vector<64x192xbf16>
    %101 = arith.truncf %93 : vector<8x64xf32> to vector<8x64xbf16>
    %cst_43 = arith.constant dense<0.000000e+00> : vector<8x192xf32>
    %102 = tpu.matmul %101, %100, %cst_43 {dimension_numbers = #tpu.dot_dimension_numbers<[1], [0], [0], [1], [0, 0, 1, 1], [], []>} : vector<8x64xbf16>, vector<64x192xbf16>, vector<8x192xf32> -> vector<8x192xf32>
    %c0_44 = arith.constant 0 : index
    %c0_45 = arith.constant 0 : index
    %103 = vector.load %arg21[%c0_44, %c0_45] : memref<1x192xf32, #tpu.memory_space<vmem>>, vector<1x192xf32>
    %104 = vector.broadcast %103 : vector<1x192xf32> to vector<8x192xf32>
    %105 = arith.addf %102, %104 : vector<8x192xf32>
    %106 = vector.extract_strided_slice %99 {offsets = [0, 0], sizes = [16, 32], strides = [1, 1]} : vector<16x192xf32> to vector<16x32xf32>
    %c0_46 = arith.constant 0 : index
    %c0_47 = arith.constant 0 : index
    %107 = vector.load %arg10[%c0_46, %c0_47] : memref<1x32xf32, #tpu.memory_space<vmem>>, vector<1x32xf32>
    %108 = arith.mulf %106, %106 : vector<16x32xf32>
    %cst_48 = arith.constant dense<0.000000e+00> : vector<16xf32>
    %109 = vector.multi_reduction <add>, %108, %cst_48 [1] : vector<16x32xf32> to vector<16xf32>
    %110 = vector.shape_cast %109 : vector<16xf32> to vector<16x1xf32>
    %cst_49 = arith.constant 3.200000e+01 : f32
    %111 = vector.broadcast %cst_49 : f32 to vector<16x1xf32>
    %112 = arith.divf %110, %111 : vector<16x1xf32>
    %cst_50 = arith.constant 9.99999997E-7 : f32
    %113 = vector.broadcast %cst_50 : f32 to vector<16x1xf32>
    %114 = arith.addf %112, %113 : vector<16x1xf32>
    %115 = math.rsqrt %114 : vector<16x1xf32>
    %116 = vector.broadcast %115 : vector<16x1xf32> to vector<16x32xf32>
    %117 = arith.mulf %106, %116 : vector<16x32xf32>
    %118 = vector.broadcast %107 : vector<1x32xf32> to vector<16x32xf32>
    %119 = arith.mulf %117, %118 : vector<16x32xf32>
    %120 = vector.extract_strided_slice %99 {offsets = [0, 64], sizes = [16, 32], strides = [1, 1]} : vector<16x192xf32> to vector<16x32xf32>
    %c0_51 = arith.constant 0 : index
    %c0_52 = arith.constant 0 : index
    %121 = vector.load %arg11[%c0_51, %c0_52] : memref<1x32xf32, #tpu.memory_space<vmem>>, vector<1x32xf32>
    %122 = arith.mulf %120, %120 : vector<16x32xf32>
    %cst_53 = arith.constant dense<0.000000e+00> : vector<16xf32>
    %123 = vector.multi_reduction <add>, %122, %cst_53 [1] : vector<16x32xf32> to vector<16xf32>
    %124 = vector.shape_cast %123 : vector<16xf32> to vector<16x1xf32>
    %cst_54 = arith.constant 3.200000e+01 : f32
    %125 = vector.broadcast %cst_54 : f32 to vector<16x1xf32>
    %126 = arith.divf %124, %125 : vector<16x1xf32>
    %cst_55 = arith.constant 9.99999997E-7 : f32
    %127 = vector.broadcast %cst_55 : f32 to vector<16x1xf32>
    %128 = arith.addf %126, %127 : vector<16x1xf32>
    %129 = math.rsqrt %128 : vector<16x1xf32>
    %130 = vector.broadcast %129 : vector<16x1xf32> to vector<16x32xf32>
    %131 = arith.mulf %120, %130 : vector<16x32xf32>
    %132 = vector.broadcast %121 : vector<1x32xf32> to vector<16x32xf32>
    %133 = arith.mulf %131, %132 : vector<16x32xf32>
    %134 = vector.extract_strided_slice %99 {offsets = [0, 128], sizes = [16, 32], strides = [1, 1]} : vector<16x192xf32> to vector<16x32xf32>
    %135 = vector.extract_strided_slice %105 {offsets = [0, 0], sizes = [8, 32], strides = [1, 1]} : vector<8x192xf32> to vector<8x32xf32>
    %c0_56 = arith.constant 0 : index
    %c0_57 = arith.constant 0 : index
    %136 = vector.load %arg22[%c0_56, %c0_57] : memref<1x32xf32, #tpu.memory_space<vmem>>, vector<1x32xf32>
    %137 = arith.mulf %135, %135 : vector<8x32xf32>
    %cst_58 = arith.constant dense<0.000000e+00> : vector<8xf32>
    %138 = vector.multi_reduction <add>, %137, %cst_58 [1] : vector<8x32xf32> to vector<8xf32>
    %139 = vector.shape_cast %138 : vector<8xf32> to vector<8x1xf32>
    %cst_59 = arith.constant 3.200000e+01 : f32
    %140 = vector.broadcast %cst_59 : f32 to vector<8x1xf32>
    %141 = arith.divf %139, %140 : vector<8x1xf32>
    %cst_60 = arith.constant 9.99999997E-7 : f32
    %142 = vector.broadcast %cst_60 : f32 to vector<8x1xf32>
    %143 = arith.addf %141, %142 : vector<8x1xf32>
    %144 = math.rsqrt %143 : vector<8x1xf32>
    %145 = vector.broadcast %144 : vector<8x1xf32> to vector<8x32xf32>
    %146 = arith.mulf %135, %145 : vector<8x32xf32>
    %147 = vector.broadcast %136 : vector<1x32xf32> to vector<8x32xf32>
    %148 = arith.mulf %146, %147 : vector<8x32xf32>
    %149 = vector.extract_strided_slice %105 {offsets = [0, 64], sizes = [8, 32], strides = [1, 1]} : vector<8x192xf32> to vector<8x32xf32>
    %c0_61 = arith.constant 0 : index
    %c0_62 = arith.constant 0 : index
    %150 = vector.load %arg23[%c0_61, %c0_62] : memref<1x32xf32, #tpu.memory_space<vmem>>, vector<1x32xf32>
    %151 = arith.mulf %149, %149 : vector<8x32xf32>
    %cst_63 = arith.constant dense<0.000000e+00> : vector<8xf32>
    %152 = vector.multi_reduction <add>, %151, %cst_63 [1] : vector<8x32xf32> to vector<8xf32>
    %153 = vector.shape_cast %152 : vector<8xf32> to vector<8x1xf32>
    %cst_64 = arith.constant 3.200000e+01 : f32
    %154 = vector.broadcast %cst_64 : f32 to vector<8x1xf32>
    %155 = arith.divf %153, %154 : vector<8x1xf32>
    %cst_65 = arith.constant 9.99999997E-7 : f32
    %156 = vector.broadcast %cst_65 : f32 to vector<8x1xf32>
    %157 = arith.addf %155, %156 : vector<8x1xf32>
    %158 = math.rsqrt %157 : vector<8x1xf32>
    %159 = vector.broadcast %158 : vector<8x1xf32> to vector<8x32xf32>
    %160 = arith.mulf %149, %159 : vector<8x32xf32>
    %161 = vector.broadcast %150 : vector<1x32xf32> to vector<8x32xf32>
    %162 = arith.mulf %160, %161 : vector<8x32xf32>
    %163 = vector.extract_strided_slice %105 {offsets = [0, 128], sizes = [8, 32], strides = [1, 1]} : vector<8x192xf32> to vector<8x32xf32>
    %164 = tpu.concatenate %148, %119 in 0 : vector<8x32xf32>, vector<16x32xf32> -> vector<24x32xf32>
    %165 = tpu.concatenate %162, %133 in 0 : vector<8x32xf32>, vector<16x32xf32> -> vector<24x32xf32>
    %166 = tpu.concatenate %163, %134 in 0 : vector<8x32xf32>, vector<16x32xf32> -> vector<24x32xf32>
    %167 = arith.mulf %7, %164 : vector<24x32xf32>
    %168 = arith.truncf %164 : vector<24x32xf32> to vector<24x32xbf16>
    %cst_66 = arith.constant dense<0.000000e+00> : vector<24x32xf32>
    %169 = tpu.matmul %168, %17, %cst_66 {dimension_numbers = #tpu.dot_dimension_numbers<[1], [0], [0], [1], [0, 0, 1, 1], [], []>} : vector<24x32xbf16>, vector<32x32xbf16>, vector<24x32xf32> -> vector<24x32xf32>
    %170 = arith.mulf %9, %169 : vector<24x32xf32>
    %171 = arith.addf %167, %170 : vector<24x32xf32>
    %172 = arith.mulf %7, %165 : vector<24x32xf32>
    %173 = arith.truncf %165 : vector<24x32xf32> to vector<24x32xbf16>
    %cst_67 = arith.constant dense<0.000000e+00> : vector<24x32xf32>
    %174 = tpu.matmul %173, %17, %cst_67 {dimension_numbers = #tpu.dot_dimension_numbers<[1], [0], [0], [1], [0, 0, 1, 1], [], []>} : vector<24x32xbf16>, vector<32x32xbf16>, vector<24x32xf32> -> vector<24x32xf32>
    %175 = arith.mulf %9, %174 : vector<24x32xf32>
    %176 = arith.addf %172, %175 : vector<24x32xf32>
    %177 = arith.truncf %171 : vector<24x32xf32> to vector<24x32xbf16>
    %178 = arith.truncf %176 : vector<24x32xf32> to vector<24x32xbf16>
    %cst_68 = arith.constant dense<0.000000e+00> : vector<24x24xf32>
    %179 = tpu.matmul %177, %178, %cst_68 {dimension_numbers = #tpu.dot_dimension_numbers<[1], [1], [0], [0], [0, 0, 1, 0], [], []>} : vector<24x32xbf16>, vector<24x32xbf16>, vector<24x24xf32> -> vector<24x24xf32>
    %cst_69 = arith.constant 0.176776692 : f32
    %180 = vector.broadcast %cst_69 : f32 to vector<24x24xf32>
    %181 = arith.mulf %179, %180 : vector<24x24xf32>
    %cst_70 = arith.constant dense<0xFF800000> : vector<24xf32>
    %182 = vector.multi_reduction <maximumf>, %181, %cst_70 [1] : vector<24x24xf32> to vector<24xf32>
    %183 = vector.shape_cast %182 : vector<24xf32> to vector<24x1xf32>
    %184 = vector.broadcast %183 : vector<24x1xf32> to vector<24x24xf32>
    %185 = arith.subf %181, %184 : vector<24x24xf32>
    %186 = math.exp %185 : vector<24x24xf32>
    %cst_71 = arith.constant dense<0.000000e+00> : vector<24xf32>
    %187 = vector.multi_reduction <add>, %186, %cst_71 [1] : vector<24x24xf32> to vector<24xf32>
    %188 = vector.shape_cast %187 : vector<24xf32> to vector<24x1xf32>
    %189 = tpu.reciprocal %188 {approx = true} : vector<24x1xf32> -> vector<24x1xf32>
    %190 = vector.broadcast %189 : vector<24x1xf32> to vector<24x24xf32>
    %191 = arith.mulf %186, %190 : vector<24x24xf32>
    %192 = arith.truncf %191 : vector<24x24xf32> to vector<24x24xbf16>
    %193 = arith.truncf %166 : vector<24x32xf32> to vector<24x32xbf16>
    %cst_72 = arith.constant dense<0.000000e+00> : vector<24x32xf32>
    %194 = tpu.matmul %192, %193, %cst_72 {dimension_numbers = #tpu.dot_dimension_numbers<[1], [0], [0], [1], [0, 0, 1, 1], [], []>} : vector<24x24xbf16>, vector<24x32xbf16>, vector<24x32xf32> -> vector<24x32xf32>
    %195 = vector.extract_strided_slice %99 {offsets = [0, 32], sizes = [16, 32], strides = [1, 1]} : vector<16x192xf32> to vector<16x32xf32>
    %c0_73 = arith.constant 0 : index
    %c0_74 = arith.constant 0 : index
    %196 = vector.load %arg10[%c0_73, %c0_74] : memref<1x32xf32, #tpu.memory_space<vmem>>, vector<1x32xf32>
    %197 = arith.mulf %195, %195 : vector<16x32xf32>
    %cst_75 = arith.constant dense<0.000000e+00> : vector<16xf32>
    %198 = vector.multi_reduction <add>, %197, %cst_75 [1] : vector<16x32xf32> to vector<16xf32>
    %199 = vector.shape_cast %198 : vector<16xf32> to vector<16x1xf32>
    %cst_76 = arith.constant 3.200000e+01 : f32
    %200 = vector.broadcast %cst_76 : f32 to vector<16x1xf32>
    %201 = arith.divf %199, %200 : vector<16x1xf32>
    %cst_77 = arith.constant 9.99999997E-7 : f32
    %202 = vector.broadcast %cst_77 : f32 to vector<16x1xf32>
    %203 = arith.addf %201, %202 : vector<16x1xf32>
    %204 = math.rsqrt %203 : vector<16x1xf32>
    %205 = vector.broadcast %204 : vector<16x1xf32> to vector<16x32xf32>
    %206 = arith.mulf %195, %205 : vector<16x32xf32>
    %207 = vector.broadcast %196 : vector<1x32xf32> to vector<16x32xf32>
    %208 = arith.mulf %206, %207 : vector<16x32xf32>
    %209 = vector.extract_strided_slice %99 {offsets = [0, 96], sizes = [16, 32], strides = [1, 1]} : vector<16x192xf32> to vector<16x32xf32>
    %c0_78 = arith.constant 0 : index
    %c0_79 = arith.constant 0 : index
    %210 = vector.load %arg11[%c0_78, %c0_79] : memref<1x32xf32, #tpu.memory_space<vmem>>, vector<1x32xf32>
    %211 = arith.mulf %209, %209 : vector<16x32xf32>
    %cst_80 = arith.constant dense<0.000000e+00> : vector<16xf32>
    %212 = vector.multi_reduction <add>, %211, %cst_80 [1] : vector<16x32xf32> to vector<16xf32>
    %213 = vector.shape_cast %212 : vector<16xf32> to vector<16x1xf32>
    %cst_81 = arith.constant 3.200000e+01 : f32
    %214 = vector.broadcast %cst_81 : f32 to vector<16x1xf32>
    %215 = arith.divf %213, %214 : vector<16x1xf32>
    %cst_82 = arith.constant 9.99999997E-7 : f32
    %216 = vector.broadcast %cst_82 : f32 to vector<16x1xf32>
    %217 = arith.addf %215, %216 : vector<16x1xf32>
    %218 = math.rsqrt %217 : vector<16x1xf32>
    %219 = vector.broadcast %218 : vector<16x1xf32> to vector<16x32xf32>
    %220 = arith.mulf %209, %219 : vector<16x32xf32>
    %221 = vector.broadcast %210 : vector<1x32xf32> to vector<16x32xf32>
    %222 = arith.mulf %220, %221 : vector<16x32xf32>
    %223 = vector.extract_strided_slice %99 {offsets = [0, 160], sizes = [16, 32], strides = [1, 1]} : vector<16x192xf32> to vector<16x32xf32>
    %224 = vector.extract_strided_slice %105 {offsets = [0, 32], sizes = [8, 32], strides = [1, 1]} : vector<8x192xf32> to vector<8x32xf32>
    %c0_83 = arith.constant 0 : index
    %c0_84 = arith.constant 0 : index
    %225 = vector.load %arg22[%c0_83, %c0_84] : memref<1x32xf32, #tpu.memory_space<vmem>>, vector<1x32xf32>
    %226 = arith.mulf %224, %224 : vector<8x32xf32>
    %cst_85 = arith.constant dense<0.000000e+00> : vector<8xf32>
    %227 = vector.multi_reduction <add>, %226, %cst_85 [1] : vector<8x32xf32> to vector<8xf32>
    %228 = vector.shape_cast %227 : vector<8xf32> to vector<8x1xf32>
    %cst_86 = arith.constant 3.200000e+01 : f32
    %229 = vector.broadcast %cst_86 : f32 to vector<8x1xf32>
    %230 = arith.divf %228, %229 : vector<8x1xf32>
    %cst_87 = arith.constant 9.99999997E-7 : f32
    %231 = vector.broadcast %cst_87 : f32 to vector<8x1xf32>
    %232 = arith.addf %230, %231 : vector<8x1xf32>
    %233 = math.rsqrt %232 : vector<8x1xf32>
    %234 = vector.broadcast %233 : vector<8x1xf32> to vector<8x32xf32>
    %235 = arith.mulf %224, %234 : vector<8x32xf32>
    %236 = vector.broadcast %225 : vector<1x32xf32> to vector<8x32xf32>
    %237 = arith.mulf %235, %236 : vector<8x32xf32>
    %238 = vector.extract_strided_slice %105 {offsets = [0, 96], sizes = [8, 32], strides = [1, 1]} : vector<8x192xf32> to vector<8x32xf32>
    %c0_88 = arith.constant 0 : index
    %c0_89 = arith.constant 0 : index
    %239 = vector.load %arg23[%c0_88, %c0_89] : memref<1x32xf32, #tpu.memory_space<vmem>>, vector<1x32xf32>
    %240 = arith.mulf %238, %238 : vector<8x32xf32>
    %cst_90 = arith.constant dense<0.000000e+00> : vector<8xf32>
    %241 = vector.multi_reduction <add>, %240, %cst_90 [1] : vector<8x32xf32> to vector<8xf32>
    %242 = vector.shape_cast %241 : vector<8xf32> to vector<8x1xf32>
    %cst_91 = arith.constant 3.200000e+01 : f32
    %243 = vector.broadcast %cst_91 : f32 to vector<8x1xf32>
    %244 = arith.divf %242, %243 : vector<8x1xf32>
    %cst_92 = arith.constant 9.99999997E-7 : f32
    %245 = vector.broadcast %cst_92 : f32 to vector<8x1xf32>
    %246 = arith.addf %244, %245 : vector<8x1xf32>
    %247 = math.rsqrt %246 : vector<8x1xf32>
    %248 = vector.broadcast %247 : vector<8x1xf32> to vector<8x32xf32>
    %249 = arith.mulf %238, %248 : vector<8x32xf32>
    %250 = vector.broadcast %239 : vector<1x32xf32> to vector<8x32xf32>
    %251 = arith.mulf %249, %250 : vector<8x32xf32>
    %252 = vector.extract_strided_slice %105 {offsets = [0, 160], sizes = [8, 32], strides = [1, 1]} : vector<8x192xf32> to vector<8x32xf32>
    %253 = tpu.concatenate %237, %208 in 0 : vector<8x32xf32>, vector<16x32xf32> -> vector<24x32xf32>
    %254 = tpu.concatenate %251, %222 in 0 : vector<8x32xf32>, vector<16x32xf32> -> vector<24x32xf32>
    %255 = tpu.concatenate %252, %223 in 0 : vector<8x32xf32>, vector<16x32xf32> -> vector<24x32xf32>
    %256 = arith.mulf %7, %253 : vector<24x32xf32>
    %257 = arith.truncf %253 : vector<24x32xf32> to vector<24x32xbf16>
    %cst_93 = arith.constant dense<0.000000e+00> : vector<24x32xf32>
    %258 = tpu.matmul %257, %17, %cst_93 {dimension_numbers = #tpu.dot_dimension_numbers<[1], [0], [0], [1], [0, 0, 1, 1], [], []>} : vector<24x32xbf16>, vector<32x32xbf16>, vector<24x32xf32> -> vector<24x32xf32>
    %259 = arith.mulf %9, %258 : vector<24x32xf32>
    %260 = arith.addf %256, %259 : vector<24x32xf32>
    %261 = arith.mulf %7, %254 : vector<24x32xf32>
    %262 = arith.truncf %254 : vector<24x32xf32> to vector<24x32xbf16>
    %cst_94 = arith.constant dense<0.000000e+00> : vector<24x32xf32>
    %263 = tpu.matmul %262, %17, %cst_94 {dimension_numbers = #tpu.dot_dimension_numbers<[1], [0], [0], [1], [0, 0, 1, 1], [], []>} : vector<24x32xbf16>, vector<32x32xbf16>, vector<24x32xf32> -> vector<24x32xf32>
    %264 = arith.mulf %9, %263 : vector<24x32xf32>
    %265 = arith.addf %261, %264 : vector<24x32xf32>
    %266 = arith.truncf %260 : vector<24x32xf32> to vector<24x32xbf16>
    %267 = arith.truncf %265 : vector<24x32xf32> to vector<24x32xbf16>
    %cst_95 = arith.constant dense<0.000000e+00> : vector<24x24xf32>
    %268 = tpu.matmul %266, %267, %cst_95 {dimension_numbers = #tpu.dot_dimension_numbers<[1], [1], [0], [0], [0, 0, 1, 0], [], []>} : vector<24x32xbf16>, vector<24x32xbf16>, vector<24x24xf32> -> vector<24x24xf32>
    %cst_96 = arith.constant 0.176776692 : f32
    %269 = vector.broadcast %cst_96 : f32 to vector<24x24xf32>
    %270 = arith.mulf %268, %269 : vector<24x24xf32>
    %cst_97 = arith.constant dense<0xFF800000> : vector<24xf32>
    %271 = vector.multi_reduction <maximumf>, %270, %cst_97 [1] : vector<24x24xf32> to vector<24xf32>
    %272 = vector.shape_cast %271 : vector<24xf32> to vector<24x1xf32>
    %273 = vector.broadcast %272 : vector<24x1xf32> to vector<24x24xf32>
    %274 = arith.subf %270, %273 : vector<24x24xf32>
    %275 = math.exp %274 : vector<24x24xf32>
    %cst_98 = arith.constant dense<0.000000e+00> : vector<24xf32>
    %276 = vector.multi_reduction <add>, %275, %cst_98 [1] : vector<24x24xf32> to vector<24xf32>
    %277 = vector.shape_cast %276 : vector<24xf32> to vector<24x1xf32>
    %278 = tpu.reciprocal %277 {approx = true} : vector<24x1xf32> -> vector<24x1xf32>
    %279 = vector.broadcast %278 : vector<24x1xf32> to vector<24x24xf32>
    %280 = arith.mulf %275, %279 : vector<24x24xf32>
    %281 = arith.truncf %280 : vector<24x24xf32> to vector<24x24xbf16>
    %282 = arith.truncf %255 : vector<24x32xf32> to vector<24x32xbf16>
    %cst_99 = arith.constant dense<0.000000e+00> : vector<24x32xf32>
    %283 = tpu.matmul %281, %282, %cst_99 {dimension_numbers = #tpu.dot_dimension_numbers<[1], [0], [0], [1], [0, 0, 1, 1], [], []>} : vector<24x24xbf16>, vector<24x32xbf16>, vector<24x32xf32> -> vector<24x32xf32>
    %284 = tpu.concatenate %194, %283 in 1 : vector<24x32xf32>, vector<24x32xf32> -> vector<24x64xf32>
    %285 = vector.extract_strided_slice %284 {offsets = [0, 0], sizes = [8, 64], strides = [1, 1]} : vector<24x64xf32> to vector<8x64xf32>
    %286 = vector.extract_strided_slice %284 {offsets = [8, 0], sizes = [16, 64], strides = [1, 1]} : vector<24x64xf32> to vector<16x64xf32>
    %c0_100 = arith.constant 0 : index
    %c0_101 = arith.constant 0 : index
    %287 = vector.load %arg12[%c0_100, %c0_101] : memref<64x64xbf16, #tpu.memory_space<vmem>>, vector<64x64xbf16>
    %288 = arith.truncf %286 : vector<16x64xf32> to vector<16x64xbf16>
    %cst_102 = arith.constant dense<0.000000e+00> : vector<16x64xf32>
    %289 = tpu.matmul %288, %287, %cst_102 {dimension_numbers = #tpu.dot_dimension_numbers<[1], [0], [0], [1], [0, 0, 1, 1], [], []>} : vector<16x64xbf16>, vector<64x64xbf16>, vector<16x64xf32> -> vector<16x64xf32>
    %c0_103 = arith.constant 0 : index
    %c0_104 = arith.constant 0 : index
    %290 = vector.load %arg13[%c0_103, %c0_104] : memref<1x64xf32, #tpu.memory_space<vmem>>, vector<1x64xf32>
    %291 = vector.broadcast %290 : vector<1x64xf32> to vector<16x64xf32>
    %292 = arith.addf %289, %291 : vector<16x64xf32>
    %293 = vector.broadcast %36 : vector<1x64xf32> to vector<16x64xf32>
    %294 = arith.mulf %293, %292 : vector<16x64xf32>
    %295 = arith.addf %1, %294 : vector<16x64xf32>
    %cst_105 = arith.constant 1.000000e+00 : f32
    %296 = vector.broadcast %cst_105 : f32 to vector<1x64xf32>
    %297 = arith.addf %296, %38 : vector<1x64xf32>
    %cst_106 = arith.constant dense<0.000000e+00> : vector<16xf32>
    %298 = vector.multi_reduction <add>, %295, %cst_106 [1] : vector<16x64xf32> to vector<16xf32>
    %299 = vector.shape_cast %298 : vector<16xf32> to vector<16x1xf32>
    %cst_107 = arith.constant 6.400000e+01 : f32
    %300 = vector.broadcast %cst_107 : f32 to vector<16x1xf32>
    %301 = arith.divf %299, %300 : vector<16x1xf32>
    %302 = vector.broadcast %301 : vector<16x1xf32> to vector<16x64xf32>
    %303 = arith.subf %295, %302 : vector<16x64xf32>
    %304 = arith.mulf %303, %303 : vector<16x64xf32>
    %cst_108 = arith.constant dense<0.000000e+00> : vector<16xf32>
    %305 = vector.multi_reduction <add>, %304, %cst_108 [1] : vector<16x64xf32> to vector<16xf32>
    %306 = vector.shape_cast %305 : vector<16xf32> to vector<16x1xf32>
    %cst_109 = arith.constant 6.400000e+01 : f32
    %307 = vector.broadcast %cst_109 : f32 to vector<16x1xf32>
    %308 = arith.divf %306, %307 : vector<16x1xf32>
    %309 = vector.broadcast %301 : vector<16x1xf32> to vector<16x64xf32>
    %310 = arith.subf %295, %309 : vector<16x64xf32>
    %cst_110 = arith.constant 9.99999997E-7 : f32
    %311 = vector.broadcast %cst_110 : f32 to vector<16x1xf32>
    %312 = arith.addf %308, %311 : vector<16x1xf32>
    %313 = math.rsqrt %312 : vector<16x1xf32>
    %314 = vector.broadcast %313 : vector<16x1xf32> to vector<16x64xf32>
    %315 = arith.mulf %310, %314 : vector<16x64xf32>
    %316 = vector.broadcast %297 : vector<1x64xf32> to vector<16x64xf32>
    %317 = arith.mulf %316, %315 : vector<16x64xf32>
    %318 = vector.broadcast %37 : vector<1x64xf32> to vector<16x64xf32>
    %319 = arith.addf %317, %318 : vector<16x64xf32>
    %c0_111 = arith.constant 0 : index
    %c0_112 = arith.constant 0 : index
    %320 = vector.load %arg14[%c0_111, %c0_112] : memref<64x256xbf16, #tpu.memory_space<vmem>>, vector<64x256xbf16>
    %321 = arith.truncf %319 : vector<16x64xf32> to vector<16x64xbf16>
    %cst_113 = arith.constant dense<0.000000e+00> : vector<16x256xf32>
    %322 = tpu.matmul %321, %320, %cst_113 {dimension_numbers = #tpu.dot_dimension_numbers<[1], [0], [0], [1], [0, 0, 1, 1], [], []>} : vector<16x64xbf16>, vector<64x256xbf16>, vector<16x256xf32> -> vector<16x256xf32>
    %c0_114 = arith.constant 0 : index
    %c0_115 = arith.constant 0 : index
    %323 = vector.load %arg15[%c0_114, %c0_115] : memref<1x256xf32, #tpu.memory_space<vmem>>, vector<1x256xf32>
    %324 = vector.broadcast %323 : vector<1x256xf32> to vector<16x256xf32>
    %325 = arith.addf %322, %324 : vector<16x256xf32>
    %cst_116 = arith.constant 5.000000e-01 : f32
    %326 = vector.broadcast %cst_116 : f32 to vector<16x256xf32>
    %327 = arith.mulf %326, %325 : vector<16x256xf32>
    %cst_117 = arith.constant 4.471500e-02 : f32
    %328 = vector.broadcast %cst_117 : f32 to vector<16x256xf32>
    %329 = arith.mulf %328, %325 : vector<16x256xf32>
    %330 = arith.mulf %329, %325 : vector<16x256xf32>
    %331 = arith.mulf %330, %325 : vector<16x256xf32>
    %332 = arith.addf %325, %331 : vector<16x256xf32>
    %cst_118 = arith.constant 0.797884583 : f32
    %333 = vector.broadcast %cst_118 : f32 to vector<16x256xf32>
    %334 = arith.mulf %333, %332 : vector<16x256xf32>
    %335 = math.tanh %334 : vector<16x256xf32>
    %cst_119 = arith.constant 1.000000e+00 : f32
    %336 = vector.broadcast %cst_119 : f32 to vector<16x256xf32>
    %337 = arith.addf %336, %335 : vector<16x256xf32>
    %338 = arith.mulf %327, %337 : vector<16x256xf32>
    %c0_120 = arith.constant 0 : index
    %c0_121 = arith.constant 0 : index
    %339 = vector.load %arg16[%c0_120, %c0_121] : memref<256x64xbf16, #tpu.memory_space<vmem>>, vector<256x64xbf16>
    %340 = arith.truncf %338 : vector<16x256xf32> to vector<16x256xbf16>
    %cst_122 = arith.constant dense<0.000000e+00> : vector<16x64xf32>
    %341 = tpu.matmul %340, %339, %cst_122 {dimension_numbers = #tpu.dot_dimension_numbers<[1], [0], [0], [1], [0, 0, 1, 1], [], []>} : vector<16x256xbf16>, vector<256x64xbf16>, vector<16x64xf32> -> vector<16x64xf32>
    %c0_123 = arith.constant 0 : index
    %c0_124 = arith.constant 0 : index
    %342 = vector.load %arg17[%c0_123, %c0_124] : memref<1x64xf32, #tpu.memory_space<vmem>>, vector<1x64xf32>
    %343 = vector.broadcast %342 : vector<1x64xf32> to vector<16x64xf32>
    %344 = arith.addf %341, %343 : vector<16x64xf32>
    %345 = vector.broadcast %39 : vector<1x64xf32> to vector<16x64xf32>
    %346 = arith.mulf %345, %344 : vector<16x64xf32>
    %347 = arith.addf %295, %346 : vector<16x64xf32>
    %c0_125 = arith.constant 0 : index
    %c0_126 = arith.constant 0 : index
    %348 = vector.load %arg24[%c0_125, %c0_126] : memref<64x64xbf16, #tpu.memory_space<vmem>>, vector<64x64xbf16>
    %349 = arith.truncf %285 : vector<8x64xf32> to vector<8x64xbf16>
    %cst_127 = arith.constant dense<0.000000e+00> : vector<8x64xf32>
    %350 = tpu.matmul %349, %348, %cst_127 {dimension_numbers = #tpu.dot_dimension_numbers<[1], [0], [0], [1], [0, 0, 1, 1], [], []>} : vector<8x64xbf16>, vector<64x64xbf16>, vector<8x64xf32> -> vector<8x64xf32>
    %c0_128 = arith.constant 0 : index
    %c0_129 = arith.constant 0 : index
    %351 = vector.load %arg25[%c0_128, %c0_129] : memref<1x64xf32, #tpu.memory_space<vmem>>, vector<1x64xf32>
    %352 = vector.broadcast %351 : vector<1x64xf32> to vector<8x64xf32>
    %353 = arith.addf %350, %352 : vector<8x64xf32>
    %354 = vector.broadcast %42 : vector<1x64xf32> to vector<8x64xf32>
    %355 = arith.mulf %354, %353 : vector<8x64xf32>
    %356 = arith.addf %3, %355 : vector<8x64xf32>
    %cst_130 = arith.constant 1.000000e+00 : f32
    %357 = vector.broadcast %cst_130 : f32 to vector<1x64xf32>
    %358 = arith.addf %357, %44 : vector<1x64xf32>
    %cst_131 = arith.constant dense<0.000000e+00> : vector<8xf32>
    %359 = vector.multi_reduction <add>, %356, %cst_131 [1] : vector<8x64xf32> to vector<8xf32>
    %360 = vector.shape_cast %359 : vector<8xf32> to vector<8x1xf32>
    %cst_132 = arith.constant 6.400000e+01 : f32
    %361 = vector.broadcast %cst_132 : f32 to vector<8x1xf32>
    %362 = arith.divf %360, %361 : vector<8x1xf32>
    %363 = vector.broadcast %362 : vector<8x1xf32> to vector<8x64xf32>
    %364 = arith.subf %356, %363 : vector<8x64xf32>
    %365 = arith.mulf %364, %364 : vector<8x64xf32>
    %cst_133 = arith.constant dense<0.000000e+00> : vector<8xf32>
    %366 = vector.multi_reduction <add>, %365, %cst_133 [1] : vector<8x64xf32> to vector<8xf32>
    %367 = vector.shape_cast %366 : vector<8xf32> to vector<8x1xf32>
    %cst_134 = arith.constant 6.400000e+01 : f32
    %368 = vector.broadcast %cst_134 : f32 to vector<8x1xf32>
    %369 = arith.divf %367, %368 : vector<8x1xf32>
    %370 = vector.broadcast %362 : vector<8x1xf32> to vector<8x64xf32>
    %371 = arith.subf %356, %370 : vector<8x64xf32>
    %cst_135 = arith.constant 9.99999997E-7 : f32
    %372 = vector.broadcast %cst_135 : f32 to vector<8x1xf32>
    %373 = arith.addf %369, %372 : vector<8x1xf32>
    %374 = math.rsqrt %373 : vector<8x1xf32>
    %375 = vector.broadcast %374 : vector<8x1xf32> to vector<8x64xf32>
    %376 = arith.mulf %371, %375 : vector<8x64xf32>
    %377 = vector.broadcast %358 : vector<1x64xf32> to vector<8x64xf32>
    %378 = arith.mulf %377, %376 : vector<8x64xf32>
    %379 = vector.broadcast %43 : vector<1x64xf32> to vector<8x64xf32>
    %380 = arith.addf %378, %379 : vector<8x64xf32>
    %c0_136 = arith.constant 0 : index
    %c0_137 = arith.constant 0 : index
    %381 = vector.load %arg26[%c0_136, %c0_137] : memref<64x256xbf16, #tpu.memory_space<vmem>>, vector<64x256xbf16>
    %382 = arith.truncf %380 : vector<8x64xf32> to vector<8x64xbf16>
    %cst_138 = arith.constant dense<0.000000e+00> : vector<8x256xf32>
    %383 = tpu.matmul %382, %381, %cst_138 {dimension_numbers = #tpu.dot_dimension_numbers<[1], [0], [0], [1], [0, 0, 1, 1], [], []>} : vector<8x64xbf16>, vector<64x256xbf16>, vector<8x256xf32> -> vector<8x256xf32>
    %c0_139 = arith.constant 0 : index
    %c0_140 = arith.constant 0 : index
    %384 = vector.load %arg27[%c0_139, %c0_140] : memref<1x256xf32, #tpu.memory_space<vmem>>, vector<1x256xf32>
    %385 = vector.broadcast %384 : vector<1x256xf32> to vector<8x256xf32>
    %386 = arith.addf %383, %385 : vector<8x256xf32>
    %cst_141 = arith.constant 5.000000e-01 : f32
    %387 = vector.broadcast %cst_141 : f32 to vector<8x256xf32>
    %388 = arith.mulf %387, %386 : vector<8x256xf32>
    %cst_142 = arith.constant 4.471500e-02 : f32
    %389 = vector.broadcast %cst_142 : f32 to vector<8x256xf32>
    %390 = arith.mulf %389, %386 : vector<8x256xf32>
    %391 = arith.mulf %390, %386 : vector<8x256xf32>
    %392 = arith.mulf %391, %386 : vector<8x256xf32>
    %393 = arith.addf %386, %392 : vector<8x256xf32>
    %cst_143 = arith.constant 0.797884583 : f32
    %394 = vector.broadcast %cst_143 : f32 to vector<8x256xf32>
    %395 = arith.mulf %394, %393 : vector<8x256xf32>
    %396 = math.tanh %395 : vector<8x256xf32>
    %cst_144 = arith.constant 1.000000e+00 : f32
    %397 = vector.broadcast %cst_144 : f32 to vector<8x256xf32>
    %398 = arith.addf %397, %396 : vector<8x256xf32>
    %399 = arith.mulf %388, %398 : vector<8x256xf32>
    %c0_145 = arith.constant 0 : index
    %c0_146 = arith.constant 0 : index
    %400 = vector.load %arg28[%c0_145, %c0_146] : memref<256x64xbf16, #tpu.memory_space<vmem>>, vector<256x64xbf16>
    %401 = arith.truncf %399 : vector<8x256xf32> to vector<8x256xbf16>
    %cst_147 = arith.constant dense<0.000000e+00> : vector<8x64xf32>
    %402 = tpu.matmul %401, %400, %cst_147 {dimension_numbers = #tpu.dot_dimension_numbers<[1], [0], [0], [1], [0, 0, 1, 1], [], []>} : vector<8x256xbf16>, vector<256x64xbf16>, vector<8x64xf32> -> vector<8x64xf32>
    %c0_148 = arith.constant 0 : index
    %c0_149 = arith.constant 0 : index
    %403 = vector.load %arg29[%c0_148, %c0_149] : memref<1x64xf32, #tpu.memory_space<vmem>>, vector<1x64xf32>
    %404 = vector.broadcast %403 : vector<1x64xf32> to vector<8x64xf32>
    %405 = arith.addf %402, %404 : vector<8x64xf32>
    %406 = vector.broadcast %45 : vector<1x64xf32> to vector<8x64xf32>
    %407 = arith.mulf %406, %405 : vector<8x64xf32>
    %408 = arith.addf %356, %407 : vector<8x64xf32>
    %c0_150 = arith.constant 0 : index
    %c0_151 = arith.constant 0 : index
    %c0_152 = arith.constant 0 : index
    %409 = vector.load %arg30[%c0_150, %c0_151, %c0_152] : memref<1x16x64xf32, #tpu.memory_space<vmem>>, vector<1x16x64xf32>
    %410 = vector.shape_cast %409 : vector<1x16x64xf32> to vector<16x64xf32>
    %411 = vector.shape_cast %347 : vector<16x64xf32> to vector<1x16x64xf32>
    tpu.vector_store %arg30[%c0_150, %c0_151, %c0_152], %411 {strides = array<i32>} : memref<1x16x64xf32, #tpu.memory_space<vmem>>, vector<1x16x64xf32>,
    %c0_153 = arith.constant 0 : index
    %c0_154 = arith.constant 0 : index
    %c0_155 = arith.constant 0 : index
    %412 = vector.load %arg31[%c0_153, %c0_154, %c0_155] : memref<1x8x64xf32, #tpu.memory_space<vmem>>, vector<1x8x64xf32>
    %413 = vector.shape_cast %412 : vector<1x8x64xf32> to vector<8x64xf32>
    %414 = vector.shape_cast %408 : vector<8x64xf32> to vector<1x8x64xf32>
    tpu.vector_store %arg31[%c0_153, %c0_154, %c0_155], %414 {strides = array<i32>} : memref<1x8x64xf32, #tpu.memory_space<vmem>>, vector<1x8x64xf32>,
    return
  }
  func.func @transform_0(%arg0: i32) -> (i32, i32, i32) {
    %c0_i32 = arith.constant 0 : i32
    %c0_i32_0 = arith.constant 0 : i32
    %c0_i32_1 = arith.constant 0 : i32
    return %arg0, %c0_i32, %c0_i32_0 : i32, i32, i32
  }
  func.func @transform_1(%arg0: i32) -> (i32, i32, i32) {
    %c0_i32 = arith.constant 0 : i32
    %c0_i32_0 = arith.constant 0 : i32
    %c0_i32_1 = arith.constant 0 : i32
    return %arg0, %c0_i32, %c0_i32_0 : i32, i32, i32
  }
  func.func @transform_2(%arg0: i32) -> (i32, i32, i32) {
    %c0_i32 = arith.constant 0 : i32
    %c0_i32_0 = arith.constant 0 : i32
    %c0_i32_1 = arith.constant 0 : i32
    return %arg0, %c0_i32, %c0_i32_0 : i32, i32, i32
  }
  func.func @transform_3(%arg0: i32) -> (i32, i32, i32) {
    %c0_i32 = arith.constant 0 : i32
    %c0_i32_0 = arith.constant 0 : i32
    %c0_i32_1 = arith.constant 0 : i32
    return %arg0, %c0_i32, %c0_i32_0 : i32, i32, i32
  }
  func.func @transform_4(%arg0: i32) -> (i32, i32, i32) {
    %c0_i32 = arith.constant 0 : i32
    %c0_i32_0 = arith.constant 0 : i32
    %c0_i32_1 = arith.constant 0 : i32
    return %arg0, %c0_i32, %c0_i32_0 : i32, i32, i32
  }
  func.func @transform_5(%arg0: i32) -> (i32, i32) {
    %c0_i32 = arith.constant 0 : i32
    %c0_i32_0 = arith.constant 0 : i32
    %c0_i32_1 = arith.constant 0 : i32
    return %c0_i32, %c0_i32_0 : i32, i32
  }
  func.func @transform_6(%arg0: i32) -> (i32, i32) {
    %c0_i32 = arith.constant 0 : i32
    %c0_i32_0 = arith.constant 0 : i32
    %c0_i32_1 = arith.constant 0 : i32
    return %c0_i32, %c0_i32_0 : i32, i32
  }
  func.func @transform_7(%arg0: i32) -> (i32, i32) {
    %c0_i32 = arith.constant 0 : i32
    %c0_i32_0 = arith.constant 0 : i32
    %c0_i32_1 = arith.constant 0 : i32
    return %c0_i32, %c0_i32_0 : i32, i32
  }
  func.func @transform_8(%arg0: i32) -> (i32, i32) {
    %c0_i32 = arith.constant 0 : i32
    %c0_i32_0 = arith.constant 0 : i32
    %c0_i32_1 = arith.constant 0 : i32
    return %c0_i32, %c0_i32_0 : i32, i32
  }
  func.func @transform_9(%arg0: i32) -> (i32, i32) {
    %c0_i32 = arith.constant 0 : i32
    %c0_i32_0 = arith.constant 0 : i32
    %c0_i32_1 = arith.constant 0 : i32
    return %c0_i32, %c0_i32_0 : i32, i32
  }
  func.func @transform_10(%arg0: i32) -> (i32, i32) {
    %c0_i32 = arith.constant 0 : i32
    %c0_i32_0 = arith.constant 0 : i32
    %c0_i32_1 = arith.constant 0 : i32
    return %c0_i32, %c0_i32_0 : i32, i32
  }
  func.func @transform_11(%arg0: i32) -> (i32, i32) {
    %c0_i32 = arith.constant 0 : i32
    %c0_i32_0 = arith.constant 0 : i32
    %c0_i32_1 = arith.constant 0 : i32
    return %c0_i32, %c0_i32_0 : i32, i32
  }
  func.func @transform_12(%arg0: i32) -> (i32, i32) {
    %c0_i32 = arith.constant 0 : i32
    %c0_i32_0 = arith.constant 0 : i32
    %c0_i32_1 = arith.constant 0 : i32
    return %c0_i32, %c0_i32_0 : i32, i32
  }
  func.func @transform_13(%arg0: i32) -> (i32, i32) {
    %c0_i32 = arith.constant 0 : i32
    %c0_i32_0 = arith.constant 0 : i32
    %c0_i32_1 = arith.constant 0 : i32
    return %c0_i32, %c0_i32_0 : i32, i32
  }
  func.func @transform_14(%arg0: i32) -> (i32, i32) {
    %c0_i32 = arith.constant 0 : i32
    %c0_i32_0 = arith.constant 0 : i32
    %c0_i32_1 = arith.constant 0 : i32
    return %c0_i32, %c0_i32_0 : i32, i32
  }
  func.func @transform_15(%arg0: i32) -> (i32, i32) {
    %c0_i32 = arith.constant 0 : i32
    %c0_i32_0 = arith.constant 0 : i32
    %c0_i32_1 = arith.constant 0 : i32
    return %c0_i32, %c0_i32_0 : i32, i32
  }
  func.func @transform_16(%arg0: i32) -> (i32, i32) {
    %c0_i32 = arith.constant 0 : i32
    %c0_i32_0 = arith.constant 0 : i32
    %c0_i32_1 = arith.constant 0 : i32
    return %c0_i32, %c0_i32_0 : i32, i32
  }
  func.func @transform_17(%arg0: i32) -> (i32, i32) {
    %c0_i32 = arith.constant 0 : i32
    %c0_i32_0 = arith.constant 0 : i32
    %c0_i32_1 = arith.constant 0 : i32
    return %c0_i32, %c0_i32_0 : i32, i32
  }
  func.func @transform_18(%arg0: i32) -> (i32, i32) {
    %c0_i32 = arith.constant 0 : i32
    %c0_i32_0 = arith.constant 0 : i32
    %c0_i32_1 = arith.constant 0 : i32
    return %c0_i32, %c0_i32_0 : i32, i32
  }
  func.func @transform_19(%arg0: i32) -> (i32, i32) {
    %c0_i32 = arith.constant 0 : i32
    %c0_i32_0 = arith.constant 0 : i32
    %c0_i32_1 = arith.constant 0 : i32
    return %c0_i32, %c0_i32_0 : i32, i32
  }
  func.func @transform_20(%arg0: i32) -> (i32, i32) {
    %c0_i32 = arith.constant 0 : i32
    %c0_i32_0 = arith.constant 0 : i32
    %c0_i32_1 = arith.constant 0 : i32
    return %c0_i32, %c0_i32_0 : i32, i32
  }
  func.func @transform_21(%arg0: i32) -> (i32, i32) {
    %c0_i32 = arith.constant 0 : i32
    %c0_i32_0 = arith.constant 0 : i32
    %c0_i32_1 = arith.constant 0 : i32
    return %c0_i32, %c0_i32_0 : i32, i32
  }
  func.func @transform_22(%arg0: i32) -> (i32, i32) {
    %c0_i32 = arith.constant 0 : i32
    %c0_i32_0 = arith.constant 0 : i32
    %c0_i32_1 = arith.constant 0 : i32
    return %c0_i32, %c0_i32_0 : i32, i32
  }
  func.func @transform_23(%arg0: i32) -> (i32, i32) {
    %c0_i32 = arith.constant 0 : i32
    %c0_i32_0 = arith.constant 0 : i32
    %c0_i32_1 = arith.constant 0 : i32
    return %c0_i32, %c0_i32_0 : i32, i32
  }
  func.func @transform_24(%arg0: i32) -> (i32, i32) {
    %c0_i32 = arith.constant 0 : i32
    %c0_i32_0 = arith.constant 0 : i32
    %c0_i32_1 = arith.constant 0 : i32
    return %c0_i32, %c0_i32_0 : i32, i32
  }
  func.func @transform_25(%arg0: i32) -> (i32, i32) {
    %c0_i32 = arith.constant 0 : i32
    %c0_i32_0 = arith.constant 0 : i32
    %c0_i32_1 = arith.constant 0 : i32
    return %c0_i32, %c0_i32_0 : i32, i32
  }
  func.func @transform_26(%arg0: i32) -> (i32, i32) {
    %c0_i32 = arith.constant 0 : i32
    %c0_i32_0 = arith.constant 0 : i32
    %c0_i32_1 = arith.constant 0 : i32
    return %c0_i32, %c0_i32_0 : i32, i32
  }
  func.func @transform_27(%arg0: i32) -> (i32, i32) {
    %c0_i32 = arith.constant 0 : i32
    %c0_i32_0 = arith.constant 0 : i32
    %c0_i32_1 = arith.constant 0 : i32
    return %c0_i32, %c0_i32_0 : i32, i32
  }
  func.func @transform_28(%arg0: i32) -> (i32, i32) {
    %c0_i32 = arith.constant 0 : i32
    %c0_i32_0 = arith.constant 0 : i32
    %c0_i32_1 = arith.constant 0 : i32
    return %c0_i32, %c0_i32_0 : i32, i32
  }
  func.func @transform_29(%arg0: i32) -> (i32, i32, i32) {
    %c0_i32 = arith.constant 0 : i32
    %c0_i32_0 = arith.constant 0 : i32
    %c0_i32_1 = arith.constant 0 : i32
    return %arg0, %c0_i32, %c0_i32_0 : i32, i32, i32
  }
  func.func @transform_30(%arg0: i32) -> (i32, i32, i32) {
    %c0_i32 = arith.constant 0 : i32
    %c0_i32_0 = arith.constant 0 : i32
    %c0_i32_1 = arith.constant 0 : i32
    return %arg0, %c0_i32, %c0_i32_0 : i32, i32, i32
  }
}

module attributes {stable_mosaic.version = 11 : i64} {
  func.func @_final_kernel(%arg0: i32, %arg1: memref<1x16x64xf32, #tpu.memory_space<vmem>>, %arg2: memref<1x1x64xf32, #tpu.memory_space<vmem>>, %arg3: memref<64x128xbf16, #tpu.memory_space<vmem>>, %arg4: memref<1x128xf32, #tpu.memory_space<vmem>>, %arg5: memref<64x16xbf16, #tpu.memory_space<vmem>>, %arg6: memref<1x16xf32, #tpu.memory_space<vmem>>, %arg7: memref<1x16x16xf32, #tpu.memory_space<vmem>>) attributes {dimension_semantics = [#tpu.dimension_semantics<parallel>], iteration_bounds = array<i64: 2>, scalar_prefetch = 0 : i64, scratch_operands = 0 : i64, tpu.core_type = #tpu.core_type<tc>, window_params = [{transform_indices = @transform_0, window_bounds = array<i64: 1, 16, 64>}, {transform_indices = @transform_1, window_bounds = array<i64: 1, 1, 64>}, {pipeline_mode = #tpu.pipeline_mode<synchronous>, transform_indices = @transform_2, window_bounds = array<i64: 64, 128>}, {pipeline_mode = #tpu.pipeline_mode<synchronous>, transform_indices = @transform_3, window_bounds = array<i64: 1, 128>}, {pipeline_mode = #tpu.pipeline_mode<synchronous>, transform_indices = @transform_4, window_bounds = array<i64: 64, 16>}, {pipeline_mode = #tpu.pipeline_mode<synchronous>, transform_indices = @transform_5, window_bounds = array<i64: 1, 16>}, {transform_indices = @transform_6, window_bounds = array<i64: 1, 16, 16>}]} {
    %c0 = arith.constant 0 : index
    %c0_0 = arith.constant 0 : index
    %c0_1 = arith.constant 0 : index
    %0 = vector.load %arg2[%c0, %c0_0, %c0_1] : memref<1x1x64xf32, #tpu.memory_space<vmem>>, vector<1x1x64xf32>
    %1 = vector.shape_cast %0 : vector<1x1x64xf32> to vector<1x64xf32>
    %2 = arith.negf %1 : vector<1x64xf32>
    %3 = math.exp %2 : vector<1x64xf32>
    %cst = arith.constant 1.000000e+00 : f32
    %4 = vector.broadcast %cst : f32 to vector<1x64xf32>
    %5 = arith.addf %4, %3 : vector<1x64xf32>
    %6 = arith.divf %4, %5 : vector<1x64xf32>
    %7 = arith.mulf %1, %6 : vector<1x64xf32>
    %c0_2 = arith.constant 0 : index
    %c0_3 = arith.constant 0 : index
    %8 = vector.load %arg3[%c0_2, %c0_3] : memref<64x128xbf16, #tpu.memory_space<vmem>>, vector<64x128xbf16>
    %9 = arith.truncf %7 : vector<1x64xf32> to vector<1x64xbf16>
    %cst_4 = arith.constant dense<0.000000e+00> : vector<1x128xf32>
    %10 = tpu.matmul %9, %8, %cst_4 {dimension_numbers = #tpu.dot_dimension_numbers<[1], [0], [0], [1], [0, 0, 1, 1], [], []>} : vector<1x64xbf16>, vector<64x128xbf16>, vector<1x128xf32> -> vector<1x128xf32>
    %c0_5 = arith.constant 0 : index
    %c0_6 = arith.constant 0 : index
    %11 = vector.load %arg4[%c0_5, %c0_6] : memref<1x128xf32, #tpu.memory_space<vmem>>, vector<1x128xf32>
    %12 = arith.addf %10, %11 : vector<1x128xf32>
    %13 = vector.extract_strided_slice %12 {offsets = [0, 0], sizes = [1, 64], strides = [1, 1]} : vector<1x128xf32> to vector<1x64xf32>
    %14 = vector.extract_strided_slice %12 {offsets = [0, 64], sizes = [1, 64], strides = [1, 1]} : vector<1x128xf32> to vector<1x64xf32>
    %cst_7 = arith.constant 1.000000e+00 : f32
    %15 = vector.broadcast %cst_7 : f32 to vector<1x64xf32>
    %16 = arith.addf %15, %14 : vector<1x64xf32>
    %c0_8 = arith.constant 0 : index
    %c0_9 = arith.constant 0 : index
    %c0_10 = arith.constant 0 : index
    %17 = vector.load %arg1[%c0_8, %c0_9, %c0_10] : memref<1x16x64xf32, #tpu.memory_space<vmem>>, vector<1x16x64xf32>
    %18 = vector.shape_cast %17 : vector<1x16x64xf32> to vector<16x64xf32>
    %cst_11 = arith.constant dense<0.000000e+00> : vector<16xf32>
    %19 = vector.multi_reduction <add>, %18, %cst_11 [1] : vector<16x64xf32> to vector<16xf32>
    %20 = vector.shape_cast %19 : vector<16xf32> to vector<16x1xf32>
    %cst_12 = arith.constant 6.400000e+01 : f32
    %21 = vector.broadcast %cst_12 : f32 to vector<16x1xf32>
    %22 = arith.divf %20, %21 : vector<16x1xf32>
    %23 = vector.broadcast %22 : vector<16x1xf32> to vector<16x64xf32>
    %24 = arith.subf %18, %23 : vector<16x64xf32>
    %25 = arith.mulf %24, %24 : vector<16x64xf32>
    %cst_13 = arith.constant dense<0.000000e+00> : vector<16xf32>
    %26 = vector.multi_reduction <add>, %25, %cst_13 [1] : vector<16x64xf32> to vector<16xf32>
    %27 = vector.shape_cast %26 : vector<16xf32> to vector<16x1xf32>
    %cst_14 = arith.constant 6.400000e+01 : f32
    %28 = vector.broadcast %cst_14 : f32 to vector<16x1xf32>
    %29 = arith.divf %27, %28 : vector<16x1xf32>
    %30 = vector.broadcast %22 : vector<16x1xf32> to vector<16x64xf32>
    %31 = arith.subf %18, %30 : vector<16x64xf32>
    %cst_15 = arith.constant 9.99999997E-7 : f32
    %32 = vector.broadcast %cst_15 : f32 to vector<16x1xf32>
    %33 = arith.addf %29, %32 : vector<16x1xf32>
    %34 = math.rsqrt %33 : vector<16x1xf32>
    %35 = vector.broadcast %34 : vector<16x1xf32> to vector<16x64xf32>
    %36 = arith.mulf %31, %35 : vector<16x64xf32>
    %37 = vector.broadcast %16 : vector<1x64xf32> to vector<16x64xf32>
    %38 = arith.mulf %37, %36 : vector<16x64xf32>
    %39 = vector.broadcast %13 : vector<1x64xf32> to vector<16x64xf32>
    %40 = arith.addf %38, %39 : vector<16x64xf32>
    %c0_16 = arith.constant 0 : index
    %c0_17 = arith.constant 0 : index
    %41 = vector.load %arg5[%c0_16, %c0_17] : memref<64x16xbf16, #tpu.memory_space<vmem>>, vector<64x16xbf16>
    %42 = arith.truncf %40 : vector<16x64xf32> to vector<16x64xbf16>
    %cst_18 = arith.constant dense<0.000000e+00> : vector<16x16xf32>
    %43 = tpu.matmul %42, %41, %cst_18 {dimension_numbers = #tpu.dot_dimension_numbers<[1], [0], [0], [1], [0, 0, 1, 1], [], []>} : vector<16x64xbf16>, vector<64x16xbf16>, vector<16x16xf32> -> vector<16x16xf32>
    %c0_19 = arith.constant 0 : index
    %c0_20 = arith.constant 0 : index
    %44 = vector.load %arg6[%c0_19, %c0_20] : memref<1x16xf32, #tpu.memory_space<vmem>>, vector<1x16xf32>
    %45 = vector.broadcast %44 : vector<1x16xf32> to vector<16x16xf32>
    %46 = arith.addf %43, %45 : vector<16x16xf32>
    %c0_21 = arith.constant 0 : index
    %c0_22 = arith.constant 0 : index
    %c0_23 = arith.constant 0 : index
    %47 = vector.load %arg7[%c0_21, %c0_22, %c0_23] : memref<1x16x16xf32, #tpu.memory_space<vmem>>, vector<1x16x16xf32>
    %48 = vector.shape_cast %47 : vector<1x16x16xf32> to vector<16x16xf32>
    %49 = vector.shape_cast %46 : vector<16x16xf32> to vector<1x16x16xf32>
    tpu.vector_store %arg7[%c0_21, %c0_22, %c0_23], %49 {strides = array<i32>} : memref<1x16x16xf32, #tpu.memory_space<vmem>>, vector<1x16x16xf32>,
    return
  }
  func.func @transform_0(%arg0: i32) -> (i32, i32, i32) {
    %c0_i32 = arith.constant 0 : i32
    %c0_i32_0 = arith.constant 0 : i32
    %c0_i32_1 = arith.constant 0 : i32
    return %arg0, %c0_i32, %c0_i32_0 : i32, i32, i32
  }
  func.func @transform_1(%arg0: i32) -> (i32, i32, i32) {
    %c0_i32 = arith.constant 0 : i32
    %c0_i32_0 = arith.constant 0 : i32
    %c0_i32_1 = arith.constant 0 : i32
    return %arg0, %c0_i32, %c0_i32_0 : i32, i32, i32
  }
  func.func @transform_2(%arg0: i32) -> (i32, i32) {
    %c0_i32 = arith.constant 0 : i32
    %c0_i32_0 = arith.constant 0 : i32
    %c0_i32_1 = arith.constant 0 : i32
    return %c0_i32, %c0_i32_0 : i32, i32
  }
  func.func @transform_3(%arg0: i32) -> (i32, i32) {
    %c0_i32 = arith.constant 0 : i32
    %c0_i32_0 = arith.constant 0 : i32
    %c0_i32_1 = arith.constant 0 : i32
    return %c0_i32, %c0_i32_0 : i32, i32
  }
  func.func @transform_4(%arg0: i32) -> (i32, i32) {
    %c0_i32 = arith.constant 0 : i32
    %c0_i32_0 = arith.constant 0 : i32
    %c0_i32_1 = arith.constant 0 : i32
    return %c0_i32, %c0_i32_0 : i32, i32
  }
  func.func @transform_5(%arg0: i32) -> (i32, i32) {
    %c0_i32 = arith.constant 0 : i32
    %c0_i32_0 = arith.constant 0 : i32
    %c0_i32_1 = arith.constant 0 : i32
    return %c0_i32, %c0_i32_0 : i32, i32
  }
  func.func @transform_6(%arg0: i32) -> (i32, i32, i32) {
    %c0_i32 = arith.constant 0 : i32
    %c0_i32_0 = arith.constant 0 : i32
    %c0_i32_1 = arith.constant 0 : i32
    return %arg0, %c0_i32, %c0_i32_0 : i32, i32, i32
  }
}

module attributes {stable_mosaic.version = 11 : i64} {
  func.func @_single_block_kernel(%arg0: i32, %arg1: memref<1x24x64xf32, #tpu.memory_space<vmem>>, %arg2: memref<1x1x64xf32, #tpu.memory_space<vmem>>, %arg3: memref<1x24x32xf32, #tpu.memory_space<vmem>>, %arg4: memref<1x24x32xf32, #tpu.memory_space<vmem>>, %arg5: memref<64x192xbf16, #tpu.memory_space<vmem>>, %arg6: memref<1x192xf32, #tpu.memory_space<vmem>>, %arg7: memref<64x192xbf16, #tpu.memory_space<vmem>>, %arg8: memref<1x192xf32, #tpu.memory_space<vmem>>, %arg9: memref<64x256xbf16, #tpu.memory_space<vmem>>, %arg10: memref<1x256xf32, #tpu.memory_space<vmem>>, %arg11: memref<1x32xf32, #tpu.memory_space<vmem>>, %arg12: memref<1x32xf32, #tpu.memory_space<vmem>>, %arg13: memref<64x64xbf16, #tpu.memory_space<vmem>>, %arg14: memref<256x64xbf16, #tpu.memory_space<vmem>>, %arg15: memref<1x64xf32, #tpu.memory_space<vmem>>, %arg16: memref<1x24x64xf32, #tpu.memory_space<vmem>>) attributes {dimension_semantics = [#tpu.dimension_semantics<parallel>], iteration_bounds = array<i64: 2>, scalar_prefetch = 0 : i64, scratch_operands = 0 : i64, tpu.core_type = #tpu.core_type<tc>, window_params = [{transform_indices = @transform_0, window_bounds = array<i64: 1, 24, 64>}, {transform_indices = @transform_1, window_bounds = array<i64: 1, 1, 64>}, {transform_indices = @transform_2, window_bounds = array<i64: 1, 24, 32>}, {transform_indices = @transform_3, window_bounds = array<i64: 1, 24, 32>}, {pipeline_mode = #tpu.pipeline_mode<synchronous>, transform_indices = @transform_4, window_bounds = array<i64: 64, 192>}, {pipeline_mode = #tpu.pipeline_mode<synchronous>, transform_indices = @transform_5, window_bounds = array<i64: 1, 192>}, {pipeline_mode = #tpu.pipeline_mode<synchronous>, transform_indices = @transform_6, window_bounds = array<i64: 64, 192>}, {pipeline_mode = #tpu.pipeline_mode<synchronous>, transform_indices = @transform_7, window_bounds = array<i64: 1, 192>}, {pipeline_mode = #tpu.pipeline_mode<synchronous>, transform_indices = @transform_8, window_bounds = array<i64: 64, 256>}, {pipeline_mode = #tpu.pipeline_mode<synchronous>, transform_indices = @transform_9, window_bounds = array<i64: 1, 256>}, {pipeline_mode = #tpu.pipeline_mode<synchronous>, transform_indices = @transform_10, window_bounds = array<i64: 1, 32>}, {pipeline_mode = #tpu.pipeline_mode<synchronous>, transform_indices = @transform_11, window_bounds = array<i64: 1, 32>}, {pipeline_mode = #tpu.pipeline_mode<synchronous>, transform_indices = @transform_12, window_bounds = array<i64: 64, 64>}, {pipeline_mode = #tpu.pipeline_mode<synchronous>, transform_indices = @transform_13, window_bounds = array<i64: 256, 64>}, {pipeline_mode = #tpu.pipeline_mode<synchronous>, transform_indices = @transform_14, window_bounds = array<i64: 1, 64>}, {transform_indices = @transform_15, window_bounds = array<i64: 1, 24, 64>}]} {
    %c0 = arith.constant 0 : index
    %c0_0 = arith.constant 0 : index
    %c0_1 = arith.constant 0 : index
    %0 = vector.load %arg1[%c0, %c0_0, %c0_1] : memref<1x24x64xf32, #tpu.memory_space<vmem>>, vector<1x24x64xf32>
    %1 = vector.shape_cast %0 : vector<1x24x64xf32> to vector<24x64xf32>
    %c0_2 = arith.constant 0 : index
    %c0_3 = arith.constant 0 : index
    %c0_4 = arith.constant 0 : index
    %2 = vector.load %arg2[%c0_2, %c0_3, %c0_4] : memref<1x1x64xf32, #tpu.memory_space<vmem>>, vector<1x1x64xf32>
    %3 = vector.shape_cast %2 : vector<1x1x64xf32> to vector<1x64xf32>
    %c0_5 = arith.constant 0 : index
    %c0_6 = arith.constant 0 : index
    %c0_7 = arith.constant 0 : index
    %4 = vector.load %arg3[%c0_5, %c0_6, %c0_7] : memref<1x24x32xf32, #tpu.memory_space<vmem>>, vector<1x24x32xf32>
    %5 = vector.shape_cast %4 : vector<1x24x32xf32> to vector<24x32xf32>
    %c0_8 = arith.constant 0 : index
    %c0_9 = arith.constant 0 : index
    %c0_10 = arith.constant 0 : index
    %6 = vector.load %arg4[%c0_8, %c0_9, %c0_10] : memref<1x24x32xf32, #tpu.memory_space<vmem>>, vector<1x24x32xf32>
    %7 = vector.shape_cast %6 : vector<1x24x32xf32> to vector<24x32xf32>
    %8 = tpu.iota {dimensions = array<i32: 0>} : vector<32x32xi32>
    %9 = tpu.iota {dimensions = array<i32: 1>} : vector<32x32xi32>
    %c1_i32 = arith.constant 1 : i32
    %10 = vector.broadcast %c1_i32 : i32 to vector<32x32xi32>
    %11 = arith.xori %8, %10 : vector<32x32xi32>
    %12 = arith.cmpi eq, %11, %9 : vector<32x32xi32>
    %13 = arith.extui %12 : vector<32x32xi1> to vector<32x32xi32>
    %14 = arith.sitofp %13 : vector<32x32xi32> to vector<32x32xf32>
    %15 = arith.truncf %14 : vector<32x32xf32> to vector<32x32xbf16>
    %16 = arith.negf %3 : vector<1x64xf32>
    %17 = math.exp %16 : vector<1x64xf32>
    %cst = arith.constant 1.000000e+00 : f32
    %18 = vector.broadcast %cst : f32 to vector<1x64xf32>
    %19 = arith.addf %18, %17 : vector<1x64xf32>
    %20 = arith.divf %18, %19 : vector<1x64xf32>
    %21 = arith.mulf %3, %20 : vector<1x64xf32>
    %c0_11 = arith.constant 0 : index
    %c0_12 = arith.constant 0 : index
    %22 = vector.load %arg5[%c0_11, %c0_12] : memref<64x192xbf16, #tpu.memory_space<vmem>>, vector<64x192xbf16>
    %23 = arith.truncf %21 : vector<1x64xf32> to vector<1x64xbf16>
    %cst_13 = arith.constant dense<0.000000e+00> : vector<1x192xf32>
    %24 = tpu.matmul %23, %22, %cst_13 {dimension_numbers = #tpu.dot_dimension_numbers<[1], [0], [0], [1], [0, 0, 1, 1], [], []>} : vector<1x64xbf16>, vector<64x192xbf16>, vector<1x192xf32> -> vector<1x192xf32>
    %c0_14 = arith.constant 0 : index
    %c0_15 = arith.constant 0 : index
    %25 = vector.load %arg6[%c0_14, %c0_15] : memref<1x192xf32, #tpu.memory_space<vmem>>, vector<1x192xf32>
    %26 = arith.addf %24, %25 : vector<1x192xf32>
    %27 = vector.extract_strided_slice %26 {offsets = [0, 0], sizes = [1, 64], strides = [1, 1]} : vector<1x192xf32> to vector<1x64xf32>
    %28 = vector.extract_strided_slice %26 {offsets = [0, 64], sizes = [1, 64], strides = [1, 1]} : vector<1x192xf32> to vector<1x64xf32>
    %29 = vector.extract_strided_slice %26 {offsets = [0, 128], sizes = [1, 64], strides = [1, 1]} : vector<1x192xf32> to vector<1x64xf32>
    %cst_16 = arith.constant 1.000000e+00 : f32
    %30 = vector.broadcast %cst_16 : f32 to vector<1x64xf32>
    %31 = arith.addf %30, %28 : vector<1x64xf32>
    %cst_17 = arith.constant dense<0.000000e+00> : vector<24xf32>
    %32 = vector.multi_reduction <add>, %1, %cst_17 [1] : vector<24x64xf32> to vector<24xf32>
    %33 = vector.shape_cast %32 : vector<24xf32> to vector<24x1xf32>
    %cst_18 = arith.constant 6.400000e+01 : f32
    %34 = vector.broadcast %cst_18 : f32 to vector<24x1xf32>
    %35 = arith.divf %33, %34 : vector<24x1xf32>
    %36 = vector.broadcast %35 : vector<24x1xf32> to vector<24x64xf32>
    %37 = arith.subf %1, %36 : vector<24x64xf32>
    %38 = arith.mulf %37, %37 : vector<24x64xf32>
    %cst_19 = arith.constant dense<0.000000e+00> : vector<24xf32>
    %39 = vector.multi_reduction <add>, %38, %cst_19 [1] : vector<24x64xf32> to vector<24xf32>
    %40 = vector.shape_cast %39 : vector<24xf32> to vector<24x1xf32>
    %cst_20 = arith.constant 6.400000e+01 : f32
    %41 = vector.broadcast %cst_20 : f32 to vector<24x1xf32>
    %42 = arith.divf %40, %41 : vector<24x1xf32>
    %43 = vector.broadcast %35 : vector<24x1xf32> to vector<24x64xf32>
    %44 = arith.subf %1, %43 : vector<24x64xf32>
    %cst_21 = arith.constant 9.99999997E-7 : f32
    %45 = vector.broadcast %cst_21 : f32 to vector<24x1xf32>
    %46 = arith.addf %42, %45 : vector<24x1xf32>
    %47 = math.rsqrt %46 : vector<24x1xf32>
    %48 = vector.broadcast %47 : vector<24x1xf32> to vector<24x64xf32>
    %49 = arith.mulf %44, %48 : vector<24x64xf32>
    %50 = vector.broadcast %31 : vector<1x64xf32> to vector<24x64xf32>
    %51 = arith.mulf %50, %49 : vector<24x64xf32>
    %52 = vector.broadcast %27 : vector<1x64xf32> to vector<24x64xf32>
    %53 = arith.addf %51, %52 : vector<24x64xf32>
    %c0_22 = arith.constant 0 : index
    %c0_23 = arith.constant 0 : index
    %54 = vector.load %arg7[%c0_22, %c0_23] : memref<64x192xbf16, #tpu.memory_space<vmem>>, vector<64x192xbf16>
    %55 = arith.truncf %53 : vector<24x64xf32> to vector<24x64xbf16>
    %cst_24 = arith.constant dense<0.000000e+00> : vector<24x192xf32>
    %56 = tpu.matmul %55, %54, %cst_24 {dimension_numbers = #tpu.dot_dimension_numbers<[1], [0], [0], [1], [0, 0, 1, 1], [], []>} : vector<24x64xbf16>, vector<64x192xbf16>, vector<24x192xf32> -> vector<24x192xf32>
    %c0_25 = arith.constant 0 : index
    %c0_26 = arith.constant 0 : index
    %57 = vector.load %arg8[%c0_25, %c0_26] : memref<1x192xf32, #tpu.memory_space<vmem>>, vector<1x192xf32>
    %58 = vector.broadcast %57 : vector<1x192xf32> to vector<24x192xf32>
    %59 = arith.addf %56, %58 : vector<24x192xf32>
    %c0_27 = arith.constant 0 : index
    %c0_28 = arith.constant 0 : index
    %60 = vector.load %arg9[%c0_27, %c0_28] : memref<64x256xbf16, #tpu.memory_space<vmem>>, vector<64x256xbf16>
    %61 = arith.truncf %53 : vector<24x64xf32> to vector<24x64xbf16>
    %cst_29 = arith.constant dense<0.000000e+00> : vector<24x256xf32>
    %62 = tpu.matmul %61, %60, %cst_29 {dimension_numbers = #tpu.dot_dimension_numbers<[1], [0], [0], [1], [0, 0, 1, 1], [], []>} : vector<24x64xbf16>, vector<64x256xbf16>, vector<24x256xf32> -> vector<24x256xf32>
    %c0_30 = arith.constant 0 : index
    %c0_31 = arith.constant 0 : index
    %63 = vector.load %arg10[%c0_30, %c0_31] : memref<1x256xf32, #tpu.memory_space<vmem>>, vector<1x256xf32>
    %64 = vector.broadcast %63 : vector<1x256xf32> to vector<24x256xf32>
    %65 = arith.addf %62, %64 : vector<24x256xf32>
    %66 = vector.extract_strided_slice %59 {offsets = [0, 0], sizes = [24, 32], strides = [1, 1]} : vector<24x192xf32> to vector<24x32xf32>
    %c0_32 = arith.constant 0 : index
    %c0_33 = arith.constant 0 : index
    %67 = vector.load %arg11[%c0_32, %c0_33] : memref<1x32xf32, #tpu.memory_space<vmem>>, vector<1x32xf32>
    %68 = arith.mulf %66, %66 : vector<24x32xf32>
    %cst_34 = arith.constant dense<0.000000e+00> : vector<24xf32>
    %69 = vector.multi_reduction <add>, %68, %cst_34 [1] : vector<24x32xf32> to vector<24xf32>
    %70 = vector.shape_cast %69 : vector<24xf32> to vector<24x1xf32>
    %cst_35 = arith.constant 3.200000e+01 : f32
    %71 = vector.broadcast %cst_35 : f32 to vector<24x1xf32>
    %72 = arith.divf %70, %71 : vector<24x1xf32>
    %cst_36 = arith.constant 9.99999997E-7 : f32
    %73 = vector.broadcast %cst_36 : f32 to vector<24x1xf32>
    %74 = arith.addf %72, %73 : vector<24x1xf32>
    %75 = math.rsqrt %74 : vector<24x1xf32>
    %76 = vector.broadcast %75 : vector<24x1xf32> to vector<24x32xf32>
    %77 = arith.mulf %66, %76 : vector<24x32xf32>
    %78 = vector.broadcast %67 : vector<1x32xf32> to vector<24x32xf32>
    %79 = arith.mulf %77, %78 : vector<24x32xf32>
    %80 = vector.extract_strided_slice %59 {offsets = [0, 64], sizes = [24, 32], strides = [1, 1]} : vector<24x192xf32> to vector<24x32xf32>
    %c0_37 = arith.constant 0 : index
    %c0_38 = arith.constant 0 : index
    %81 = vector.load %arg12[%c0_37, %c0_38] : memref<1x32xf32, #tpu.memory_space<vmem>>, vector<1x32xf32>
    %82 = arith.mulf %80, %80 : vector<24x32xf32>
    %cst_39 = arith.constant dense<0.000000e+00> : vector<24xf32>
    %83 = vector.multi_reduction <add>, %82, %cst_39 [1] : vector<24x32xf32> to vector<24xf32>
    %84 = vector.shape_cast %83 : vector<24xf32> to vector<24x1xf32>
    %cst_40 = arith.constant 3.200000e+01 : f32
    %85 = vector.broadcast %cst_40 : f32 to vector<24x1xf32>
    %86 = arith.divf %84, %85 : vector<24x1xf32>
    %cst_41 = arith.constant 9.99999997E-7 : f32
    %87 = vector.broadcast %cst_41 : f32 to vector<24x1xf32>
    %88 = arith.addf %86, %87 : vector<24x1xf32>
    %89 = math.rsqrt %88 : vector<24x1xf32>
    %90 = vector.broadcast %89 : vector<24x1xf32> to vector<24x32xf32>
    %91 = arith.mulf %80, %90 : vector<24x32xf32>
    %92 = vector.broadcast %81 : vector<1x32xf32> to vector<24x32xf32>
    %93 = arith.mulf %91, %92 : vector<24x32xf32>
    %94 = vector.extract_strided_slice %59 {offsets = [0, 128], sizes = [24, 32], strides = [1, 1]} : vector<24x192xf32> to vector<24x32xf32>
    %95 = arith.mulf %5, %79 : vector<24x32xf32>
    %96 = arith.truncf %79 : vector<24x32xf32> to vector<24x32xbf16>
    %cst_42 = arith.constant dense<0.000000e+00> : vector<24x32xf32>
    %97 = tpu.matmul %96, %15, %cst_42 {dimension_numbers = #tpu.dot_dimension_numbers<[1], [0], [0], [1], [0, 0, 1, 1], [], []>} : vector<24x32xbf16>, vector<32x32xbf16>, vector<24x32xf32> -> vector<24x32xf32>
    %98 = arith.mulf %7, %97 : vector<24x32xf32>
    %99 = arith.addf %95, %98 : vector<24x32xf32>
    %100 = arith.mulf %5, %93 : vector<24x32xf32>
    %101 = arith.truncf %93 : vector<24x32xf32> to vector<24x32xbf16>
    %cst_43 = arith.constant dense<0.000000e+00> : vector<24x32xf32>
    %102 = tpu.matmul %101, %15, %cst_43 {dimension_numbers = #tpu.dot_dimension_numbers<[1], [0], [0], [1], [0, 0, 1, 1], [], []>} : vector<24x32xbf16>, vector<32x32xbf16>, vector<24x32xf32> -> vector<24x32xf32>
    %103 = arith.mulf %7, %102 : vector<24x32xf32>
    %104 = arith.addf %100, %103 : vector<24x32xf32>
    %105 = arith.truncf %99 : vector<24x32xf32> to vector<24x32xbf16>
    %106 = arith.truncf %104 : vector<24x32xf32> to vector<24x32xbf16>
    %cst_44 = arith.constant dense<0.000000e+00> : vector<24x24xf32>
    %107 = tpu.matmul %105, %106, %cst_44 {dimension_numbers = #tpu.dot_dimension_numbers<[1], [1], [0], [0], [0, 0, 1, 0], [], []>} : vector<24x32xbf16>, vector<24x32xbf16>, vector<24x24xf32> -> vector<24x24xf32>
    %cst_45 = arith.constant 0.176776692 : f32
    %108 = vector.broadcast %cst_45 : f32 to vector<24x24xf32>
    %109 = arith.mulf %107, %108 : vector<24x24xf32>
    %cst_46 = arith.constant dense<0xFF800000> : vector<24xf32>
    %110 = vector.multi_reduction <maximumf>, %109, %cst_46 [1] : vector<24x24xf32> to vector<24xf32>
    %111 = vector.shape_cast %110 : vector<24xf32> to vector<24x1xf32>
    %112 = vector.broadcast %111 : vector<24x1xf32> to vector<24x24xf32>
    %113 = arith.subf %109, %112 : vector<24x24xf32>
    %114 = math.exp %113 : vector<24x24xf32>
    %cst_47 = arith.constant dense<0.000000e+00> : vector<24xf32>
    %115 = vector.multi_reduction <add>, %114, %cst_47 [1] : vector<24x24xf32> to vector<24xf32>
    %116 = vector.shape_cast %115 : vector<24xf32> to vector<24x1xf32>
    %117 = tpu.reciprocal %116 {approx = true} : vector<24x1xf32> -> vector<24x1xf32>
    %118 = vector.broadcast %117 : vector<24x1xf32> to vector<24x24xf32>
    %119 = arith.mulf %114, %118 : vector<24x24xf32>
    %120 = arith.truncf %119 : vector<24x24xf32> to vector<24x24xbf16>
    %121 = arith.truncf %94 : vector<24x32xf32> to vector<24x32xbf16>
    %cst_48 = arith.constant dense<0.000000e+00> : vector<24x32xf32>
    %122 = tpu.matmul %120, %121, %cst_48 {dimension_numbers = #tpu.dot_dimension_numbers<[1], [0], [0], [1], [0, 0, 1, 1], [], []>} : vector<24x24xbf16>, vector<24x32xbf16>, vector<24x32xf32> -> vector<24x32xf32>
    %123 = vector.extract_strided_slice %59 {offsets = [0, 32], sizes = [24, 32], strides = [1, 1]} : vector<24x192xf32> to vector<24x32xf32>
    %c0_49 = arith.constant 0 : index
    %c0_50 = arith.constant 0 : index
    %124 = vector.load %arg11[%c0_49, %c0_50] : memref<1x32xf32, #tpu.memory_space<vmem>>, vector<1x32xf32>
    %125 = arith.mulf %123, %123 : vector<24x32xf32>
    %cst_51 = arith.constant dense<0.000000e+00> : vector<24xf32>
    %126 = vector.multi_reduction <add>, %125, %cst_51 [1] : vector<24x32xf32> to vector<24xf32>
    %127 = vector.shape_cast %126 : vector<24xf32> to vector<24x1xf32>
    %cst_52 = arith.constant 3.200000e+01 : f32
    %128 = vector.broadcast %cst_52 : f32 to vector<24x1xf32>
    %129 = arith.divf %127, %128 : vector<24x1xf32>
    %cst_53 = arith.constant 9.99999997E-7 : f32
    %130 = vector.broadcast %cst_53 : f32 to vector<24x1xf32>
    %131 = arith.addf %129, %130 : vector<24x1xf32>
    %132 = math.rsqrt %131 : vector<24x1xf32>
    %133 = vector.broadcast %132 : vector<24x1xf32> to vector<24x32xf32>
    %134 = arith.mulf %123, %133 : vector<24x32xf32>
    %135 = vector.broadcast %124 : vector<1x32xf32> to vector<24x32xf32>
    %136 = arith.mulf %134, %135 : vector<24x32xf32>
    %137 = vector.extract_strided_slice %59 {offsets = [0, 96], sizes = [24, 32], strides = [1, 1]} : vector<24x192xf32> to vector<24x32xf32>
    %c0_54 = arith.constant 0 : index
    %c0_55 = arith.constant 0 : index
    %138 = vector.load %arg12[%c0_54, %c0_55] : memref<1x32xf32, #tpu.memory_space<vmem>>, vector<1x32xf32>
    %139 = arith.mulf %137, %137 : vector<24x32xf32>
    %cst_56 = arith.constant dense<0.000000e+00> : vector<24xf32>
    %140 = vector.multi_reduction <add>, %139, %cst_56 [1] : vector<24x32xf32> to vector<24xf32>
    %141 = vector.shape_cast %140 : vector<24xf32> to vector<24x1xf32>
    %cst_57 = arith.constant 3.200000e+01 : f32
    %142 = vector.broadcast %cst_57 : f32 to vector<24x1xf32>
    %143 = arith.divf %141, %142 : vector<24x1xf32>
    %cst_58 = arith.constant 9.99999997E-7 : f32
    %144 = vector.broadcast %cst_58 : f32 to vector<24x1xf32>
    %145 = arith.addf %143, %144 : vector<24x1xf32>
    %146 = math.rsqrt %145 : vector<24x1xf32>
    %147 = vector.broadcast %146 : vector<24x1xf32> to vector<24x32xf32>
    %148 = arith.mulf %137, %147 : vector<24x32xf32>
    %149 = vector.broadcast %138 : vector<1x32xf32> to vector<24x32xf32>
    %150 = arith.mulf %148, %149 : vector<24x32xf32>
    %151 = vector.extract_strided_slice %59 {offsets = [0, 160], sizes = [24, 32], strides = [1, 1]} : vector<24x192xf32> to vector<24x32xf32>
    %152 = arith.mulf %5, %136 : vector<24x32xf32>
    %153 = arith.truncf %136 : vector<24x32xf32> to vector<24x32xbf16>
    %cst_59 = arith.constant dense<0.000000e+00> : vector<24x32xf32>
    %154 = tpu.matmul %153, %15, %cst_59 {dimension_numbers = #tpu.dot_dimension_numbers<[1], [0], [0], [1], [0, 0, 1, 1], [], []>} : vector<24x32xbf16>, vector<32x32xbf16>, vector<24x32xf32> -> vector<24x32xf32>
    %155 = arith.mulf %7, %154 : vector<24x32xf32>
    %156 = arith.addf %152, %155 : vector<24x32xf32>
    %157 = arith.mulf %5, %150 : vector<24x32xf32>
    %158 = arith.truncf %150 : vector<24x32xf32> to vector<24x32xbf16>
    %cst_60 = arith.constant dense<0.000000e+00> : vector<24x32xf32>
    %159 = tpu.matmul %158, %15, %cst_60 {dimension_numbers = #tpu.dot_dimension_numbers<[1], [0], [0], [1], [0, 0, 1, 1], [], []>} : vector<24x32xbf16>, vector<32x32xbf16>, vector<24x32xf32> -> vector<24x32xf32>
    %160 = arith.mulf %7, %159 : vector<24x32xf32>
    %161 = arith.addf %157, %160 : vector<24x32xf32>
    %162 = arith.truncf %156 : vector<24x32xf32> to vector<24x32xbf16>
    %163 = arith.truncf %161 : vector<24x32xf32> to vector<24x32xbf16>
    %cst_61 = arith.constant dense<0.000000e+00> : vector<24x24xf32>
    %164 = tpu.matmul %162, %163, %cst_61 {dimension_numbers = #tpu.dot_dimension_numbers<[1], [1], [0], [0], [0, 0, 1, 0], [], []>} : vector<24x32xbf16>, vector<24x32xbf16>, vector<24x24xf32> -> vector<24x24xf32>
    %cst_62 = arith.constant 0.176776692 : f32
    %165 = vector.broadcast %cst_62 : f32 to vector<24x24xf32>
    %166 = arith.mulf %164, %165 : vector<24x24xf32>
    %cst_63 = arith.constant dense<0xFF800000> : vector<24xf32>
    %167 = vector.multi_reduction <maximumf>, %166, %cst_63 [1] : vector<24x24xf32> to vector<24xf32>
    %168 = vector.shape_cast %167 : vector<24xf32> to vector<24x1xf32>
    %169 = vector.broadcast %168 : vector<24x1xf32> to vector<24x24xf32>
    %170 = arith.subf %166, %169 : vector<24x24xf32>
    %171 = math.exp %170 : vector<24x24xf32>
    %cst_64 = arith.constant dense<0.000000e+00> : vector<24xf32>
    %172 = vector.multi_reduction <add>, %171, %cst_64 [1] : vector<24x24xf32> to vector<24xf32>
    %173 = vector.shape_cast %172 : vector<24xf32> to vector<24x1xf32>
    %174 = tpu.reciprocal %173 {approx = true} : vector<24x1xf32> -> vector<24x1xf32>
    %175 = vector.broadcast %174 : vector<24x1xf32> to vector<24x24xf32>
    %176 = arith.mulf %171, %175 : vector<24x24xf32>
    %177 = arith.truncf %176 : vector<24x24xf32> to vector<24x24xbf16>
    %178 = arith.truncf %151 : vector<24x32xf32> to vector<24x32xbf16>
    %cst_65 = arith.constant dense<0.000000e+00> : vector<24x32xf32>
    %179 = tpu.matmul %177, %178, %cst_65 {dimension_numbers = #tpu.dot_dimension_numbers<[1], [0], [0], [1], [0, 0, 1, 1], [], []>} : vector<24x24xbf16>, vector<24x32xbf16>, vector<24x32xf32> -> vector<24x32xf32>
    %180 = tpu.concatenate %122, %179 in 1 : vector<24x32xf32>, vector<24x32xf32> -> vector<24x64xf32>
    %c0_66 = arith.constant 0 : index
    %c0_67 = arith.constant 0 : index
    %181 = vector.load %arg13[%c0_66, %c0_67] : memref<64x64xbf16, #tpu.memory_space<vmem>>, vector<64x64xbf16>
    %182 = arith.truncf %180 : vector<24x64xf32> to vector<24x64xbf16>
    %cst_68 = arith.constant dense<0.000000e+00> : vector<24x64xf32>
    %183 = tpu.matmul %182, %181, %cst_68 {dimension_numbers = #tpu.dot_dimension_numbers<[1], [0], [0], [1], [0, 0, 1, 1], [], []>} : vector<24x64xbf16>, vector<64x64xbf16>, vector<24x64xf32> -> vector<24x64xf32>
    %cst_69 = arith.constant 5.000000e-01 : f32
    %184 = vector.broadcast %cst_69 : f32 to vector<24x256xf32>
    %185 = arith.mulf %184, %65 : vector<24x256xf32>
    %cst_70 = arith.constant 4.471500e-02 : f32
    %186 = vector.broadcast %cst_70 : f32 to vector<24x256xf32>
    %187 = arith.mulf %186, %65 : vector<24x256xf32>
    %188 = arith.mulf %187, %65 : vector<24x256xf32>
    %189 = arith.mulf %188, %65 : vector<24x256xf32>
    %190 = arith.addf %65, %189 : vector<24x256xf32>
    %cst_71 = arith.constant 0.797884583 : f32
    %191 = vector.broadcast %cst_71 : f32 to vector<24x256xf32>
    %192 = arith.mulf %191, %190 : vector<24x256xf32>
    %193 = math.tanh %192 : vector<24x256xf32>
    %cst_72 = arith.constant 1.000000e+00 : f32
    %194 = vector.broadcast %cst_72 : f32 to vector<24x256xf32>
    %195 = arith.addf %194, %193 : vector<24x256xf32>
    %196 = arith.mulf %185, %195 : vector<24x256xf32>
    %c0_73 = arith.constant 0 : index
    %c0_74 = arith.constant 0 : index
    %197 = vector.load %arg14[%c0_73, %c0_74] : memref<256x64xbf16, #tpu.memory_space<vmem>>, vector<256x64xbf16>
    %198 = arith.truncf %196 : vector<24x256xf32> to vector<24x256xbf16>
    %cst_75 = arith.constant dense<0.000000e+00> : vector<24x64xf32>
    %199 = tpu.matmul %198, %197, %cst_75 {dimension_numbers = #tpu.dot_dimension_numbers<[1], [0], [0], [1], [0, 0, 1, 1], [], []>} : vector<24x256xbf16>, vector<256x64xbf16>, vector<24x64xf32> -> vector<24x64xf32>
    %200 = arith.addf %183, %199 : vector<24x64xf32>
    %c0_76 = arith.constant 0 : index
    %c0_77 = arith.constant 0 : index
    %201 = vector.load %arg15[%c0_76, %c0_77] : memref<1x64xf32, #tpu.memory_space<vmem>>, vector<1x64xf32>
    %202 = vector.broadcast %201 : vector<1x64xf32> to vector<24x64xf32>
    %203 = arith.addf %200, %202 : vector<24x64xf32>
    %204 = vector.broadcast %29 : vector<1x64xf32> to vector<24x64xf32>
    %205 = arith.mulf %204, %203 : vector<24x64xf32>
    %206 = arith.addf %1, %205 : vector<24x64xf32>
    %c0_78 = arith.constant 0 : index
    %c0_79 = arith.constant 0 : index
    %c0_80 = arith.constant 0 : index
    %207 = vector.load %arg16[%c0_78, %c0_79, %c0_80] : memref<1x24x64xf32, #tpu.memory_space<vmem>>, vector<1x24x64xf32>
    %208 = vector.shape_cast %207 : vector<1x24x64xf32> to vector<24x64xf32>
    %209 = vector.shape_cast %206 : vector<24x64xf32> to vector<1x24x64xf32>
    tpu.vector_store %arg16[%c0_78, %c0_79, %c0_80], %209 {strides = array<i32>} : memref<1x24x64xf32, #tpu.memory_space<vmem>>, vector<1x24x64xf32>,
    return
  }
  func.func @transform_0(%arg0: i32) -> (i32, i32, i32) {
    %c0_i32 = arith.constant 0 : i32
    %c0_i32_0 = arith.constant 0 : i32
    %c0_i32_1 = arith.constant 0 : i32
    return %arg0, %c0_i32, %c0_i32_0 : i32, i32, i32
  }
  func.func @transform_1(%arg0: i32) -> (i32, i32, i32) {
    %c0_i32 = arith.constant 0 : i32
    %c0_i32_0 = arith.constant 0 : i32
    %c0_i32_1 = arith.constant 0 : i32
    return %arg0, %c0_i32, %c0_i32_0 : i32, i32, i32
  }
  func.func @transform_2(%arg0: i32) -> (i32, i32, i32) {
    %c0_i32 = arith.constant 0 : i32
    %c0_i32_0 = arith.constant 0 : i32
    %c0_i32_1 = arith.constant 0 : i32
    return %arg0, %c0_i32, %c0_i32_0 : i32, i32, i32
  }
  func.func @transform_3(%arg0: i32) -> (i32, i32, i32) {
    %c0_i32 = arith.constant 0 : i32
    %c0_i32_0 = arith.constant 0 : i32
    %c0_i32_1 = arith.constant 0 : i32
    return %arg0, %c0_i32, %c0_i32_0 : i32, i32, i32
  }
  func.func @transform_4(%arg0: i32) -> (i32, i32) {
    %c0_i32 = arith.constant 0 : i32
    %c0_i32_0 = arith.constant 0 : i32
    %c0_i32_1 = arith.constant 0 : i32
    return %c0_i32, %c0_i32_0 : i32, i32
  }
  func.func @transform_5(%arg0: i32) -> (i32, i32) {
    %c0_i32 = arith.constant 0 : i32
    %c0_i32_0 = arith.constant 0 : i32
    %c0_i32_1 = arith.constant 0 : i32
    return %c0_i32, %c0_i32_0 : i32, i32
  }
  func.func @transform_6(%arg0: i32) -> (i32, i32) {
    %c0_i32 = arith.constant 0 : i32
    %c0_i32_0 = arith.constant 0 : i32
    %c0_i32_1 = arith.constant 0 : i32
    return %c0_i32, %c0_i32_0 : i32, i32
  }
  func.func @transform_7(%arg0: i32) -> (i32, i32) {
    %c0_i32 = arith.constant 0 : i32
    %c0_i32_0 = arith.constant 0 : i32
    %c0_i32_1 = arith.constant 0 : i32
    return %c0_i32, %c0_i32_0 : i32, i32
  }
  func.func @transform_8(%arg0: i32) -> (i32, i32) {
    %c0_i32 = arith.constant 0 : i32
    %c0_i32_0 = arith.constant 0 : i32
    %c0_i32_1 = arith.constant 0 : i32
    return %c0_i32, %c0_i32_0 : i32, i32
  }
  func.func @transform_9(%arg0: i32) -> (i32, i32) {
    %c0_i32 = arith.constant 0 : i32
    %c0_i32_0 = arith.constant 0 : i32
    %c0_i32_1 = arith.constant 0 : i32
    return %c0_i32, %c0_i32_0 : i32, i32
  }
  func.func @transform_10(%arg0: i32) -> (i32, i32) {
    %c0_i32 = arith.constant 0 : i32
    %c0_i32_0 = arith.constant 0 : i32
    %c0_i32_1 = arith.constant 0 : i32
    return %c0_i32, %c0_i32_0 : i32, i32
  }
  func.func @transform_11(%arg0: i32) -> (i32, i32) {
    %c0_i32 = arith.constant 0 : i32
    %c0_i32_0 = arith.constant 0 : i32
    %c0_i32_1 = arith.constant 0 : i32
    return %c0_i32, %c0_i32_0 : i32, i32
  }
  func.func @transform_12(%arg0: i32) -> (i32, i32) {
    %c0_i32 = arith.constant 0 : i32
    %c0_i32_0 = arith.constant 0 : i32
    %c0_i32_1 = arith.constant 0 : i32
    return %c0_i32, %c0_i32_0 : i32, i32
  }
  func.func @transform_13(%arg0: i32) -> (i32, i32) {
    %c0_i32 = arith.constant 0 : i32
    %c0_i32_0 = arith.constant 0 : i32
    %c0_i32_1 = arith.constant 0 : i32
    return %c0_i32, %c0_i32_0 : i32, i32
  }
  func.func @transform_14(%arg0: i32) -> (i32, i32) {
    %c0_i32 = arith.constant 0 : i32
    %c0_i32_0 = arith.constant 0 : i32
    %c0_i32_1 = arith.constant 0 : i32
    return %c0_i32, %c0_i32_0 : i32, i32
  }
  func.func @transform_15(%arg0: i32) -> (i32, i32, i32) {
    %c0_i32 = arith.constant 0 : i32
    %c0_i32_0 = arith.constant 0 : i32
    %c0_i32_1 = arith.constant 0 : i32
    return %arg0, %c0_i32, %c0_i32_0 : i32, i32, i32
  }
}

</mosaic_0001>

<bundles_post_ra>
// kernel: tile.6
= control target key start
LH: loop header
LB: loop body
LE: loop exit
PB: predicated region body
PF: predicated region fallthrough
CT: control target
= control target key end

     0   :  { %s28_s0 = inlined_call_operand.vmem [shape: f32[2], index: 0, kind: input, shape index: {}]   ;;  %s29_s1 = inlined_call_operand.vmem [shape: f32[16,2], index: 1, kind: output, shape index: {}]  }
   0x1   :  { %v4_v0 = vld [vmem:[%s28_s0] ss:$0 sm:$0xff] }
   0x2   :  { %5 = vst [vmem:[%s29_s1] sm:$0xff] %v4_v0  ;;  %8 = vst [vmem:[%s29_s1 + $0x8] sm:$0xff] %v4_v0 }

// kernel: mul.73
= control target key start
LH: loop header
LB: loop body
LE: loop exit
PB: predicated region body
PF: predicated region fallthrough
CT: control target
= control target key end

     0   :  { %s131_s10 = smov 30   ;;  %s132_s11 = smov 26   ;;  %vm3_vm0 = vcmask 15360   ;;  %vm9_vm1 = vcmask 261360   ;;  %vm15_vm2 = vcmask 244960   ;;  %vm21_vm3 = vcmask 228560   ;;  %s207_s0 = inlined_call_operand.vmem [shape: f32[16,2], index: 0, kind: input, shape index: {}]   ;;  %s208_s1 = inlined_call_operand.vmem [shape: f32[32], index: 1, kind: output, shape index: {}]  }
   0x1   :  { %v101_v0 = vld [vmem:[%s207_s0 + $0xf] sm:$0x1]   ;;  %v103_v1 = vld [vmem:[%s207_s0 + $0xd] sm:$0x1]   ;;  %v102_v2 = vld [vmem:[%s207_s0 + $0xe] sm:$0x1]  }
   0x2   :  { %7 = vrot.lane.b32.xlu0 %v101_v0, %s131_s10  ;;  %19 = vrot.lane.b32.xlu1 %v103_v1, %s132_s11  ;;  %v104_v3 = vld [vmem:[%s207_s0 + $0xc] sm:$0x1]   ;;  %s133_s16 = smov 28   ;;  %s134_s17 = smov 24   ;;  %v105_v4 = vld [vmem:[%s207_s0 + $0xb] sm:$0x1]  }
   0x3   :  { %v106_v5 = vld [vmem:[%s207_s0 + $0xa] sm:$0x1]   ;;  %v2_v6 = vld [vmem:[%s207_s0] sm:$0x1]   ;;  %s135_s24 = smov 22   ;;  %s136_s25 = smov 20  }
   0x4   :  { %4 = vst.msk [vmem:[#allocation0] sm:$0x1] %vm3_vm0, %v2_v6   ;;  %v107_v7 = vld [vmem:[%s207_s0 + $0x9] sm:$0x1]   ;;  %v108_v8 = vld [vmem:[%s207_s0 + $0x8] sm:$0x1]  }
   0x5   :  { %s137_s30 = smov 18   ;;  %s138_s2 = smov 16   ;;  %v109_v9 = vld [vmem:[%s207_s0 + $0x7] sm:$0x1]   ;;  %v110_v10 = vld [vmem:[%s207_s0 + $0x6] sm:$0x1]  }
   0x6   :  { %13 = vrot.lane.b32.xlu0 %v102_v2, %s133_s16  ;;  %25 = vrot.lane.b32.xlu1 %v104_v3, %s134_s17  ;;  %s139_s7 = smov 14   ;;  %s140_s8 = smov 12   ;;  %v111_v11 = vld [vmem:[%s207_s0 + $0x5] sm:$0x1]   ;;  %v112_v12 = vld [vmem:[%s207_s0 + $0x4] sm:$0x1]  }
   0x7   :  { %s141_s13 = smov 10   ;;  %s142_s14 = smov 8   ;;  %v113_v13 = vld [vmem:[%s207_s0 + $0x3] sm:$0x1]   ;;  %v114_v14 = vld [vmem:[%s207_s0 + $0x2] sm:$0x1]  }
   0x8   :  { %s143_s19 = smov 6   ;;  %s144_s20 = smov 4   ;;  %v115_v15 = vld [vmem:[%s207_s0 + $0x1] sm:$0x1]   ;;  %vm27_vm4 = vcmask 212160   ;;  %vm33_vm5 = vcmask 195760  }
   0x9   :  { %s145_s0 = smov 2   ;;  %vm39_vm6 = vcmask 179360   ;;  %vm45_vm7 = vcmask 162960   ;;  %vm51_vm8 = vcmask 146560   ;;  %vm57_vm9 = vcmask 130160  }
   0xa   :  { %31 = vrot.lane.b32.xlu0 %v105_v4, %s135_s24  ;;  %37 = vrot.lane.b32.xlu1 %v106_v5, %s136_s25  ;;  %vm63_vm10 = vcmask 113760   ;;  %vm69_vm11 = vcmask 97360   ;;  %vm75_vm12 = vcmask 80960   ;;  %vm81_vm13 = vcmask 64560  }
   0xb   :  { %vm87_vm14 = vcmask 48160   ;;  %vm93_vm15 = vcmask 31760  }
   0xe   :  { %43 = vrot.lane.b32.xlu0 %v107_v7, %s137_s30  ;;  %49 = vrot.lane.b32.xlu1 %v108_v8, %s138_s2 }
  0x12   :  { %55 = vrot.lane.b32.xlu0 %v109_v9, %s139_s7  ;;  %61 = vrot.lane.b32.xlu1 %v110_v10, %s140_s8 }
  0x16   :  { %67 = vrot.lane.b32.xlu0 %v111_v11, %s141_s13  ;;  %73 = vrot.lane.b32.xlu1 %v112_v12, %s142_s14 }
  0x1a   :  { %79 = vrot.lane.b32.xlu0 %v113_v13, %s143_s19  ;;  %85 = vrot.lane.b32.xlu1 %v114_v14, %s144_s20 }
  0x1e   :  { %91 = vrot.lane.b32.xlu0 %v115_v15, %s145_s0 }
  0x74   :  { %v8_v16 = vpop.permute.xlu0 %7   ;;  %v20_v17 = vpop.permute.xlu1 %19  }
  0x75   :  { %10 = vst.msk [vmem:[#allocation0] sm:$0x1] %vm9_vm1, %v8_v16  }
  0x78   :  { %v14_v18 = vpop.permute.xlu0 %13   ;;  %v26_v19 = vpop.permute.xlu1 %25  }
  0x79   :  { %16 = vst.msk [vmem:[#allocation0] sm:$0x1] %vm15_vm2, %v14_v18  }
  0x7a   :  { %22 = vst.msk [vmem:[#allocation0] sm:$0x1] %vm21_vm3, %v20_v17  }
  0x7b   :  { %28 = vst.msk [vmem:[#allocation0] sm:$0x1] %vm27_vm4, %v26_v19  }
  0x7c   :  { %v32_v20 = vpop.permute.xlu0 %31   ;;  %v38_v21 = vpop.permute.xlu1 %37  }
  0x7d   :  { %34 = vst.msk [vmem:[#allocation0] sm:$0x1] %vm33_vm5, %v32_v20  }
  0x7e   :  { %40 = vst.msk [vmem:[#allocation0] sm:$0x1] %vm39_vm6, %v38_v21  }
  0x80   :  { %v44_v22 = vpop.permute.xlu0 %43   ;;  %v50_v23 = vpop.permute.xlu1 %49  }
  0x81   :  { %46 = vst.msk [vmem:[#allocation0] sm:$0x1] %vm45_vm7, %v44_v22  }
  0x82   :  { %52 = vst.msk [vmem:[#allocation0] sm:$0x1] %vm51_vm8, %v50_v23  }
  0x84   :  { %v56_v24 = vpop.permute.xlu0 %55   ;;  %v62_v25 = vpop.permute.xlu1 %61  }
  0x85   :  { %58 = vst.msk [vmem:[#allocation0] sm:$0x1] %vm57_vm9, %v56_v24  }
  0x86   :  { %64 = vst.msk [vmem:[#allocation0] sm:$0x1] %vm63_vm10, %v62_v25  }
  0x88   :  { %v68_v26 = vpop.permute.xlu0 %67   ;;  %v74_v27 = vpop.permute.xlu1 %73  }
  0x89   :  { %70 = vst.msk [vmem:[#allocation0] sm:$0x1] %vm69_vm11, %v68_v26  }
  0x8a   :  { %76 = vst.msk [vmem:[#allocation0] sm:$0x1] %vm75_vm12, %v74_v27  }
  0x8c   :  { %v80_v28 = vpop.permute.xlu0 %79   ;;  %v86_v29 = vpop.permute.xlu1 %85  }
  0x8d   :  { %82 = vst.msk [vmem:[#allocation0] sm:$0x1] %vm81_vm13, %v80_v28  }
  0x8e   :  { %88 = vst.msk [vmem:[#allocation0] sm:$0x1] %vm87_vm14, %v86_v29  }
  0x90   :  { %v92_v30 = vpop.permute.xlu0 %91  }
  0x91   :  { %94 = vst.msk [vmem:[#allocation0] sm:$0x1] %vm93_vm15, %v92_v30  }
  0x98   :  { %v98_v31 = vld [vmem:[#allocation0] sm:$0x1] }
  0x99   :  { %100 = vst [vmem:[%s208_s1] sm:$0x1] %v98_v31 }

// kernel: flux_forward.7
= control target key start
LH: loop header
LB: loop body
LE: loop exit
PB: predicated region body
PF: predicated region fallthrough
CT: control target
= control target key end

     0   :  { %v112_v0 = vmov 0.0   ;;  %vm113_vm0 = vmmov 0   ;;  %vm41_vm1 = vcmask 261120   ;;  %vm86_vm2 = vcmask 523264   ;;  %s155_s1 = inlined_call_operand.vmem [shape: bf16[32,64], index: 1, kind: input, shape index: {}]   ;;  %s156_s0 = inlined_call_operand.vmem [shape: f32[16,32], index: 0, kind: input, shape index: {}]   ;;  %s157_s2 = inlined_call_operand.vmem [shape: f32[1,64], index: 2, kind: input, shape index: {}]   ;;  %s158_s3 = inlined_call_operand.vmem [shape: f32[16,64], index: 3, kind: output, shape index: {}]  }
   0x1   :  { %100 = vmatprep.subr.bf16.mxu0 %v112_v0  ;;  %v110_v1 = vld [vmem:[%s155_s1] sm:$0xff]   ;;  %104 = vmatprep.mubr.msk.bf16.mxu0 %vm113_vm0, %v112_v0  ;;  %v111_v2 = vld [vmem:[%s155_s1 + $0x8] sm:$0xff]  }
   0x2   :  { %101 = vmatpush3.bf16.msra.mxu0 %v110_v1  ;;  %v15_v3 = vld [vmem:[%s156_s0] sm:$0xff]  ;;  %v16_v4 = vld [vmem:[%s156_s0 + $0x8] sm:$0xff] }
   0x3   :  { %102 = vmatprep.subr.bf16.mxu0 %v112_v0  ;;  %v21_v5 = vpack.c.bf16 %v16_v4, %v15_v3  ;;  %v93_v6 = vld [vmem:[%s157_s2] ss:$0 sm:$0xff] }
   0x6   :  { %103 = vmatpush3.bf16.msra.mxu0 %v111_v2 }
   0x9   :  { %105 = vmatmul.mubr.msk.bf16.vlgmr.msra.gmra.mrb[0].mxu0 %vm41_vm1, %v21_v5 }
  0xdc   :  { %v79_v7 = vpop.f32.mrb[0].mxu0 }
  0xdd   :  { %v80_v8 = vadd.f32 %v93_v6, %v79_v7  ;;  %v106_v9 = vpop.f32.mrb[1].mxu0 }
  0xde   :  { %v82_v10 = vpop.f32.mrb[2].mxu0 }
  0xdf   :  { %87 = vst.msk [vmem:[%s158_s3] sm:$0xff] %vm86_vm2, %v80_v8  ;;  %v83_v11 = vadd.f32 %v93_v6, %v82_v10  ;;  %v107_v12 = vpop.f32.mrb[3].mxu0 }
  0xe1   :  { %88 = vst.msk [vmem:[%s158_s3 + $0x8] sm:$0xff] %vm86_vm2, %v83_v11 }

// kernel: flux_forward.6
= control target key start
LH: loop header
LB: loop body
LE: loop exit
PB: predicated region body
PF: predicated region fallthrough
CT: control target
= control target key end

     0   :  { %vm36_vm0 = vcmask 130048   ;;  %vm92_vm1 = vcmask 523264   ;;  %s165_s1 = inlined_call_operand.vmem [shape: bf16[16,64], index: 1, kind: input, shape index: {}]   ;;  %s166_s0 = inlined_call_operand.vmem [shape: f32[32,16], index: 0, kind: input, shape index: {}]   ;;  %s167_s2 = inlined_call_operand.vmem [shape: f32[1,64], index: 2, kind: input, shape index: {}]   ;;  %s168_s3 = inlined_call_operand.vmem [shape: f32[32,64], index: 3, kind: output, shape index: {}]  }
   0x1   :  { %v114_v0 = vld [vmem:[%s165_s1] sm:$0xff]   ;;  %v16_v2 = vld [vmem:[%s166_s0 + $0x8] sm:$0xff]  ;;  %v17_v3 = vld [vmem:[%s166_s0 + $0x10] sm:$0xff] }
   0x2   :  { %v15_v1 = vld [vmem:[%s166_s0] sm:$0xff]  ;;  %108 = vmatprep.subr.bf16.mxu0 %v114_v0  ;;  %v18_v5 = vld [vmem:[%s166_s0 + $0x18] sm:$0xff] }
   0x3   :  { %v21_v4 = vpack.c.bf16 %v16_v2, %v15_v1  ;;  %109 = vmatpush3.bf16.msra.mxu0 %v114_v0  ;;  %v22_v6 = vpack.c.bf16 %v18_v5, %v17_v3  ;;  %v101_v7 = vld [vmem:[%s167_s2] ss:$0 sm:$0xff] }
   0x5   :  { %110 = vmatprep.mubr.msk.bf16.mxu0 %vm36_vm0, %v21_v4 }
   0x6   :  { %111 = vmatmul.mubr.msk.bf16.vlgmr.msra.gmra.mrb[0].mxu0 %vm36_vm0, %v22_v6 }
  0xd9   :  { %v112_v8 = vpop.f32.mrb[0].mxu0 }
  0xda   :  { %v86_v9 = vadd.f32 %v112_v8, %v101_v7  ;;  %v77_v10 = vpop.f32.mrb[1].mxu0 }
  0xdb   :  { %v78_v11 = vadd.f32 %v101_v7, %v77_v10  ;;  %v113_v12 = vpop.f32.mrb[2].mxu0 }
  0xdc   :  { %95 = vst.msk [vmem:[%s168_s3 + $0x10] sm:$0xff] %vm92_vm1, %v86_v9  ;;  %v89_v13 = vadd.f32 %v113_v12, %v101_v7  ;;  %v80_v14 = vpop.f32.mrb[3].mxu0 }
  0xdd   :  { %93 = vst.msk [vmem:[%s168_s3] sm:$0xff] %vm92_vm1, %v78_v11  ;;  %v81_v15 = vadd.f32 %v101_v7, %v80_v14 }
  0xde   :  { %96 = vst.msk [vmem:[%s168_s3 + $0x18] sm:$0xff] %vm92_vm1, %v89_v13 }
  0xdf   :  { %94 = vst.msk [vmem:[%s168_s3 + $0x8] sm:$0xff] %vm92_vm1, %v81_v15 }

// kernel: flux_forward.8
= control target key start
LH: loop header
LB: loop body
LE: loop exit
PB: predicated region body
PF: predicated region fallthrough
CT: control target
= control target key end

     0   :  { %v627_v21 = vmov 0.0   ;;  %vm628_vm0 = vmmov 0   ;;  %vm272_vm1 = vcmask 523264   ;;  %vm341_vm2 = vcmask 261120   ;;  %s788_s2 = inlined_call_operand.vmem [shape: bf16[256,64], index: 2, kind: input, shape index: {}]   ;;  %s789_s0 = inlined_call_operand.vmem [shape: f32[2,256], index: 0, kind: input, shape index: {}]   ;;  %s790_s4 = inlined_call_operand.vmem [shape: bf16[64,64], index: 4, kind: input, shape index: {}]   ;;  %s791_s6 = inlined_call_operand.vmem [shape: bf16[32,64], index: 6, kind: input, shape index: {}]   ;;  %s792_s3 = inlined_call_operand.vmem [shape: f32[1,64], index: 3, kind: input, shape index: {}]   ;;  %s793_s1 = inlined_call_operand.vmem [shape: f32[2,32], index: 1, kind: input, shape index: {}]   ;;  %s794_s8 = inlined_call_operand.vmem [shape: bf16[64,64], index: 8, kind: input, shape index: {}]   ;;  %s795_s7 = inlined_call_operand.vmem [shape: f32[1,64], index: 7, kind: input, shape index: {}]   ;;  %s796_s5 = inlined_call_operand.vmem [shape: f32[1,64], index: 5, kind: input, shape index: {}]   ;;  %s797_s9 = inlined_call_operand.vmem [shape: f32[1,64], index: 9, kind: input, shape index: {}]   ;;  %s798_s10 = inlined_call_operand.vmem [shape: f32[2,64], index: 10, kind: output, shape index: {}]  }
   0x1   :  { %v593_v0 = vld [vmem:[%s788_s2 + $0x40] sm:$0xff]   ;;  %v595_v2 = vld [vmem:[%s788_s2 + $0x48] sm:$0xff]   ;;  %v597_v4 = vld [vmem:[%s788_s2 + $0x50] sm:$0xff]   ;;  %553 = vmatprep.subr.bf16.mxu1 %v627_v21  ;;  %561 = vmatprep.mubr.msk.bf16.mxu1 %vm628_vm0, %v627_v21  ;;  %vm476_vm3 = vcmask 517120  }
   0x2   :  { %v594_v1 = vld [vmem:[%s788_s2] sm:$0xff]   ;;  %518 = vmatprep.subr.bf16.mxu0 %v593_v0  ;;  %v596_v3 = vld [vmem:[%s788_s2 + $0x8] sm:$0xff]   ;;  %v598_v5 = vld [vmem:[%s788_s2 + $0x10] sm:$0xff]  }
   0x3   :  { %519 = vmatpush3.bf16.msra.mxu0 %v594_v1  ;;  %v599_v6 = vld [vmem:[%s788_s2 + $0x58] sm:$0xff]   ;;  %v601_v8 = vld [vmem:[%s788_s2 + $0x60] sm:$0xff]   ;;  %v603_v10 = vld [vmem:[%s788_s2 + $0x68] sm:$0xff]  }
   0x4   :  { %520 = vmatprep.subr.bf16.mxu0 %v595_v2  ;;  %v600_v7 = vld [vmem:[%s788_s2 + $0x18] sm:$0xff]   ;;  %v602_v9 = vld [vmem:[%s788_s2 + $0x20] sm:$0xff]   ;;  %v604_v13 = vld [vmem:[%s788_s2 + $0x28] sm:$0xff]  }
   0x5   :  { %v482_v11 = vld.sshfl [vmem:[%s789_s0] sm:$0x33 pattern:$0x76325410]  ;;  %v605_v15 = vld [vmem:[%s788_s2 + $0x70] sm:$0xff]   ;;  %v607_v17 = vld [vmem:[%s788_s2 + $0x78] sm:$0xff]  }
   0x6   :  { %v77_v12 = vcombine.high %v482_v11, %v482_v11  ;;  %v606_v16 = vld [vmem:[%s788_s2 + $0x30] sm:$0xff]   ;;  %v608_v18 = vld [vmem:[%s788_s2 + $0x38] sm:$0xff]   ;;  %v80_v19 = vpack.c.bf16 %v482_v11, %v482_v11  ;;  %v609_v20 = vld [vmem:[%s790_s4] sm:$0xff]  }
   0x7   :  { %521 = vmatpush3.bf16.msra.mxu0 %v596_v3  ;;  %554 = vmatpush3.bf16.msra.mxu1 %v609_v20  ;;  %v610_v22 = vld [vmem:[%s790_s4 + $0x8] sm:$0xff]   ;;  %v611_v23 = vld [vmem:[%s790_s4 + $0x10] sm:$0xff]   ;;  %v612_v24 = vld [vmem:[%s790_s4 + $0x18] sm:$0xff]  }
   0x8   :  { %522 = vmatprep.subr.bf16.mxu0 %v597_v4  ;;  %v81_v14 = vpack.c.bf16 %v77_v12, %v77_v12  ;;  %555 = vmatprep.subr.bf16.mxu1 %v627_v21  ;;  %v483_v26 = vld [vmem:[%s792_s3] ss:$0 sm:$0xff]  ;;  %v614_v39 = vld [vmem:[%s791_s6 + $0x8] sm:$0xff]   ;;  %v617_v44 = vld [vmem:[%s794_s8 + $0x10] sm:$0xff]  }
   0x9   :  { %v613_v37 = vld [vmem:[%s791_s6] sm:$0xff]   ;;  %v616_v43 = vld [vmem:[%s794_s8 + $0x8] sm:$0xff]   ;;  %v618_v45 = vld [vmem:[%s794_s8 + $0x18] sm:$0xff]  }
   0xa   :  { %217 = vmatprep.mubr.bf16.mxu0 %v81_v14  ;;  %v316_v40 = vld [vmem:[%s793_s1] sm:$0x3] }
   0xb   :  { %523 = vmatpush3.bf16.msra.mxu0 %v598_v5  ;;  %556 = vmatpush3.bf16.msra.mxu1 %v610_v22  ;;  %v321_v41 = vpack.c.bf16 %v316_v40, %v316_v40  ;;  %v615_v42 = vld [vmem:[%s794_s8] sm:$0xff]  }
   0xc   :  { %524 = vmatprep.subr.bf16.mxu0 %v599_v6  ;;  %557 = vmatprep.subr.bf16.mxu1 %v627_v21  ;;  %v507_v46 = vld [vmem:[%s795_s7] ss:$0 sm:$0xff] }
   0xd   :  { %v501_v58 = vld [vmem:[%s796_s5] ss:$0 sm:$0xff] }
   0xe   :  { %v512_v59 = vld [vmem:[%s797_s9] ss:$0 sm:$0xff] }
   0xf   :  { %525 = vmatpush3.bf16.msra.mxu0 %v600_v7  ;;  %558 = vmatpush3.bf16.msra.mxu1 %v611_v23  ;;  %v585_v60 = vadd.f32 %v512_v59, %v501_v58 }
  0x10   :  { %526 = vmatprep.subr.bf16.mxu0 %v601_v8  ;;  %559 = vmatprep.subr.bf16.mxu1 %v627_v21 }
  0x13   :  { %527 = vmatpush3.bf16.msra.mxu0 %v602_v9  ;;  %560 = vmatpush3.bf16.msra.mxu1 %v612_v24 }
  0x14   :  { %528 = vmatprep.subr.bf16.mxu0 %v603_v10  ;;  %565 = vmatprep.subr.bf16.mxu1 %v627_v21 }
  0x17   :  { %529 = vmatpush3.bf16.msra.mxu0 %v604_v13 }
  0x18   :  { %530 = vmatprep.subr.bf16.mxu0 %v605_v15 }
  0x1b   :  { %531 = vmatpush3.bf16.msra.mxu0 %v606_v16 }
  0x1c   :  { %532 = vmatprep.subr.bf16.mxu0 %v607_v17 }
  0x1f   :  { %533 = vmatpush3.bf16.msra.mxu0 %v608_v18 }
  0x22   :  { %218 = vmatmul.mubr.bf16.vlgmr.msra.gmra.mrb[0].mxu0 %v80_v19 }
  0xf5   :  { %v534_v25 = vpop.f32.mrb[0].mxu0 }
  0xf6   :  { %v535_v27 = vpop.f32.mrb[1].mxu0 }
  0xf7   :  { %v536_v28 = vadd.f32 %v535_v27, %v534_v25  ;;  %v537_v29 = vpop.f32.mrb[2].mxu0 }
  0xf8   :  { %v538_v30 = vpop.f32.mrb[3].mxu0 }
  0xf9   :  { %v220_v31 = vadd.f32 %v536_v28, %v483_v26 }
  0xfb   :  { %v500_v32 = vmul.f32 -1.442695, %v220_v31 }
  0xfd   :  { %619 = vpow2.f32 %v500_v32 }
 0x107   :  { %v620_v33 = vpop.eup %619 }
 0x108   :  { %v228_v34 = vadd.f32 1.0, %v620_v33 }
 0x10a   :  { %621 = vrcp.f32 %v228_v34 }
 0x114   :  { %v622_v35 = vpop.eup %621 }
 0x115   :  { %v231_v36 = vmul.f32 %v622_v35, %v220_v31 }
 0x117   :  { %v240_v38 = vpack.c.bf16 %v231_v36, %v231_v36 }
 0x119   :  { %562 = vmatmul.mubr.msk.bf16.vlgmr.msra.gmra.mrb[0].mxu1 %vm272_vm1, %v240_v38 }
 0x11a   :  { %566 = vmatpush3.bf16.msra.mxu1 %v613_v37  ;;  %569 = vmatprep.mubr.msk.bf16.mxu1 %vm628_vm0, %v627_v21 }
 0x11b   :  { %567 = vmatprep.subr.bf16.mxu1 %v627_v21 }
 0x11e   :  { %568 = vmatpush3.bf16.msra.mxu1 %v614_v39 }
 0x11f   :  { %573 = vmatprep.subr.bf16.mxu1 %v627_v21 }
 0x121   :  { %570 = vmatmul.mubr.msk.bf16.vlgmr.msra.gmra.mrb[4].mxu1 %vm341_vm2, %v321_v41 }
 0x122   :  { %581 = vmatprep.mubr.msk.bf16.mxu1 %vm628_vm0, %v627_v21  ;;  %574 = vmatpush3.bf16.msra.mxu1 %v615_v42 }
 0x123   :  { %575 = vmatprep.subr.bf16.mxu1 %v627_v21 }
 0x126   :  { %576 = vmatpush3.bf16.msra.mxu1 %v616_v43 }
 0x127   :  { %577 = vmatprep.subr.bf16.mxu1 %v627_v21 }
 0x12a   :  { %578 = vmatpush3.bf16.msra.mxu1 %v617_v44 }
 0x12b   :  { %579 = vmatprep.subr.bf16.mxu1 %v627_v21 }
 0x12e   :  { %580 = vmatpush3.bf16.msra.mxu1 %v618_v45 }
 0x1f4   :  { %v379_v47 = vpop.f32.mrb[4].mxu1 }
 0x1f5   :  { %v380_v48 = vadd.f32 %v507_v46, %v379_v47  ;;  %v571_v49 = vpop.f32.mrb[5].mxu1 }
 0x1f6   :  { %v382_v50 = vpop.f32.mrb[6].mxu1 }
 0x1f7   :  { %v511_v51 = vmul.f32 -1.442695, %v380_v48  ;;  %v572_v52 = vpop.f32.mrb[7].mxu1 }
 0x1f9   :  { %623 = vpow2.f32 %v511_v51 }
 0x203   :  { %v624_v53 = vpop.eup %623 }
 0x204   :  { %v388_v54 = vadd.f32 1.0, %v624_v53 }
 0x206   :  { %625 = vrcp.f32 %v388_v54 }
 0x210   :  { %v626_v55 = vpop.eup %625 }
 0x211   :  { %v391_v56 = vmul.f32 %v626_v55, %v380_v48 }
 0x213   :  { %v400_v57 = vpack.c.bf16 %v391_v56, %v391_v56 }
 0x215   :  { %582 = vmatmul.mubr.msk.bf16.vlgmr.msra.gmra.mrb[0].mxu1 %vm272_vm1, %v400_v57 }
 0x2e8   :  { %v469_v61 = vpop.f32.mrb[0].mxu1 }
 0x2e9   :  { %v586_v62 = vadd.f32 %v585_v60, %v469_v61  ;;  %v583_v63 = vpop.f32.mrb[1].mxu1 }
 0x2ea   :  { %v472_v0 = vpop.f32.mrb[2].mxu1 }
 0x2eb   :  { %477 = vst.msk [vmem:[%s798_s10] sm:$0x3] %vm476_vm3, %v586_v62  ;;  %v584_v1 = vpop.f32.mrb[3].mxu1 }

// kernel: flux_forward.11
= control target key start
LH: loop header
LB: loop body
LE: loop exit
PB: predicated region body
PF: predicated region fallthrough
CT: control target
= control target key end

     0   :  { %11 = vsyncpa [#allocation3], 0  ;;  %s957_s0 = inlined_call_operand.vmem [shape: f32[2,16,64], index: 0, kind: input, shape index: {}]   ;;  %s958_s1 = inlined_call_operand.vmem [shape: f32[2,1,64], index: 1, kind: input, shape index: {}]   ;;  %s959_s2 = inlined_call_operand.vmem [shape: bf16[64,128], index: 2, kind: input, shape index: {}]   ;;  %s960_s3 = inlined_call_operand.vmem [shape: f32[1,128], index: 3, kind: input, shape index: {}]   ;;  %s961_s4 = inlined_call_operand.vmem [shape: bf16[64,16], index: 4, kind: input, shape index: {}]   ;;  %s962_s5 = inlined_call_operand.vmem [shape: f32[1,16], index: 5, kind: input, shape index: {}]   ;;  %s963_s6 = inlined_call_operand.hbm [shape: f32[2,16,16], index: 6, kind: output, shape index: {}]  }
   0x1   :  { %13 = vsyncpa [#allocation3 + $0x1], 0  ;;  %s805_s21 = smov 0   ;;  %s807_s22 = smov 0  }
   0x2   :  { %s809_s23 = smov 0   ;;  %s811_s24 = smov 0  }
   0x3 LB: > { %s826_s25 = sadd.s32 4294967295, %s762_s24   ;;  %s580_s26 = sadd.s32 4294967294, %s762_s24   ;;  %s762_s24 = sphi %s811_s24, %s969_s24   ;;  %s758_s23 = sphi %s809_s23, %s968_s23   ;;  %s754_s22 = sphi %s807_s22, %s967_s22   ;;  %s750_s21 = sphi %s805_s21, %s966_s21  }
   0x4   : > { %s830_s27 = sadd.s32 1, %s762_s24   ;;  %s162_s28 = sadd.s32 1, %s758_s23 }
   0x5   : > { %s159_s29 = ssub.s32 %s762_s24, %s830_s27  ;;  %p172_p0 = scmp.ne.s32.totalorder %s758_s23, %s754_s22 }
   0x6   : > { %p160_p1 = scmp.eq.s32.totalorder %s159_s29, 0  ;;  %p173_p2 = scmp.eq.s32.totalorder %s826_s25, 1 }
   0x7   : > { %p178_p3 = scmp.ne.s32.totalorder %s754_s22, %s750_s21  ;;  %p179_p4 = scmp.eq.s32.totalorder %s580_s26, 1 }
   0x8   : > { %s841_s30 = scalar_select %p160_p1, %s758_s23, %s162_s28  }
   0x9   : > { %p843_p5 = por %p173_p2, %p172_p0  ;;  %p847_p6 = por %p179_p4, %p178_p3 }
   0xa   : > { %p583_p7 = scmp.ge.s32.totalorder %s762_s24, 1  ;;  %p223_p8 = scmp.lt.s32.totalorder %s762_s24, 3 }
   0xc   : > { %p224_p9 = pnand %p583_p7, %p223_p8 }
   0xd   : > { %p256_p10 = scmp.lt.s32.totalorder (!%p224_p9), %s826_s25, 1  ;;  %v684_v0 = vld [vmem:[%s959_s2] sm:$0xff] (!%p224_p9)   ;;  %v764_v1 = vmov (!%p224_p9), 0.0   ;;  %v685_v2 = vld [vmem:[%s959_s2 + $0x8] sm:$0xff] (!%p224_p9)   ;;  %vm307_vm0 = vcmask (!%p224_p9), 523264   ;;  %v686_v3 = vld [vmem:[%s959_s2 + $0x10] sm:$0xff] (!%p224_p9)   ;;  %v381_v26 = vlaneseq (!%p224_p9) }
   0xe   : > { %227 = sbr.rel (%p224_p9) target bundleno = 808 (0x328), region = 44  ;;  %616 = vmatprep.subr.bf16.mxu0 (!%p224_p9), %v764_v1  ;;  %628 = vmatprep.subr.bf16.mxu1 (!%p224_p9), %v764_v1  ;;  %vm765_vm1 = vmmov (!%p224_p9), 0   ;;  %v687_v10 = vld [vmem:[%s959_s2 + $0x18] sm:$0xff] (!%p224_p9)   ;;  %v282_v27 = vld [vmem:[%s960_s3] sm:$0x1] (!%p224_p9)  ;;  %v689_v47 = vld [vmem:[%s961_s4 + $0x8] sm:$0xff] (!%p224_p9)  }
   0xf   : > { %617 = vmatpush3.bf16.msra.mxu0 (!%p224_p9), %v684_v0  ;;  %624 = vmatprep.mubr.msk.bf16.mxu0 (!%p224_p9), %vm765_vm1, %v764_v1  ;;  %v382_v28 = vshrl.u32 (!%p224_p9), %v381_v26, 7  ;;  %v688_v45 = vld [vmem:[%s961_s4] sm:$0xff] (!%p224_p9)   ;;  %v690_v50 = vld [vmem:[%s961_s4 + $0x10] sm:$0xff] (!%p224_p9)   ;;  %v691_v51 = vld [vmem:[%s961_s4 + $0x18] sm:$0xff] (!%p224_p9)   ;;  %s253_s26 = sand.u32 (!%p224_p9), 1, %s754_s22   ;;  %s605_s12 = sshll.u32 (!%p224_p9), %s826_s25, 8 }
  0x10   : > { %618 = vmatprep.subr.bf16.mxu0 (!%p224_p9), %v764_v1  ;;  %636 = vmatprep.mubr.msk.bf16.mxu1 (!%p224_p9), %vm765_vm1, %v764_v1  ;;  %v593_v61 = vld [vmem:[%s962_s5] ss:$0 sm:$0xff] (!%p224_p9)  ;;  %vm492_vm2 = vcmask (!%p224_p9), 130048   ;;  %s914_s15 = scalar_lea.hbm (!%p224_p9), %s963_s6, %s605_s12 }
  0x11   : > { %v383_v34 = vsub.s32 (!%p224_p9), 0, %v382_v28  ;;  %629 = vmatpush3.bf16.msra.mxu1 (!%p224_p9), %v688_v45 }
  0x12   : > { %630 = vmatprep.subr.bf16.mxu1 (!%p224_p9), %v764_v1 }
  0x13   : > { %619 = vmatpush3.bf16.msra.mxu0 (!%p224_p9), %v685_v2 }
  0x14   : > { %620 = vmatprep.subr.bf16.mxu0 (!%p224_p9), %v764_v1 }
  0x15   : > { %s257_s11 = scalar_select %p256_p10, %s826_s25, 1  ;;  %631 = vmatpush3.bf16.msra.mxu1 %v689_v47 }
  0x16   : > { %632 = vmatprep.subr.bf16.mxu1 %v764_v1  ;;  %s916_s25 = scalar_lea.sflag [#allocation3], %s253_s26 }
  0x17   : > { %s604_s14 = sshll.u32 %s257_s11, 4  ;;  %s263_s17 = scalar_lea.vmem %s958_s1, %s257_s11  ;;  %621 = vmatpush3.bf16.msra.mxu0 %v686_v3 }
  0x18   : > { %s260_s28 = scalar_lea.vmem %s957_s0, %s604_s14  ;;  %v265_v4 = vld [vmem:[%s263_s17] sm:$0x1]  ;;  %622 = vmatprep.subr.bf16.mxu0 %v764_v1  ;;  %s766_s14 = smov 64  }
  0x19   : > { %v587_v5 = vmul.f32 -1.442695, %v265_v4  ;;  %v352_v6 = vld [vmem:[%s260_s28] sm:$0xff]  ;;  %v353_v7 = vld [vmem:[%s260_s28 + $0x8] sm:$0xff]  ;;  %633 = vmatpush3.bf16.msra.mxu1 %v690_v50  ;;  %s584_s28 = sshll.u32 %s253_s26, 4  ;;  %s767_s17 = smov [#allocation2]  }
  0x1a   : > { %v354_v8 = vsel %vm307_vm0, %v352_v6, 0.0  ;;  %v357_v9 = vsel %vm307_vm0, %v353_v7, 0.0  ;;  %634 = vmatprep.subr.bf16.mxu1 %v764_v1  ;;  %s255_s10 = scalar_lea.vmem [#allocation2], %s584_s28  ;;  %s704_s18 = sshll.u32 %s767_s17, 4  ;;  %s705_s18 = int_to_ptr.vmem [resolvable:$false] %s704_s18 }
  0x1b   : > { %692 = vpow2.f32 %v587_v5  ;;  %355 = vadd.xlane.f32.xlu0 %v354_v8  ;;  %623 = vmatpush3.bf16.msra.mxu0 %v687_v10  ;;  %s509_s11 = sshll.u32 %s255_s10, 4  ;;  %s706_s19 = scalar_lea.vmem %s705_s18, 512  ;;  %s909_s11 = int_to_ptr.vmem [resolvable:$true] %s509_s11 }
  0x1c   : > { %s700_s16 = scalar_lea.vmem %s909_s11, 256  ;;  %p707_p0 = scmp.lt.s32.totalorder %s909_s11, %s705_s18 }
  0x1d   : > { %635 = vmatpush3.bf16.msra.mxu1 %v691_v51  ;;  %p701_p11 = scmp.ne.s32.totalorder %s909_s11, %s700_s16  ;;  %p708_p1 = scmp.lt.s32.totalorder %s706_s19, %s700_s16 }
  0x1f   : > { %358 = vadd.xlane.f32.xlu0 %v357_v9  ;;  %p702_p12 = pnand %p701_p11, %p843_p5  ;;  %p709_p2 = por %p708_p1, %p707_p0 }
  0x21   : > { %p703_p13 = pneg %p702_p12 }
  0x23   : > { %p710_p3 = pnand %p709_p2, %p703_p13 }
  0x25   : > { %v693_v11 = vpop.eup %692 }
  0x26   : > { %v269_v12 = vadd.f32 1.0, %v693_v11 }
  0x28   : > { %694 = vrcp.f32 %v269_v12 }
  0x32   : > { %v695_v13 = vpop.eup %694 }
  0x33   : > { %v272_v14 = vmul.f32 %v695_v13, %v265_v4 }
  0x35   : > { %v281_v15 = vpack.c.bf16 %v272_v14, %v272_v14 }
  0x37   : > { %625 = vmatmul.mubr.msk.bf16.vlgmr.msra.gmra.mrb[0].mxu0 %vm307_vm0, %v281_v15 }
  0xa8   : > { %v356_v16 = vpop.xlane.xlu0 %355 }
  0xa9   : > { %v361_v17 = vmul.f32 0.015625, %v356_v16 }
  0xab   : > { %v363_v18 = vsub.f32 %v352_v6, %v361_v17 }
  0xac   : > { %v359_v19 = vpop.xlane.xlu0 %358 }
  0xad   : > { %v362_v20 = vmul.f32 0.015625, %v359_v19  ;;  %v365_v21 = vmul.f32 %v363_v18, %v363_v18 }
  0xaf   : > { %v364_v22 = vsub.f32 %v353_v7, %v362_v20  ;;  %v367_v23 = vsel %vm307_vm0, %v365_v21, 0.0 }
  0xb0   : > { %368 = vadd.xlane.f32.xlu1 %v367_v23 }
  0xb1   : > { %v366_v24 = vmul.f32 %v364_v22, %v364_v22 }
  0xb3   : > { %v370_v25 = vsel %vm307_vm0, %v366_v24, 0.0 }
  0xb4   : > { %371 = vadd.xlane.f32.xlu1 %v370_v25 }
 0x10a   : > { %v345_v29 = vpop.f32.mrb[0].mxu0 }
 0x10b   : > { %v346_v30 = vadd.f32 %v345_v29, %v282_v27  ;;  %v626_v31 = vpop.f32.mrb[1].mxu0 }
 0x10c   : > { %v348_v32 = vpop.f32.mrb[2].mxu0 }
 0x10d   : > { %v351_v33 = vadd.f32 1.0, %v346_v30  ;;  %v627_v35 = vpop.f32.mrb[3].mxu0  ;;  %v398_v49 = vrot.slane %v346_v30, %v383_v34 }
 0x10f   : > { %v384_v36 = vrot.slane %v351_v33, %v383_v34 }
 0x13d   : > { %v369_v37 = vpop.xlane.xlu1 %368 }
 0x13e   : > { %v373_v38 = vmul.f32 0.015625, %v369_v37 }
 0x140   : > { %v375_v39 = vadd.f32 1e-06, %v373_v38 }
 0x141   : > { %v372_v40 = vpop.xlane.xlu1 %371 }
 0x142   : > { %696 = vrsqrt.f32 %v375_v39  ;;  %v374_v41 = vmul.f32 0.015625, %v372_v40 }
 0x144   : > { %v376_v42 = vadd.f32 1e-06, %v374_v41 }
 0x146   : > { %698 = vrsqrt.f32 %v376_v42 }
 0x14c   : > { %v697_v43 = vpop.eup %696 }
 0x14d   : > { %v379_v44 = vmul.f32 %v697_v43, %v363_v18 }
 0x14f   : > { %387 = vrot.lane.b32.xlu0 %v379_v44, %s766_s14 }
 0x150   : > { %v699_v46 = vpop.eup %698 }
 0x151   : > { %v380_v48 = vmul.f32 %v699_v46, %v364_v22 }
 0x153   : > { %389 = vrot.lane.b32.xlu1 %v380_v48, %s766_s14 }
 0x157   : > { %400 = vrot.lane.b32.xlu1 %v398_v49, %s766_s14 }
 0x1c1   : > { %v388_v52 = vpop.permute.xlu0 %387 }
 0x1c2   : > { %v393_v54 = vmul.f32 %v388_v52, %v384_v36 }
 0x1c5   : > { %v390_v53 = vpop.permute.xlu1 %389 }
 0x1c6   : > { %v394_v55 = vmul.f32 %v390_v53, %v384_v36 }
 0x1c9   : > { %v401_v56 = vpop.permute.xlu1 %400 }
 0x1ca   : > { %v403_v57 = vadd.f32 %v401_v56, %v393_v54  ;;  %v404_v58 = vadd.f32 %v401_v56, %v394_v55 }
 0x1cc   : > { %v413_v59 = vpack.c.bf16 %v404_v58, %v403_v57 }
 0x1ce   : > { %422 = vrot.lane.b32.xlu1 %v413_v59, %s766_s14 }
 0x240   : > { %v423_v60 = vpop.permute.xlu1 %422 }
 0x241   : > { %637 = vmatmul.mubr.msk.bf16.vlgmr.msra.gmra.mrb[0].mxu1 %vm307_vm0, %v423_v60 }
 0x314   : > { %v485_v62 = vpop.f32.mrb[0].mxu1 }
 0x315   : > { %v486_v63 = vadd.f32 %v593_v61, %v485_v62  ;;  %v638_v0 = vpop.f32.mrb[1].mxu1 }
 0x316   : > { %v488_v1 = vpop.f32.mrb[2].mxu1 }
 0x317   : > { %493 = vst.msk [vmem:[%s255_s10] sm:$0xff] %vm492_vm2, %v486_v63  ;;  %v489_v2 = vadd.f32 %v593_v61, %v488_v1  ;;  %v639_v3 = vpop.f32.mrb[3].mxu1 }
 0x319   : > { %494 = vst.msk [vmem:[%s255_s10 + $0x8] sm:$0xff] %vm492_vm2, %v489_v2 }
 0x31a   : > { %713 = shalt.err (!%p710_p3)
}
 0x31b   : > { %s714_s20 = scalar_lea.hbm %s914_s15, 256  ;;  %s718_s29 = scalar_lea.hbm %s963_s6, 512 }
 0x31c   : > { %p715_p4 = scmp.ne.s32.totalorder %s914_s15, %s714_s20  ;;  %p719_p9 = scmp.lt.u32.totalorder %s914_s15, %s963_s6 }
 0x31d   : > { %p720_p10 = scmp.lt.u32.totalorder %s718_s29, %s714_s20  ;;  %p722_p12 = scmp.lt.u32.totalorder %s714_s20, %s914_s15 }
 0x31e   : > { %p716_p7 = pnand %p715_p4, %p843_p5 }
 0x31f   : > { %p721_p11 = por %p720_p10, %p719_p9 }
 0x320   : > { %p717_p8 = pneg %p716_p7 }
 0x321   : > { %p723_p13 = por %p722_p12, %p721_p11 }
 0x323   : > { %p724_p0 = pnand %p723_p13, %p717_p8 }
 0x325   : > { %727 = shalt.err (!%p724_p0)
}
 0x326   : > { %s768_s12 = smov 128   ;;  %s769_s13 = smov 8  }
 0x327   : > { %640 = dma.vmem_to_hbm [thread:$0]  (%p843_p5), %s909_s11, 256, %s914_s15, %s916_s25, %s768_s12, %s768_s12, %s769_s13  }
 0x328 PF: > { %p646_p1 = scmp.ge.s32.totalorder %s762_s24, 2  ;;  %s524_s14 = sand.u32 1, %s750_s21  }
 0x329   : > { %s525_s16 = scalar_lea.sflag [#allocation3], %s524_s14 }
 0x32a   : > { %p643_p2 = pnand %p646_p1, %p847_p6 }
 0x32c   : > { %745 = dma.done.wait (!%p643_p2), %s525_s16, 256  }
 0x32d   : > { %747 = vsyncadd (!%p643_p2), %s525_s16, 4294967040  ;;  %p16_p3 = scmp.ge.s32.totalorder %s830_s27, 4   ;;  %s966_s21 = smov %s754_s22 }
 0x32e   : > { %s967_s22 = smov %s758_s23  ;;  %s968_s23 = smov %s841_s30 }
 0x32f   : > { %s969_s24 = smov %s830_s27  ;;  %18 = sbr.rel (!%p16_p3) target bundleno = 3 (0x3), region = 82 }
 0x336   :  { %530 = vsyncpa [#allocation3], 1 }
 0x337   :  { %532 = vsyncpa [#allocation3 + $0x1], 1 }

// kernel: flux_forward.9
= control target key start
LH: loop header
LB: loop body
LE: loop exit
PB: predicated region body
PF: predicated region fallthrough
CT: control target
= control target key end

     0   :  { %s4331_s6 = smov 1   ;;  %s4332_s10 = smov 2   ;;  %s5133_s0 = inlined_call_operand.smem [shape: u32[31], index: -1, kind: input, shape index: {}] }
   0x1   :  { %s4377_s5 = sld [smem:[%s5133_s0]]   ;;  %s4333_s14 = smov 3  }
   0x2   :  { %s4382_s9 = sld [smem:[%s5133_s0 + %s4331_s6]]   ;;  %s4334_s18 = smov 4  }
   0x3   :  { %s4387_s13 = sld [smem:[%s5133_s0 + %s4332_s10]]   ;;  %s4335_s22 = smov 5  }
   0x4   :  { %s4392_s17 = sld [smem:[%s5133_s0 + %s4333_s14]]   ;;  %s4336_s26 = smov 6  }
   0x5   :  { %s4397_s21 = sld [smem:[%s5133_s0 + %s4334_s18]]   ;;  %s4337_s30 = smov 7  }
   0x6   :  { %s4402_s25 = sld [smem:[%s5133_s0 + %s4335_s22]]   ;;  %s4338_s4 = smov 8  }
   0x7   :  { %s4407_s29 = sld [smem:[%s5133_s0 + %s4336_s26]]   ;;  %s4339_s10 = smov 9  }
   0x8   :  { %s4412_s3 = sld [smem:[%s5133_s0 + %s4337_s30]]   ;;  %s4340_s15 = smov 10  }
   0x9   :  { %s4417_s8 = sld [smem:[%s5133_s0 + %s4338_s4]]   ;;  %s4341_s20 = smov 11  }
   0xa   :  { %5142 = sst [smem:[#allocation5_spill]] %s4392_s17  ;;  %s4342_s26 = smov 12  }
   0xb   :  { %5143 = sst [smem:[#allocation6_spill]] %s4397_s21  ;;  %s4343_s1 = smov 13  }
   0xc   :  { %s4422_s14 = sld [smem:[%s5133_s0 + %s4339_s10]]   ;;  %s4344_s7 = smov 14  }
   0xd   :  { %s4427_s19 = sld [smem:[%s5133_s0 + %s4340_s15]]   ;;  %s4345_s15 = smov 15  }
   0xe   :  { %s4432_s24 = sld [smem:[%s5133_s0 + %s4341_s20]]   ;;  %s4346_s22 = smov 16  }
   0xf   :  { %s4437_s30 = sld [smem:[%s5133_s0 + %s4342_s26]]   ;;  %s4347_s28 = smov 17  }
  0x10   :  { %s4442_s6 = sld [smem:[%s5133_s0 + %s4343_s1]]  }
  0x11   :  { %s4447_s12 = sld [smem:[%s5133_s0 + %s4344_s7]]   ;;  %s4348_s7 = smov 18  }
  0x12   :  { %s4452_s20 = sld [smem:[%s5133_s0 + %s4345_s15]]   ;;  %s4349_s15 = smov 19  }
  0x13   :  { %s4457_s27 = sld [smem:[%s5133_s0 + %s4346_s22]]   ;;  %s4350_s22 = smov 20  }
  0x14   :  { %5144 = sst [smem:[#allocation7_spill]] %s4432_s24 }
  0x15   :  { %5145 = sst [smem:[#allocation8_spill]] %s4437_s30 }
  0x16   :  { %5146 = sst [smem:[#allocation9_spill]] %s4442_s6 }
  0x17   :  { %5147 = sst [smem:[#allocation10_spill]] %s4447_s12 }
  0x18   :  { %5148 = sst [smem:[#allocation11_spill]] %s4452_s20 }
  0x19   :  { %5149 = sst [smem:[#allocation12_spill]] %s4457_s27 }
  0x1a   :  { %s4462_s4 = sld [smem:[%s5133_s0 + %s4347_s28]]   ;;  %s4351_s28 = smov 21  }
  0x1b   :  { %s4467_s12 = sld [smem:[%s5133_s0 + %s4348_s7]]   ;;  %s4352_s7 = smov 22  }
  0x1c   :  { %s4472_s20 = sld [smem:[%s5133_s0 + %s4349_s15]]   ;;  %s4353_s15 = smov 23  }
  0x1d   :  { %s4477_s27 = sld [smem:[%s5133_s0 + %s4350_s22]]   ;;  %s4354_s22 = smov 24  }
  0x1e   :  { %s4482_s6 = sld [smem:[%s5133_s0 + %s4351_s28]]   ;;  %s4355_s28 = smov 25  }
  0x1f   :  { %s4487_s30 = sld [smem:[%s5133_s0 + %s4352_s7]]   ;;  %s4356_s7 = smov 26  }
  0x20   :  { %s4492_s24 = sld [smem:[%s5133_s0 + %s4353_s15]]   ;;  %s4357_s15 = smov 27  }
  0x21   :  { %s4497_s17 = sld [smem:[%s5133_s0 + %s4354_s22]]   ;;  %s4358_s22 = smov 28  }
  0x22   :  { %s4502_s21 = sld [smem:[%s5133_s0 + %s4355_s28]]   ;;  %s4359_s28 = smov 29  }
  0x24   :  { %5150 = sst [smem:[#allocation13_spill]] %s4482_s6 }
  0x25   :  { %s4507_s6 = sld [smem:[%s5133_s0 + %s4356_s7]]   ;;  %s4360_s7 = smov 30  }
  0x26   :  { %5151 = sst [smem:[#allocation14_spill]] %s4492_s24 }
  0x27   :  { %5152 = sst [smem:[#allocation15_spill]] %s4497_s17 }
  0x28   :  { %5153 = sst [smem:[#allocation16_spill]] %s4502_s21 }
  0x29   :  { %s4512_s24 = sld [smem:[%s5133_s0 + %s4357_s15]]  }
  0x2a   :  { %s4517_s17 = sld [smem:[%s5133_s0 + %s4358_s22]]  }
  0x2b   :  { %5154 = sst [smem:[#allocation17_spill]] %s4507_s6 }
  0x2c   :  { %s4522_s21 = sld [smem:[%s5133_s0 + %s4359_s28]]  }
  0x2d   :  { %s4527_s6 = sld [smem:[%s5133_s0 + %s4360_s7]]  }
  0x2e   :  { %67 = vsyncpa [#allocation3], 0  ;;  %s4529_s15 = smov 0  }
  0x2f LB: > { %s4535_s16 = sadd.s32 4294967295, %s4329_s15   ;;  %p3646_p0 = scmp.ge.s32.totalorder %s4329_s15, 1  ;;  %s4329_s15 = sphi %s4529_s15, %s73_s15  }
  0x30   : > { %p764_p1 = scmp.lt.s32.totalorder %s4329_s15, 3  ;;  %p5139_p3 = scmp.eq.s32.totalorder %s4535_s16, 0 }
  0x31   : > { %s4361_s18 = smov [#allocation2]   ;;  %s4291_s26 = scalar_lea.hbm %s4517_s17, 16 }
  0x32   : > { %p4539_p2 = pnand %p3646_p0, %p764_p1  ;;  %s846_s22 = sshll.u32 %s4361_s18, 4  ;;  %s847_s22 = int_to_ptr.vmem [resolvable:$true] %s846_s22 }
  0x33   : > { %p4292_p6 = scmp.ne.s32.totalorder %s4517_s17, %s4291_s26  ;;  %p4298_p10 = scmp.lt.u32.totalorder %s4291_s26, %s4517_s17 }
  0x34   : > { %s5155_s0 = scalar_select %p4539_p2, 1, 0 }
  0x35   : > { %p4033_p4 = pneg %p4539_p2 }
  0x37   : > { %p4548_p5 = pnand %p5139_p3, %p4033_p4 }
  0x39   : > { %p4293_p7 = pneg %p4548_p5 }
  0x3b   : > { %p4294_p8 = pnand %p4293_p7, %p4292_p6 }
  0x3d   : > { %p4295_p9 = pneg %p4294_p8 }
  0x3f   : > { %p4300_p11 = pnand %p4298_p10, %p4295_p9 }
  0x41   : > { %4303 = shalt.err (!%p4300_p11)
}
  0x42   : > { %s4304_s28 = scalar_lea.vmem %s847_s22, 16  ;;  %s4311_s1 = scalar_lea.vmem %s847_s22, 32 }
  0x43   : > { %p4305_p12 = scmp.ne.s32.totalorder %s847_s22, %s4304_s28  ;;  %p4312_p1 = scmp.lt.s32.totalorder %s847_s22, %s847_s22 }
  0x44   : > { %p4313_p4 = scmp.lt.s32.totalorder %s4311_s1, %s4304_s28 }
  0x45   : > { %p4307_p13 = pnand %p4305_p12, %p4293_p7 }
  0x46   : > { %p4314_p3 = por %p4313_p4, %p4312_p1 }
  0x47   : > { %p4308_p0 = pneg %p4307_p13 }
  0x49   : > { %p4315_p2 = pnand %p4314_p3, %p4308_p0 }
  0x4b   : > { %4318 = shalt.err (!%p4315_p2)
}
  0x4c   : > { %4036 = dma.hbm_to_vmem [thread:$0]  (!%p4548_p5), %s4517_s17, 16, %s847_s22, [#allocation3]  }
  0x4d   : > { %p5157_p6 = scmp.ne.s32.totalorder %s5155_s0, 0 }
  0x4e   : > { %p5158_p8 = scmp.eq.s32.totalorder (!%p5157_p6), %s4535_s16, 0 }
  0x4f   : > { %896 = sbr.rel (%p5157_p6) target bundleno = 4929 (0x1341), region = 136 }
  0x56   : > { %4324 = dma.done.wait (%p5158_p8), [#allocation3], 16   ;;  %p5159_p9 = pmov %p5158_p8 }
  0x57   : > { %p995_p7 = scmp.lt.s32.totalorder %s4535_s16, 1  ;;  %v4362_v0 = vmov 0   ;;  %vm1167_vm0 = vcmask 523264   ;;  %v4090_v6 = vld [vmem:[%s4402_s25 + $0x4] ss:$12 sps:$4 sm:$0xff]   ;;  %v1037_v53 = vlaneseq  ;;  %s4363_s18 = smov 64  }
  0x58   : > { %4326 = vsyncadd (%p5159_p9), [#allocation3], 4294967280  ;;  %1203 = vmatprep.mubr.bf16.mxu1 %v4362_v0  ;;  %1381 = vmatprep.mubr.bf16.mxu0 %v4362_v0  ;;  %v4092_v7 = vld [vmem:[%s4402_s25] ss:$12 sps:$4 sm:$0xff]   ;;  %v4093_v9 = vld [vmem:[%s4462_s4 + $0x4] ss:$12 sps:$4 sm:$0xff]  }
  0x59   : > { %s5179_s16 = smov (!%p995_p7, %s4535_s16), 1  ;;  %v4095_v10 = vld [vmem:[%s4462_s4] ss:$12 sps:$4 sm:$0xff]   ;;  %1171 = vmatprep.subr.bf16.mxu1 %v4090_v6  ;;  %v4096_v11 = vld [vmem:[%s4402_s25 + $0x1c] ss:$12 sps:$4 sm:$0xff]   ;;  %1349 = vmatprep.subr.bf16.mxu0 %v4093_v9  ;;  %v4623_v56 = vshrl.u32 %v1037_v53, 7 }
  0x5a   : > { %s3812_s2 = sshll.u32 %s5179_s16, 4  ;;  %s5141_s7 = sshll.u32 %s5179_s16, 3  ;;  %v4098_v12 = vld [vmem:[%s4402_s25 + $0x18] ss:$12 sps:$4 sm:$0xff]   ;;  %1172 = vmatpush1.bf16.msra.mxu1 %v4092_v7  ;;  %v4099_v13 = vld [vmem:[%s4462_s4 + $0x1c] ss:$12 sps:$4 sm:$0xff]   ;;  %1350 = vmatpush1.bf16.msra.mxu0 %v4095_v10 }
  0x5b   : > { %s4577_s10 = scalar_lea.vmem %s4377_s5, %s3812_s2  ;;  %s4582_s11 = scalar_lea.vmem %s4382_s9, %s5141_s7  ;;  %v4101_v14 = vld [vmem:[%s4462_s4 + $0x18] ss:$12 sps:$4 sm:$0xff]   ;;  %1173 = vmatprep.subr.bf16.mxu1 %v4096_v11  ;;  %1351 = vmatprep.subr.bf16.mxu0 %v4099_v13  ;;  %v4102_v15 = vld [vmem:[%s4402_s25 + $0x34] ss:$12 sps:$4 sm:$0xff]   ;;  %v4104_v16 = vld [vmem:[%s4402_s25 + $0x30] ss:$12 sps:$4 sm:$0xff]  }
  0x5c   : > { %v1027_v1 = vld [vmem:[%s4577_s10] sm:$0xff]  ;;  %v1028_v3 = vld [vmem:[%s4577_s10 + $0x8] sm:$0xff]  ;;  %s1006_s0 = scalar_lea.vmem %s4387_s13, %s5179_s16  ;;  %v4107_v18 = vld [vmem:[%s4462_s4 + $0x30] ss:$12 sps:$4 sm:$0xff]   ;;  %v4626_v62 = vsub.s32 0, %v4623_v56  ;;  %vm4365_vm1 = vmmov 0  }
  0x5d   : > { %v1029_v2 = vld [vmem:[%s4582_s11] sm:$0xff]  ;;  %v1431_v4 = vsel %vm1167_vm0, %v1027_v1, 0.0  ;;  %v1434_v8 = vsel %vm1167_vm0, %v1028_v3, 0.0  ;;  %v4108_v19 = vld [vmem:[%s4402_s25 + $0x4c] ss:$12 sps:$4 sm:$0xff]   ;;  %vm1735_vm8 = vcmask 261120  }
  0x5e   : > { %v1483_v5 = vsel %vm1167_vm0, %v1029_v2, 0.0  ;;  %1432 = vadd.xlane.f32.xlu0 %v1431_v4  ;;  %v4105_v17 = vld [vmem:[%s4462_s4 + $0x34] ss:$12 sps:$4 sm:$0xff]   ;;  %1174 = vmatpush1.bf16.msra.mxu1 %v4098_v12  ;;  %v4111_v21 = vld [vmem:[%s4462_s4 + $0x4c] ss:$12 sps:$4 sm:$0xff]   ;;  %s4367_s22 = smov 32  }
  0x5f   : > { %1484 = vadd.xlane.f32.xlu1 %v1483_v5  ;;  %1352 = vmatpush1.bf16.msra.mxu0 %v4101_v14  ;;  %v4110_v20 = vld [vmem:[%s4402_s25 + $0x48] ss:$12 sps:$4 sm:$0xff]   ;;  %v1030_v22 = vld [vmem:[%s1006_s0] sm:$0x1]  ;;  %s4368_s23 = smov 96   ;;  %s5164_s26 = sld [smem:[#allocation13_spill]] }
  0x60   : > { %1175 = vmatprep.subr.bf16.mxu1 %v4102_v15  ;;  %1353 = vmatprep.subr.bf16.mxu0 %v4105_v17  ;;  %v4113_v23 = vld [vmem:[%s4462_s4 + $0x48] ss:$12 sps:$4 sm:$0xff]   ;;  %v3663_v24 = vmul.f32 -1.442695, %v1030_v22  ;;  %v1086_v7 = vld [vmem:[%s4407_s29] sm:$0x7] }
  0x61   : > { %v1155_v9 = vrot.slane %v1086_v7, %v4626_v62  ;;  %v4114_v13 = vld [vmem:[%s4402_s25 + $0x8] ss:$12 sps:$4 sm:$0xff]   ;;  %v4364_v15 = vmov 0.0   ;;  %s5165_s28 = sld [smem:[#allocation6_spill]]  ;;  %s5166_s1 = sld [smem:[#allocation5_spill]]  ;;  %vm2088_vm9 = vcmask 1043456  }
  0x62   : > { %1435 = vadd.xlane.f32.xlu0 %v1434_v8  ;;  %1176 = vmatpush1.bf16.msra.mxu1 %v4104_v16  ;;  %4210 = vpow2.f32 %v3663_v24  ;;  %v4115_v16 = vld [vmem:[%s4402_s25 + $0x20] ss:$12 sps:$4 sm:$0xff]   ;;  %s4028_s0 = smul.u32 24, %s5179_s16  ;;  %vm2044_vm10 = vcmask 195584  }
  0x63   : > { %1354 = vmatpush1.bf16.msra.mxu0 %v4107_v18  ;;  %1177 = vmatprep.subr.bf16.mxu1 %v4108_v19  ;;  %v4125_v18 = vld [vmem:[%s4412_s3] ss:$8 sps:$4 sm:$0xff]   ;;  %v4127_v19 = vld [vmem:[%s4412_s3 + $0x4] ss:$8 sps:$4 sm:$0xff]  }
  0x64   : > { %1355 = vmatprep.subr.bf16.mxu0 %v4111_v21  ;;  %v4133_v21 = vld [vmem:[%s4412_s3 + $0x14] ss:$8 sps:$4 sm:$0xff]   ;;  %v4139_v24 = vld [vmem:[%s4412_s3 + $0x24] ss:$8 sps:$4 sm:$0xff]  }
  0x66   : > { %1178 = vmatpush1.bf16.msra.mxu1 %v4110_v20 }
  0x67   : > { %1356 = vmatpush1.bf16.msra.mxu0 %v4113_v23  ;;  %3910 = vmatprep.subr.bf16.mxu1 %v4364_v15  ;;  %v4131_v23 = vld [vmem:[%s4412_s3 + $0x10] ss:$8 sps:$4 sm:$0xff]   ;;  %s1011_s7 = scalar_lea.vmem %s5166_s1, %s4028_s0  ;;  %s5172_s1 = sld [smem:[#allocation10_spill]] }
  0x68   : > { %1581 = vmatprep.subr.bf16.mxu0 %v4127_v19 }
  0x6c   : > { %v4211_v25 = vpop.eup %4210 }
  0x6d   : > { %v1065_v26 = vadd.f32 1.0, %v4211_v25  ;;  %v4117_v25 = vld [vmem:[%s4402_s25 + $0x50] ss:$12 sps:$4 sm:$0xff]  }
  0x6f   : > { %4212 = vrcp.f32 %v1065_v26  ;;  %v4137_v26 = vld [vmem:[%s4412_s3 + $0x20] ss:$8 sps:$4 sm:$0xff]  }
  0x79   : > { %v4213_v27 = vpop.eup %4212 }
  0x7a   : > { %v1068_v28 = vmul.f32 %v4213_v27, %v1030_v22  ;;  %v4116_v22 = vld [vmem:[%s4402_s25 + $0x38] ss:$12 sps:$4 sm:$0xff]   ;;  %v4145_v27 = vld [vmem:[%s4412_s3 + $0x34] ss:$8 sps:$4 sm:$0xff]  }
  0x7c   : > { %v4608_v29 = vpack.c.bf16 %v1068_v28, %v1068_v28  ;;  %v4118_v28 = vld [vmem:[%s4462_s4 + $0x8] ss:$12 sps:$4 sm:$0xff]  }
  0x7e   : > { %3676 = vmatmul.mubr.msk.bf16.vlgmr.msra.gmra.mrb[0].mxu1 %vm1167_vm0, %v4608_v29  ;;  %3690 = vmatmul.mubr.msk.bf16.vlgmr.msra.gmra.mrb[0].mxu0 %vm1167_vm0, %v4608_v29 }
  0x7f   : > { %1613 = vmatprep.mubr.bf16.mxu0 %v4362_v0  ;;  %3911 = vmatpush3.bf16.msra.mxu1 %v4114_v13 }
  0x80   : > { %3918 = vmatprep.mubr.msk.bf16.mxu1 %vm4365_vm1, %v4364_v15  ;;  %3912 = vmatprep.subr.bf16.mxu1 %v4364_v15 }
  0x81   : > { %1582 = vmatpush1.bf16.msra.mxu0 %v4125_v18 }
  0x82   : > { %1583 = vmatprep.subr.bf16.mxu0 %v4133_v21  ;;  %v4366_v21 = vmov 1.0|1.0  }
  0x83   : > { %3913 = vmatpush3.bf16.msra.mxu1 %v4115_v16  ;;  %v1043_v16 = vand.u32 127, %v1037_v53 }
  0x84   : > { %3914 = vmatprep.subr.bf16.mxu1 %v4364_v15 }
  0x85   : > { %1584 = vmatpush1.bf16.msra.mxu0 %v4131_v23 }
  0x86   : > { %1585 = vmatprep.subr.bf16.mxu0 %v4139_v24  ;;  %v1633_v24 = vld [vmem:[%s4477_s27] sm:$0x3] }
  0x87   : > { %3915 = vmatpush3.bf16.msra.mxu1 %v4116_v22 }
  0x88   : > { %3916 = vmatprep.subr.bf16.mxu1 %v4364_v15 }
  0x89   : > { %1586 = vmatpush1.bf16.msra.mxu0 %v4137_v26  ;;  %v1638_v26 = vrot.slane %v1633_v24, %v4626_v62 }
  0x8a   : > { %1587 = vmatprep.subr.bf16.mxu0 %v4145_v27  ;;  %v4746_v27 = vsub.s32 1, %v4623_v56 }
  0x8b   : > { %3917 = vmatpush3.bf16.msra.mxu1 %v4117_v25  ;;  %v1523_v25 = vld [vmem:[%s4417_s8] sm:$0x3] }
  0x8c   : > { %3922 = vmatprep.subr.bf16.mxu1 %v4364_v15 }
  0x8e   : > { %3919 = vmatmul.mubr.msk.bf16.vlgmr.msra.gmra.mrb[4].mxu1 %vm1167_vm0, %v4608_v29 }
  0x8f   : > { %3923 = vmatpush3.bf16.msra.mxu1 %v4118_v28  ;;  %3930 = vmatprep.mubr.msk.bf16.mxu1 %vm4365_vm1, %v4364_v15  ;;  %v1528_v28 = vrot.slane %v1523_v25, %v4626_v62 }
  0x90   : > { %3924 = vmatprep.subr.bf16.mxu1 %v4364_v15 }
  0xeb   : > { %v1433_v30 = vpop.xlane.xlu0 %1432 }
  0xec   : > { %v1485_v31 = vpop.xlane.xlu1 %1484  ;;  %v1438_v32 = vmul.f32 0.015625, %v1433_v30  ;;  %v4143_v30 = vld [vmem:[%s4412_s3 + $0x30] ss:$8 sps:$4 sm:$0xff]  }
  0xed   : > { %v1486_v33 = vmul.f32 0.015625, %v1485_v31  ;;  %v4119_v31 = vld [vmem:[%s4462_s4 + $0x20] ss:$12 sps:$4 sm:$0xff]   ;;  %1588 = vmatpush1.bf16.msra.mxu0 %v4143_v30 }
  0xee   : > { %v1440_v34 = vsub.f32 %v1027_v1, %v1438_v32  ;;  %v4629_v1 = vld [vmem:[%s4467_s12] sm:$0x7]  ;;  %3925 = vmatpush3.bf16.msra.mxu1 %v4119_v31  ;;  %v4120_v32 = vld [vmem:[%s4462_s4 + $0x38] ss:$12 sps:$4 sm:$0xff]   ;;  %v1642_v31 = vrot.slane %v1633_v24, %v4746_v27 }
  0xef   : > { %v1487_v35 = vsub.f32 %v1029_v2, %v1486_v33  ;;  %v1436_v36 = vpop.xlane.xlu0 %1435  ;;  %3926 = vmatprep.subr.bf16.mxu1 %v4364_v15  ;;  %v4121_v33 = vld [vmem:[%s4462_s4 + $0x50] ss:$12 sps:$4 sm:$0xff]  }
  0xf0   : > { %v1439_v37 = vmul.f32 0.015625, %v1436_v36  ;;  %v1442_v38 = vmul.f32 %v1440_v34, %v1440_v34  ;;  %v4130_v36 = vld [vmem:[%s4472_s20 + $0x14] ss:$8 sps:$4 sm:$0xff]  }
  0xf1   : > { %v1488_v39 = vmul.f32 %v1487_v35, %v1487_v35 }
  0xf2   : > { %v1441_v40 = vsub.f32 %v1028_v3, %v1439_v37  ;;  %v1444_v41 = vsel %vm1167_vm0, %v1442_v38, 0.0  ;;  %v1337_v3 = vrot.slane %v4629_v1, %v4626_v62  ;;  %3927 = vmatpush3.bf16.msra.mxu1 %v4120_v32  ;;  %v4128_v37 = vld [vmem:[%s4472_s20 + $0x10] ss:$8 sps:$4 sm:$0xff]   ;;  %v4136_v38 = vld [vmem:[%s4472_s20 + $0x24] ss:$8 sps:$4 sm:$0xff]   ;;  %v1532_v32 = vrot.slane %v1523_v25, %v4746_v27 }
  0xf3   : > { %1445 = vadd.xlane.f32.xlu1 %v1444_v41  ;;  %v1489_v42 = vsel %vm1167_vm0, %v1488_v39, 0.0  ;;  %3928 = vmatprep.subr.bf16.mxu1 %v4364_v15  ;;  %v4134_v39 = vld [vmem:[%s4472_s20 + $0x20] ss:$8 sps:$4 sm:$0xff]   ;;  %v4140_v41 = vld [vmem:[%s4472_s20 + $0x30] ss:$8 sps:$4 sm:$0xff]  }
  0xf4   : > { %v1443_v43 = vmul.f32 %v1441_v40, %v1441_v40 }
  0xf6   : > { %v1447_v44 = vsel %vm1167_vm0, %v1443_v43, 0.0  ;;  %3929 = vmatpush3.bf16.msra.mxu1 %v4121_v33 }
  0xf7   : > { %1490 = vadd.xlane.f32.xlu1 %v1489_v42  ;;  %1448 = vadd.xlane.f32.xlu0 %v1447_v44 }
  0xf9   : > { %3931 = vmatmul.mubr.msk.bf16.vlgmr.msra.gmra.mrb[8].mxu1 %vm1167_vm0, %v4608_v29 }
  0xfa   : > { %1723 = vmatprep.mubr.bf16.mxu1 %v4362_v0 }
 0x151   : > { %v1205_v45 = vpop.f32.mrb[0].mxu1  ;;  %v1383_v46 = vpop.f32.mrb[0].mxu0 }
 0x152   : > { %v4618_v47 = vpop.f32.mrb[1].mxu1  ;;  %v4620_v48 = vpop.f32.mrb[1].mxu0  ;;  %v4633_v4 = vadd.f32 %v1383_v46, %v1337_v3  ;;  %v4642_v14 = vadd.f32 %v1205_v45, %v1155_v9 }
 0x153   : > { %v1209_v49 = vpop.f32.mrb[2].mxu1  ;;  %v1387_v50 = vpop.f32.mrb[2].mxu0 }
 0x154   : > { %v1210_v51 = vpop.f32.mrb[3].mxu1  ;;  %v1388_v52 = vpop.f32.mrb[3].mxu0  ;;  %v1508_v8 = vrot.slane %v4633_v4, %v4626_v62  ;;  %v1475_v20 = vrot.slane %v4642_v14, %v4626_v62  ;;  %v1482_v42 = vadd.f32 1.0, %v4633_v4  ;;  %v1430_v29 = vadd.f32 1.0, %v4642_v14 }
 0x155   : > { %v1039_v14 = vadd.s32 8, %v4623_v56 }
 0x156   : > { %v1499_v45 = vrot.slane %v1482_v42, %v4626_v62  ;;  %v1461_v50 = vrot.slane %v1430_v29, %v4626_v62 }
 0x157   : > { %v1045_v18 = vxor.u32 1, %v1039_v14 }
 0x159   : > { %vm1049_vm3 = vcmp.eq.s32.totalorder %v1045_v18, %v1043_v16 }
 0x180   : > { %v1446_v54 = vpop.xlane.xlu1 %1445 }
 0x181   : > { %v1450_v55 = vmul.f32 0.015625, %v1446_v54 }
 0x183   : > { %v1452_v57 = vadd.f32 1e-06, %v1450_v55 }
 0x184   : > { %v1491_v58 = vpop.xlane.xlu1 %1490  ;;  %v1449_v59 = vpop.xlane.xlu0 %1448 }
 0x185   : > { %4214 = vrsqrt.f32 %v1452_v57  ;;  %v1492_v60 = vmul.f32 0.015625, %v1491_v58  ;;  %v1451_v61 = vmul.f32 0.015625, %v1449_v59 }
 0x187   : > { %v1453_v63 = vadd.f32 1e-06, %v1451_v61  ;;  %v1493_v2 = vadd.f32 1e-06, %v1492_v60 }
 0x189   : > { %4216 = vrsqrt.f32 %v1453_v63  ;;  %v4695_v63 = vpop.f32.mrb[4].mxu1 }
 0x18a   : > { %4218 = vrsqrt.f32 %v1493_v2  ;;  %v3920_v2 = vpop.f32.mrb[5].mxu1 }
 0x18b   : > { %v1249_v3 = vpop.f32.mrb[6].mxu1 }
 0x18c   : > { %v3921_v4 = vpop.f32.mrb[7].mxu1 }
 0x18f   : > { %v4215_v5 = vpop.eup %4214 }
 0x190   : > { %v1456_v6 = vmul.f32 %v4215_v5, %v1440_v34  ;;  %v4124_v34 = vld [vmem:[%s4472_s20 + $0x4] ss:$8 sps:$4 sm:$0xff]   ;;  %v1162_v5 = vsub.s32 2, %v4623_v56 }
 0x191   : > { %1691 = vmatprep.subr.bf16.mxu1 %v4124_v34 }
 0x192   : > { %1464 = vrot.lane.b32.xlu0 %v1456_v6, %s4363_s18  ;;  %v1345_v7 = vrot.slane %v4629_v1, %v1162_v5  ;;  %v1040_v1 = vadd.s32 16, %v4623_v56 }
 0x193   : > { %v4217_v10 = vpop.eup %4216 }
 0x194   : > { %v1457_v11 = vmul.f32 %v4217_v10, %v1441_v40  ;;  %v4219_v12 = vpop.eup %4218  ;;  %v4142_v40 = vld [vmem:[%s4472_s20 + $0x34] ss:$8 sps:$4 sm:$0xff]   ;;  %v1046_v53 = vxor.u32 1, %v1040_v1 }
 0x195   : > { %v1495_v17 = vmul.f32 %v4219_v12, %v1487_v35  ;;  %v4122_v35 = vld [vmem:[%s4472_s20] ss:$8 sps:$4 sm:$0xff]  }
 0x196   : > { %1510 = vrot.lane.b32.xlu0 %v1508_v8, %s4363_s18  ;;  %1466 = vrot.lane.b32.xlu1 %v1457_v11, %s4363_s18  ;;  %vm1050_vm5 = vcmp.eq.s32.totalorder %v1046_v53, %v1043_v16 }
 0x197   : > { %1692 = vmatpush1.bf16.msra.mxu1 %v4122_v35 }
 0x198   : > { %1693 = vmatprep.subr.bf16.mxu1 %v4130_v36 }
 0x19a   : > { %1501 = vrot.lane.b32.xlu1 %v1495_v17, %s4363_s18  ;;  %v1044_v17 = vxor.u32 1, %v4623_v56 }
 0x19b   : > { %1694 = vmatpush1.bf16.msra.mxu1 %v4128_v37 }
 0x19c   : > { %1695 = vmatprep.subr.bf16.mxu1 %v4136_v38  ;;  %vm1048_vm2 = vcmp.eq.s32.totalorder %v1044_v17, %v1043_v16 }
 0x19d   : > { %vm4709_vm4 = vmpackc.low %vm1049_vm3, %vm1048_vm2 }
 0x19e   : > { %1477 = vrot.lane.b32.xlu1 %v1475_v20, %s4363_s18  ;;  %v1041_v20 = vadd.s32 24, %v4623_v56  ;;  %3934 = vmatprep.subr.msk.bf16.mxu0 %vm4709_vm4, %v4366_v21 }
 0x19f   : > { %1696 = vmatpush1.bf16.msra.mxu1 %v4134_v39 }
 0x1a0   : > { %1697 = vmatprep.subr.bf16.mxu1 %v4142_v40  ;;  %v1047_v22 = vxor.u32 1, %v1041_v20 }
 0x1a2   : > { %vm1051_vm6 = vcmp.eq.s32.totalorder %v1047_v22, %v1043_v16 }
 0x1a3   : > { %1698 = vmatpush1.bf16.msra.mxu1 %v4140_v41  ;;  %vm4726_vm7 = vmpackc.low %vm1051_vm6, %vm1050_vm5 }
 0x1a4   : > { %3942 = vmatprep.subr.msk.bf16.mxu1 %vm4709_vm4, %v4366_v21 }
 0x1cc   : > { %v1424_v9 = vpop.f32.mrb[8].mxu1 }
 0x1cd   : > { %v4703_v10 = vadd.f32 %v1424_v9, %v1345_v7  ;;  %v3932_v11 = vpop.f32.mrb[9].mxu1 }
 0x1ce   : > { %v1427_v12 = vpop.f32.mrb[10].mxu1 }
 0x1cf   : > { %v3933_v13 = vpop.f32.mrb[11].mxu1 }
 0x204   : > { %v1465_v43 = vpop.permute.xlu0 %1464 }
 0x205   : > { %v1470_v52 = vmul.f32 %v1465_v43, %v1461_v50 }
 0x208   : > { %v1467_v44 = vpop.permute.xlu1 %1466  ;;  %v1511_v49 = vpop.permute.xlu0 %1510 }
 0x209   : > { %v1471_v54 = vmul.f32 %v1467_v44, %v1461_v50 }
 0x20c   : > { %v1502_v46 = vpop.permute.xlu1 %1501 }
 0x20d   : > { %v1504_v51 = vmul.f32 %v1502_v46, %v1499_v45 }
 0x20f   : > { %v1513_v55 = vadd.f32 %v1511_v49, %v1504_v51 }
 0x210   : > { %v1478_v57 = vpop.permute.xlu1 %1477 }
 0x211   : > { %v1632_v58 = vpack.c.bf16 %v1513_v55, %v1513_v55  ;;  %v1480_v59 = vadd.f32 %v1478_v57, %v1470_v52  ;;  %v1481_v60 = vadd.f32 %v1478_v57, %v1471_v54 }
 0x213   : > { %v1522_v61 = vpack.c.bf16 %v1481_v60, %v1480_v59  ;;  %1646 = vrot.lane.b32.xlu0 %v1632_v58, %s4363_s18  ;;  %v4778_v59 = vld [vmem:[%s4487_s30] ss:$0 sm:$0xff] }
 0x214   : > { %v4783_v60 = vld [vmem:[%s4427_s19] ss:$0 sm:$0xff] }
 0x215   : > { %1536 = vrot.lane.b32.xlu1 %v1522_v61, %s4363_s18 }
 0x285   : > { %v1647_v6 = vpop.permute.xlu0 %1646 }
 0x286   : > { %3709 = vmatmul.mubr.msk.bf16.vlgmr.msra.gmra.mrb[12].mxu1 %vm1167_vm0, %v1647_v6 }
 0x287   : > { %v1537_v8 = vpop.permute.xlu1 %1536  ;;  %3943 = vmatpush3.bf16.msk.msra.mxu1 %vm4709_vm4, %v4366_v21 }
 0x288   : > { %3700 = vmatmul.mubr.msk.bf16.vlgmr.msra.gmra.mrb[4].mxu0 %vm1167_vm0, %v1537_v8  ;;  %3944 = vmatprep.subr.msk.bf16.mxu1 %vm4726_vm7, %v4366_v21 }
 0x289   : > { %3935 = vmatpush3.bf16.msk.msra.mxu0 %vm4709_vm4, %v4366_v21 }
 0x28a   : > { %3936 = vmatprep.subr.msk.bf16.mxu0 %vm4726_vm7, %v4366_v21 }
 0x28b   : > { %3945 = vmatpush3.bf16.msk.msra.mxu1 %vm4726_vm7, %v4366_v21 }
 0x28d   : > { %3937 = vmatpush3.bf16.msk.msra.mxu0 %vm4726_vm7, %v4366_v21 }
 0x359   : > { %v1725_v30 = vpop.f32.mrb[12].mxu1 }
 0x35a   : > { %v4751_v33 = vadd.f32 %v1725_v30, %v1638_v26  ;;  %v1727_v34 = vpop.f32.mrb[13].mxu1 }
 0x35b   : > { %v1615_v35 = vpop.f32.mrb[4].mxu0  ;;  %v1729_v36 = vpop.f32.mrb[14].mxu1  ;;  %v1728_v41 = vadd.f32 %v1727_v34, %v1642_v31 }
 0x35c   : > { %v4753_v37 = vadd.f32 %v1615_v35, %v1528_v28  ;;  %v1617_v38 = vpop.f32.mrb[5].mxu0  ;;  %v1730_v39 = vpop.f32.mrb[15].mxu1  ;;  %v4757_v40 = vmul.f32 %v4751_v33, %v4751_v33 }
 0x35d   : > { %v1618_v42 = vadd.f32 %v1617_v38, %v1532_v32  ;;  %v1619_v43 = vpop.f32.mrb[6].mxu0 }
 0x35e   : > { %v4759_v44 = vadd.f32 %v1619_v43, %v1528_v28  ;;  %v1621_v29 = vpop.f32.mrb[7].mxu0  ;;  %1810 = vrot.lane.b32.xlu0 %v4757_v40, %s4363_s18  ;;  %v1733_v45 = vmul.f32 %v4753_v37, %v4753_v37  ;;  %v1794_v2 = vsel %vm1735_vm8, %v4757_v40, 0.0 }
 0x35f   : > { %v4765_v46 = vpack.c.bf16 %v1618_v42, %v1728_v41  ;;  %v4767_v49 = vadd.f32 %v1621_v29, %v1532_v32 }
 0x360   : > { %1762 = vrot.lane.b32.xlu1 %v1733_v45, %s4363_s18  ;;  %v1734_v50 = vmul.f32 %v4759_v44, %v4759_v44  ;;  %v1736_v61 = vsel %vm1735_vm8, %v1733_v45, 0.0 }
 0x361   : > { %3958 = vmatprep.subr.bf16.mxu1 %v4765_v46 }
 0x362   : > { %v1739_v3 = vsel %vm1735_vm8, %v1734_v50, 0.0 }
 0x364   : > { %1764 = vrot.lane.b32.xlu1 %v1734_v50, %s4363_s18 }
 0x3d0   : > { %v1811_v51 = vpop.permute.xlu0 %1810 }
 0x3d1   : > { %v1813_v52 = vsel %vm1735_vm8, %v1811_v51, 0.0  ;;  %v4809_v51 = vld [vmem:[%s4422_s14] ss:$0 sm:$0xff] }
 0x3d2   : > { %v1763_v54 = vpop.permute.xlu1 %1762  ;;  %1814 = vadd.xlane.f32.xlu1 %v1813_v52 }
 0x3d3   : > { %v1768_v55 = vsel %vm1735_vm8, %v1763_v54, 0.0 }
 0x3d4   : > { %1769 = vadd.xlane.f32.xlu0 %v1768_v55 }
 0x3d6   : > { %v1765_v57 = vpop.permute.xlu1 %1764 }
 0x3d7   : > { %v1771_v58 = vsel %vm1735_vm8, %v1765_v57, 0.0 }
 0x3d8   : > { %1772 = vadd.xlane.f32.xlu0 %v1771_v58 }
 0x3e3   : > { %1825 = vrot.lane.b32.xlu1 %v4778_v59, %s4363_s18 }
 0x3ee   : > { %1787 = vrot.lane.b32.xlu0 %v4783_v60, %s4363_s18 }
 0x407   : > { %1737 = vadd.xlane.f32.xlu1 %v1736_v61 }
 0x40d   : > { %1795 = vadd.xlane.f32.xlu0 %v1794_v2 }
 0x411   : > { %1740 = vadd.xlane.f32.xlu0 %v1739_v3 }
 0x45f   : > { %v1815_v4 = vpop.xlane.xlu1 %1814 }
 0x460   : > { %v1816_v6 = vmul.f32 0.03125, %v1815_v4 }
 0x461   : > { %v1770_v7 = vpop.xlane.xlu0 %1769 }
 0x462   : > { %v1817_v8 = vadd.f32 1e-06, %v1816_v6  ;;  %v1774_v9 = vmul.f32 0.03125, %v1770_v7  ;;  %v4824_v7 = vpack.c.bf16 %v4767_v49, %v4767_v49  ;;  %v4838_v49 = vld [vmem:[%s1011_s7 + $0x10] sm:$0xff] }
 0x463   : > { %v1826_v1 = vpop.permute.xlu1 %1825 }
 0x464   : > { %4220 = vrsqrt.f32 %v1817_v8  ;;  %v1776_v11 = vadd.f32 1e-06, %v1774_v9  ;;  %v2090_v8 = vsel %vm2088_vm9, %v4824_v7, 0 }
 0x465   : > { %v1773_v12 = vpop.xlane.xlu0 %1772 }
 0x466   : > { %4222 = vrsqrt.f32 %v1776_v11  ;;  %v1775_v13 = vmul.f32 0.03125, %v1773_v12  ;;  %v4842_v11 = vld [vmem:[%s1011_s7] sm:$0xff] }
 0x468   : > { %v1777_v14 = vadd.f32 1e-06, %v1775_v13 }
 0x469   : > { %v1788_v20 = vpop.permute.xlu0 %1787 }
 0x46a   : > { %4224 = vrsqrt.f32 %v1777_v14  ;;  %v4846_v14 = vld [vmem:[%s1011_s7 + $0x8] sm:$0xff]  ;;  %s5167_s7 = sld [smem:[#allocation7_spill]] }
 0x46e   : > { %v4221_v16 = vpop.eup %4220 }
 0x46f   : > { %v1819_v17 = vmul.f32 %v4221_v16, %v4751_v33 }
 0x470   : > { %v4223_v18 = vpop.eup %4222 }
 0x471   : > { %v1780_v53 = vmul.f32 %v4223_v18, %v4753_v37  ;;  %v1828_v22 = vmul.f32 %v1826_v1, %v1819_v17 }
 0x473   : > { %v1790_v24 = vmul.f32 %v1788_v20, %v1780_v53 }
 0x474   : > { %v4225_v25 = vpop.eup %4224 }
 0x475   : > { %v1781_v26 = vmul.f32 %v4225_v25, %v4759_v44  ;;  %v1909_v28 = vpack.c.bf16 %v1790_v24, %v1828_v22 }
 0x477   : > { %v1791_v30 = vmul.f32 %v1788_v20, %v1781_v26  ;;  %1913 = vrot.lane.b32.xlu0 %v1909_v28, %s4363_s18 }
 0x479   : > { %v1910_v31 = vpack.c.bf16 %v1791_v30, %v1791_v30 }
 0x47b   : > { %1915 = vrot.lane.b32.xlu1 %v1910_v31, %s4363_s18  ;;  %1901 = vrot.lane.b32.xlu0 %v1791_v30, %s4363_s18 }
 0x47f   : > { %1897 = vrot.lane.b32.xlu1 %v1828_v22, %s4363_s18  ;;  %2204 = vrot.lane.b32.xlu0 %v4757_v40, %s4367_s22 }
 0x483   : > { %1899 = vrot.lane.b32.xlu1 %v1790_v24, %s4363_s18  ;;  %2140 = vrot.lane.b32.xlu0 %v1733_v45, %s4368_s23 }
 0x487   : > { %2165 = vrot.lane.b32.xlu1 %v1733_v45, %s4367_s22  ;;  %2142 = vrot.lane.b32.xlu0 %v1734_v50, %s4368_s23 }
 0x48b   : > { %2167 = vrot.lane.b32.xlu1 %v1734_v50, %s4367_s22 }
 0x48f   : > { %2190 = vrot.lane.b32.xlu1 %v4757_v40, %s4368_s23  ;;  %v4812_v40 = vld [vmem:[%s5164_s26] ss:$0 sm:$0xff]  ;;  %s1016_s26 = scalar_lea.vmem %s5165_s28, %s4028_s0  ;;  %s5169_s28 = sld [smem:[#allocation9_spill]] }
 0x490   : > { %v4840_v9 = vld [vmem:[%s1016_s26 + $0x10] sm:$0xff]  ;;  %v4844_v12 = vld [vmem:[%s1016_s26] sm:$0xff]  ;;  %v4850_v1 = vld [vmem:[%s1016_s26 + $0x8] sm:$0xff]  ;;  %s5173_s0 = sld [smem:[#allocation15_spill]]  ;;  %s5174_s26 = sld [smem:[#allocation16_spill]] }
 0x494   : > { %v1738_v32 = vpop.xlane.xlu1 %1737 }
 0x495   : > { %v1743_v34 = vmul.f32 0.03125, %v1738_v32 }
 0x497   : > { %v1745_v35 = vadd.f32 1e-06, %v1743_v34 }
 0x499   : > { %4226 = vrsqrt.f32 %v1745_v35 }
 0x49a   : > { %v1796_v36 = vpop.xlane.xlu0 %1795 }
 0x49b   : > { %v1797_v38 = vmul.f32 0.03125, %v1796_v36 }
 0x49d   : > { %v1798_v39 = vadd.f32 1e-06, %v1797_v38 }
 0x49e   : > { %v1741_v41 = vpop.xlane.xlu0 %1740 }
 0x49f   : > { %4228 = vrsqrt.f32 %v1798_v39  ;;  %v1744_v42 = vmul.f32 0.03125, %v1741_v41 }
 0x4a1   : > { %v1746_v43 = vadd.f32 1e-06, %v1744_v42 }
 0x4a3   : > { %4230 = vrsqrt.f32 %v1746_v43  ;;  %v4227_v29 = vpop.eup %4226 }
 0x4a4   : > { %v1749_v45 = vmul.f32 %v4227_v29, %v4753_v37 }
 0x4a6   : > { %v1757_v54 = vmul.f32 %v4809_v51, %v1749_v45 }
 0x4a8   : > { %v1830_v28 = vmul.f32 %v1757_v54, %v4846_v14 }
 0x4a9   : > { %v4229_v50 = vpop.eup %4228 }
 0x4aa   : > { %v1800_v52 = vmul.f32 %v4229_v50, %v4751_v33 }
 0x4ac   : > { %v1807_v55 = vmul.f32 %v4812_v40, %v1800_v52 }
 0x4ad   : > { %v4231_v57 = vpop.eup %4230 }
 0x4ae   : > { %v1750_v58 = vmul.f32 %v4231_v57, %v4759_v44  ;;  %v1832_v61 = vpack.c.bf16 %v1757_v54, %v1807_v55  ;;  %v1829_v20 = vmul.f32 %v1807_v55, %v4842_v11 }
 0x4b0   : > { %3938 = vmatprep.mubr.msk.bf16.mxu0 %vm1735_vm8, %v1832_v61  ;;  %v1758_v2 = vmul.f32 %v4809_v51, %v1750_v58 }
 0x4b2   : > { %v1833_v3 = vpack.c.bf16 %v1758_v2, %v1758_v2  ;;  %v1831_v16 = vmul.f32 %v1758_v2, %v4838_v49 }
 0x4b4   : > { %3939 = vmatmul.mubr.msk.bf16.vlgmr.msra.gmra.mrb[8].mxu0 %vm1735_vm8, %v1833_v3 }
 0x4e9   : > { %v1914_v4 = vpop.permute.xlu0 %1913 }
 0x4ea   : > { %3946 = vmatprep.mubr.msk.bf16.mxu1 %vm1735_vm8, %v1914_v4 }
 0x4ed   : > { %v1916_v6 = vpop.permute.xlu1 %1915  ;;  %v1902_v35 = vpop.permute.xlu0 %1901 }
 0x4ee   : > { %3947 = vmatmul.mubr.msk.bf16.vlgmr.msra.gmra.mrb[16].mxu1 %vm1735_vm8, %v1916_v6  ;;  %v1908_v45 = vmul.f32 %v1902_v35, %v4838_v49 }
 0x4ef   : > { %3959 = vmatpush3.bf16.msra.mxu1 %v4765_v46 }
 0x4f0   : > { %4024 = vmatprep.subr.msk.bf16.mxu1 %vm2088_vm9, %v4824_v7 }
 0x4f1   : > { %v1898_v34 = vpop.permute.xlu1 %1897 }
 0x4f2   : > { %v1906_v50 = vmul.f32 %v1898_v34, %v4842_v11 }
 0x4f3   : > { %3961 = vmatpush3.bf16.msra.mxu1 %v2090_v8 }
 0x4f4   : > { %3966 = vmatprep.subr.msk.bf16.mxu1 %vm4709_vm4, %v4366_v21 }
 0x4f5   : > { %v1900_v38 = vpop.permute.xlu1 %1899 }
 0x4f6   : > { %v1907_v52 = vmul.f32 %v1900_v38, %v4846_v14 }
 0x587   : > { %v3940_v13 = vpop.f32.mrb[8].mxu0 }
 0x588   : > { %v1890_v17 = vmul.f32 %v3940_v13, %v4840_v9  ;;  %v1874_v18 = vpop.f32.mrb[9].mxu0  ;;  %v2205_v13 = vpop.permute.xlu0 %2204 }
 0x589   : > { %v1888_v53 = vmul.f32 %v1874_v18, %v4844_v12  ;;  %v3941_v22 = vpop.f32.mrb[10].mxu0 }
 0x58a   : > { %v1893_v24 = vadd.f32 %v1890_v17, %v1831_v16  ;;  %v1877_v25 = vpop.f32.mrb[11].mxu0 }
 0x58b   : > { %v1891_v26 = vadd.f32 %v1888_v53, %v1829_v20  ;;  %v1889_v30 = vmul.f32 %v1877_v25, %v4850_v1 }
 0x58c   : > { %v1978_v6 = vpack.c.bf16 %v1893_v24, %v1893_v24 }
 0x58d   : > { %v1892_v31 = vadd.f32 %v1889_v30, %v1830_v28  ;;  %v2166_v28 = vpop.permute.xlu1 %2165  ;;  %v2207_v30 = vsel %vm1735_vm8, %v2205_v13, 0.0 }
 0x58f   : > { %v1977_v32 = vpack.c.bf16 %v1892_v31, %v1891_v26  ;;  %v2141_v26 = vpop.permute.xlu0 %2140 }
 0x591   : > { %3954 = vmatprep.mubr.msk.bf16.mxu0 %vm1735_vm8, %v1977_v32  ;;  %v2146_v32 = vsel %vm1735_vm8, %v2141_v26, 0.0  ;;  %v2168_v35 = vpop.permute.xlu1 %2167 }
 0x593   : > { %v2143_v34 = vpop.permute.xlu0 %2142 }
 0x594   : > { %v2149_v38 = vsel %vm1735_vm8, %v2143_v34, 0.0 }
 0x5c1   : > { %v3948_v36 = vpop.f32.mrb[16].mxu1 }
 0x5c2   : > { %v1957_v39 = vpop.f32.mrb[17].mxu1  ;;  %v1973_v41 = vmul.f32 %v3948_v36, %v4840_v9  ;;  %v2171_v36 = vsel %vm1735_vm8, %v2166_v28, 0.0 }
 0x5c3   : > { %v1971_v42 = vmul.f32 %v1957_v39, %v4844_v12  ;;  %v3949_v43 = vpop.f32.mrb[18].mxu1  ;;  %v2174_v39 = vsel %vm1735_vm8, %v2168_v35, 0.0 }
 0x5c4   : > { %v1960_v29 = vpop.f32.mrb[19].mxu1  ;;  %v1976_v55 = vadd.f32 %v1973_v41, %v1908_v45  ;;  %v2191_v41 = vpop.permute.xlu1 %2190 }
 0x5c5   : > { %v1972_v54 = vmul.f32 %v1960_v29, %v4850_v1  ;;  %v1974_v57 = vadd.f32 %v1971_v42, %v1906_v50  ;;  %v2193_v42 = vsel %vm1735_vm8, %v2191_v41, 0.0 }
 0x5c6   : > { %v1980_v2 = vpack.c.bf16 %v1976_v55, %v1976_v55 }
 0x5c7   : > { %v1975_v58 = vadd.f32 %v1972_v54, %v1907_v52 }
 0x5c8   : > { %v1991_v4 = vsel %vm1735_vm8, %v1980_v2, 0 }
 0x5c9   : > { %v1979_v61 = vpack.c.bf16 %v1975_v58, %v1974_v57 }
 0x5cb   : > { %4022 = vmatprep.subr.msk.bf16.mxu0 %vm1735_vm8, %v1979_v61  ;;  %v1988_v3 = vsel %vm1735_vm8, %v1979_v61, 0 }
 0x5cc   : > { %3951 = vmatpush3.bf16.xpose.msra.mxu0 %v1988_v3 }
 0x5cd   : > { %4023 = vmatprep.subr.msk.bf16.mxu0 %vm1735_vm8, %v1980_v2 }
 0x5d4   : > { %3953 = vmatpush3.bf16.xpose.msra.mxu0 %v1991_v4 }
 0x5d5   : > { %3974 = vmatprep.subr.msk.bf16.mxu0 %vm4709_vm4, %v4366_v21 }
 0x5db   : > { %3955 = vmatmul.mubr.msk.bf16.vlgmr.msra.gmra.mrb[12].mxu0 %vm1735_vm8, %v1978_v6 }
 0x5dc   : > { %3975 = vmatpush3.bf16.msk.msra.mxu0 %vm4709_vm4, %v4366_v21 }
 0x5dd   : > { %3976 = vmatprep.subr.msk.bf16.mxu0 %vm4726_vm7, %v4366_v21 }
 0x5e0   : > { %3977 = vmatpush3.bf16.msk.msra.mxu0 %vm4726_vm7, %v4366_v21 }
 0x6ae   : > { %v3956_v8 = vpop.f32.mrb[12].mxu0 }
 0x6af   : > { %v2027_v16 = vpop.f32.mrb[13].mxu0  ;;  %v2043_v24 = vmul.f32 0.17677669, %v3956_v8 }
 0x6b0   : > { %v2041_v17 = vmul.f32 0.17677669, %v2027_v16  ;;  %v3957_v18 = vpop.f32.mrb[14].mxu0 }
 0x6b1   : > { %v2030_v20 = vpop.f32.mrb[15].mxu0  ;;  %v2051_v31 = vsel %vm2044_vm10, %v2043_v24, -inf }
 0x6b2   : > { %v2042_v53 = vmul.f32 0.17677669, %v2030_v20  ;;  %v2045_v22 = vsel %vm2044_vm10, %v2041_v17, -inf }
 0x6b3   : > { %2046 = vmax.xlane.f32.xlu1 %v2045_v22 }
 0x6b4   : > { %v2048_v25 = vsel %vm2044_vm10, %v2042_v53, -inf }
 0x6b5   : > { %2049 = vmax.xlane.f32.xlu0 %v2048_v25 }
 0x6b7   : > { %2208 = vadd.xlane.f32.xlu1 %v2207_v30 }
 0x6b9   : > { %2052 = vmax.xlane.f32.xlu0 %v2051_v31 }
 0x6bb   : > { %2147 = vadd.xlane.f32.xlu1 %v2146_v32 }
 0x6bd   : > { %2172 = vadd.xlane.f32.xlu0 %v2171_v36 }
 0x6bf   : > { %2150 = vadd.xlane.f32.xlu1 %v2149_v38 }
 0x6c1   : > { %2175 = vadd.xlane.f32.xlu0 %v2174_v39 }
 0x6c5   : > { %2194 = vadd.xlane.f32.xlu0 %v2193_v42 }
 0x6d0   : > { %2214 = vrot.lane.b32.xlu1 %v4778_v59, %s4368_s23 }
 0x6d4   : > { %2160 = vrot.lane.b32.xlu1 %v4809_v51, %s4367_s22 }
 0x6d8   : > { %2200 = vrot.lane.b32.xlu1 %v4812_v40, %s4367_s22 }
 0x6db   : > { %2185 = vrot.lane.b32.xlu0 %v4783_v60, %s4368_s23 }
 0x740   : > { %v2047_v43 = vpop.xlane.xlu1 %2046 }
 0x741   : > { %v2054_v52 = vsub.f32 %v2041_v17, %v2047_v43 }
 0x742   : > { %v2050_v29 = vpop.xlane.xlu0 %2049 }
 0x743   : > { %v2055_v45 = vsub.f32 %v2042_v53, %v2050_v29  ;;  %v2057_v59 = vmul.f32 1.442695, %v2054_v52 }
 0x744   : > { %v2209_v50 = vpop.xlane.xlu1 %2208 }
 0x745   : > { %v2059_v54 = vmul.f32 1.442695, %v2055_v45  ;;  %v2210_v6 = vmul.f32 0.03125, %v2209_v50 }
 0x746   : > { %v2053_v55 = vpop.xlane.xlu0 %2052 }
 0x747   : > { %4232 = vpow2.f32 %v2059_v54  ;;  %v2056_v57 = vsub.f32 %v2043_v24, %v2053_v55  ;;  %v2211_v22 = vadd.f32 1e-06, %v2210_v6 }
 0x748   : > { %v2148_v58 = vpop.xlane.xlu1 %2147 }
 0x749   : > { %v2061_v61 = vmul.f32 1.442695, %v2056_v57  ;;  %v2152_v2 = vmul.f32 0.03125, %v2148_v58 }
 0x74a   : > { %v2173_v51 = vpop.xlane.xlu0 %2172 }
 0x74b   : > { %4234 = vpow2.f32 %v2061_v61  ;;  %v2154_v40 = vadd.f32 1e-06, %v2152_v2  ;;  %v2177_v13 = vmul.f32 0.03125, %v2173_v51 }
 0x74c   : > { %4236 = vpow2.f32 %v2057_v59  ;;  %v2151_v18 = vpop.xlane.xlu1 %2150 }
 0x74d   : > { %4238 = vrsqrt.f32 %v2154_v40  ;;  %v2179_v25 = vadd.f32 1e-06, %v2177_v13  ;;  %v2153_v26 = vmul.f32 0.03125, %v2151_v18 }
 0x74e   : > { %v2176_v3 = vpop.xlane.xlu0 %2175 }
 0x74f   : > { %v2178_v4 = vmul.f32 0.03125, %v2176_v3  ;;  %v2155_v32 = vadd.f32 1e-06, %v2153_v26 }
 0x750   : > { %v2215_v31 = vpop.permute.xlu1 %2214 }
 0x751   : > { %v4897_v60 = vpop.eup %4232  ;;  %v2180_v8 = vadd.f32 1e-06, %v2178_v4 }
 0x752   : > { %v2195_v16 = vpop.xlane.xlu0 %2194  ;;  %v2066_v17 = vsel %vm2044_vm10, %v4897_v60, 0.0 }
 0x753   : > { %4240 = vrsqrt.f32 %v2180_v8  ;;  %v2196_v20 = vmul.f32 0.03125, %v2195_v16  ;;  %2067 = vadd.xlane.f32.xlu1 %v2066_v17 }
 0x754   : > { %v2161_v38 = vpop.permute.xlu1 %2160 }
 0x755   : > { %v4901_v53 = vpop.eup %4234  ;;  %v2197_v24 = vadd.f32 1e-06, %v2196_v20 }
 0x756   : > { %v2069_v28 = vsel %vm2044_vm10, %v4901_v53, 0.0  ;;  %v4237_v30 = vpop.eup %4236  ;;  %v2186_v41 = vpop.permute.xlu0 %2185 }
 0x757   : > { %4242 = vrsqrt.f32 %v2197_v24  ;;  %2070 = vadd.xlane.f32.xlu0 %v2069_v28  ;;  %v2063_v34 = vsel %vm2044_vm10, %v4237_v30, 0.0  ;;  %v4239_v35 = vpop.eup %4238 }
 0x758   : > { %4244 = vrsqrt.f32 %v2211_v22  ;;  %v2158_v42 = vmul.f32 %v4239_v35, %v4753_v37  ;;  %v2201_v45 = vpop.permute.xlu1 %2200 }
 0x759   : > { %4246 = vrsqrt.f32 %v2179_v25 }
 0x75a   : > { %4248 = vrsqrt.f32 %v2155_v32  ;;  %v2163_v57 = vmul.f32 %v2161_v38, %v2158_v42 }
 0x75b   : > { %2064 = vadd.xlane.f32.xlu0 %v2063_v34 }
 0x75d   : > { %v4241_v36 = vpop.eup %4240 }
 0x75e   : > { %v2184_v39 = vmul.f32 %v4241_v36, %v4759_v44 }
 0x760   : > { %v2189_v43 = vmul.f32 %v2186_v41, %v2184_v39 }
 0x761   : > { %v4243_v29 = vpop.eup %4242 }
 0x762   : > { %v2317_v50 = vpack.c.bf16 %v2189_v43, %v2189_v43  ;;  %v2199_v52 = vmul.f32 %v4243_v29, %v4751_v33  ;;  %v4245_v54 = vpop.eup %4244 }
 0x763   : > { %v4247_v55 = vpop.eup %4246  ;;  %v2213_v59 = vmul.f32 %v4245_v54, %v4751_v33 }
 0x764   : > { %v2203_v58 = vmul.f32 %v2201_v45, %v2199_v52  ;;  %2322 = vrot.lane.b32.xlu1 %v2317_v50, %s4367_s22  ;;  %v2183_v2 = vmul.f32 %v4247_v55, %v4753_v37  ;;  %v4249_v51 = vpop.eup %4248 }
 0x765   : > { %v2217_v40 = vmul.f32 %v2215_v31, %v2213_v59  ;;  %v2159_v3 = vmul.f32 %v4249_v51, %v4759_v44 }
 0x766   : > { %v2233_v61 = vpack.c.bf16 %v2163_v57, %v2203_v58  ;;  %v2188_v4 = vmul.f32 %v2186_v41, %v2183_v2 }
 0x767   : > { %v2164_v6 = vmul.f32 %v2161_v38, %v2159_v3 }
 0x768   : > { %2237 = vrot.lane.b32.xlu1 %v2233_v61, %s4368_s23  ;;  %v2316_v8 = vpack.c.bf16 %v2188_v4, %v2217_v40 }
 0x769   : > { %v2234_v13 = vpack.c.bf16 %v2164_v6, %v2164_v6 }
 0x76c   : > { %2304 = vrot.lane.b32.xlu1 %v2217_v40, %s4367_s22 }
 0x770   : > { %2308 = vrot.lane.b32.xlu1 %v2189_v43, %s4367_s22 }
 0x771   : > { %2320 = vrot.lane.b32.xlu0 %v2316_v8, %s4367_s22 }
 0x774   : > { %2223 = vrot.lane.b32.xlu1 %v2163_v57, %s4368_s23 }
 0x775   : > { %2239 = vrot.lane.b32.xlu0 %v2234_v13, %s4368_s23 }
 0x779   : > { %2306 = vrot.lane.b32.xlu0 %v2188_v4, %s4367_s22 }
 0x77d   : > { %2221 = vrot.lane.b32.xlu0 %v2203_v58, %s4368_s23 }
 0x781   : > { %2225 = vrot.lane.b32.xlu0 %v2164_v6, %s4368_s23 }
 0x7e0   : > { %v2068_v33 = vpop.xlane.xlu1 %2067 }
 0x7e4   : > { %v2071_v37 = vpop.xlane.xlu0 %2070  ;;  %v2323_v17 = vpop.permute.xlu1 %2322 }
 0x7e5   : > { %4250 = vrcp.f32 %v2071_v37 }
 0x7e6   : > { %4252 = vrcp.f32 %v2068_v33 }
 0x7e8   : > { %v2065_v44 = vpop.xlane.xlu0 %2064  ;;  %v2238_v32 = vpop.permute.xlu1 %2237 }
 0x7e9   : > { %4254 = vrcp.f32 %v2065_v44 }
 0x7ec   : > { %v2321_v16 = vpop.permute.xlu0 %2320 }
 0x7ed   : > { %3978 = vmatprep.mubr.msk.bf16.mxu0 %vm1735_vm8, %v2321_v16 }
 0x7ee   : > { %3979 = vmatmul.mubr.msk.bf16.vlgmr.msra.gmra.mrb[16].mxu0 %vm1735_vm8, %v2323_v17 }
 0x7ef   : > { %v4251_v18 = vpop.eup %4250 }
 0x7f0   : > { %v4253_v20 = vpop.eup %4252  ;;  %v2077_v24 = vmul.f32 %v4251_v18, %v4901_v53  ;;  %v2305_v53 = vpop.permute.xlu1 %2304 }
 0x7f1   : > { %v2076_v26 = vmul.f32 %v4253_v20, %v4897_v60  ;;  %v2240_v60 = vpop.permute.xlu0 %2239  ;;  %v2313_v42 = vmul.f32 %v2305_v53, %v4842_v11 }
 0x7f2   : > { %v2079_v31 = vpack.c.bf16 %v2077_v24, %v2077_v24 }
 0x7f3   : > { %v4255_v22 = vpop.eup %4254 }
 0x7f4   : > { %v2075_v25 = vmul.f32 %v4255_v22, %v4237_v30  ;;  %v2309_v30 = vpop.permute.xlu1 %2308 }
 0x7f5   : > { %v2307_v35 = vpop.permute.xlu0 %2306  ;;  %v2315_v43 = vmul.f32 %v2309_v30, %v4838_v49 }
 0x7f6   : > { %v2078_v28 = vpack.c.bf16 %v2076_v26, %v2075_v25 }
 0x7f8   : > { %3962 = vmatprep.mubr.msk.bf16.mxu1 %vm2044_vm10, %v2078_v28  ;;  %v2224_v4 = vpop.permute.xlu1 %2223 }
 0x7f9   : > { %3963 = vmatmul.mubr.msk.bf16.vlgmr.msra.gmra.mrb[20].mxu1 %vm2044_vm10, %v2079_v31  ;;  %v2222_v59 = vpop.permute.xlu0 %2221  ;;  %v2231_v16 = vmul.f32 %v2224_v4, %v4846_v14 }
 0x7fa   : > { %3967 = vmatpush3.bf16.msk.msra.mxu1 %vm4709_vm4, %v4366_v21  ;;  %3970 = vmatprep.mubr.msk.bf16.mxu1 %vm1735_vm8, %v2238_v32  ;;  %v2230_v17 = vmul.f32 %v2222_v59, %v4842_v11 }
 0x7fb   : > { %3968 = vmatprep.subr.msk.bf16.mxu1 %vm4726_vm7, %v4366_v21 }
 0x7fd   : > { %v2226_v40 = vpop.permute.xlu0 %2225 }
 0x7fe   : > { %3969 = vmatpush3.bf16.msk.msra.mxu1 %vm4726_vm7, %v4366_v21  ;;  %v2314_v21 = vmul.f32 %v2307_v35, %v4846_v14  ;;  %v2232_v37 = vmul.f32 %v2226_v40, %v4838_v49 }
 0x801   : > { %3971 = vmatmul.mubr.msk.bf16.vlgmr.msra.gmra.mrb[24].mxu1 %vm1735_vm8, %v2240_v60 }
 0x8c1   : > { %v3980_v34 = vpop.f32.mrb[16].mxu0 }
 0x8c2   : > { %v2364_v36 = vpop.f32.mrb[17].mxu0  ;;  %v2380_v19 = vmul.f32 %v3980_v34, %v4840_v9 }
 0x8c3   : > { %v2378_v38 = vmul.f32 %v2364_v36, %v4844_v12  ;;  %v3981_v39 = vpop.f32.mrb[18].mxu0 }
 0x8c4   : > { %v2367_v41 = vpop.f32.mrb[19].mxu0  ;;  %v2383_v29 = vadd.f32 %v2380_v19, %v2315_v43 }
 0x8c5   : > { %v2379_v23 = vmul.f32 %v2367_v41, %v4850_v1  ;;  %v2381_v45 = vadd.f32 %v2378_v38, %v2313_v42 }
 0x8c6   : > { %v2387_v54 = vpack.c.bf16 %v2383_v29, %v2383_v29 }
 0x8c7   : > { %v2382_v50 = vadd.f32 %v2379_v23, %v2314_v21 }
 0x8c8   : > { %v2398_v51 = vsel %vm1735_vm8, %v2387_v54, 0 }
 0x8c9   : > { %v2386_v52 = vpack.c.bf16 %v2382_v50, %v2381_v45 }
 0x8cb   : > { %4025 = vmatprep.subr.msk.bf16.mxu1 %vm1735_vm8, %v2386_v52  ;;  %v2395_v55 = vsel %vm1735_vm8, %v2386_v52, 0 }
 0x8cc   : > { %v4947_v57 = vpop.f32.mrb[20].mxu1  ;;  %3983 = vmatpush3.bf16.xpose.msra.mxu1 %v2395_v55 }
 0x8cd   : > { %v4949_v58 = vpop.f32.mrb[21].mxu1  ;;  %4026 = vmatprep.subr.msk.bf16.mxu1 %vm1735_vm8, %v2387_v54 }
 0x8ce   : > { %v3965_v61 = vpop.f32.mrb[22].mxu1 }
 0x8cf   : > { %v4952_v2 = vpop.f32.mrb[23].mxu1 }
 0x8d4   : > { %v3972_v3 = vpop.f32.mrb[24].mxu1  ;;  %3985 = vmatpush3.bf16.xpose.msra.mxu1 %v2398_v51 }
 0x8d5   : > { %v2297_v6 = vmul.f32 %v3972_v3, %v4840_v9  ;;  %v2281_v8 = vpop.f32.mrb[25].mxu1 }
 0x8d6   : > { %v2295_v13 = vmul.f32 %v2281_v8, %v4844_v12  ;;  %v3973_v33 = vpop.f32.mrb[26].mxu1 }
 0x8d7   : > { %v2284_v44 = vpop.f32.mrb[27].mxu1  ;;  %v2300_v20 = vadd.f32 %v2297_v6, %v2232_v37  ;;  %v4147_v33 = vld [vmem:[%s5167_s7 + $0x8] sm:$0xff]   ;;  %v4148_v37 = vld [vmem:[%s5167_s7 + $0x10] sm:$0xff]  }
 0x8d8   : > { %v2296_v18 = vmul.f32 %v2284_v44, %v4850_v1  ;;  %v2298_v22 = vadd.f32 %v2295_v13, %v2230_v17  ;;  %v4146_v13 = vld [vmem:[%s5167_s7] sm:$0xff]   ;;  %v4149_v44 = vld [vmem:[%s5167_s7 + $0x18] sm:$0xff]  }
 0x8d9   : > { %v2385_v26 = vpack.c.bf16 %v2300_v20, %v2300_v20 }
 0x8da   : > { %v2299_v24 = vadd.f32 %v2296_v18, %v2231_v16 }
 0x8dc   : > { %v2384_v25 = vpack.c.bf16 %v2299_v24, %v2298_v22 }
 0x8de   : > { %3986 = vmatprep.mubr.msk.bf16.mxu1 %vm1735_vm8, %v2384_v25 }
 0x8df   : > { %3987 = vmatmul.mubr.msk.bf16.vlgmr.msra.gmra.mrb[28].mxu1 %vm1735_vm8, %v2385_v26 }
 0x8e0   : > { %2792 = vmatprep.mubr.bf16.mxu1 %v4362_v0 }
 0x9b2   : > { %v3988_v9 = vpop.f32.mrb[28].mxu1 }
 0x9b3   : > { %v2434_v49 = vpop.f32.mrb[29].mxu1  ;;  %v2450_v1 = vmul.f32 0.17677669, %v3988_v9 }
 0x9b4   : > { %v2448_v12 = vmul.f32 0.17677669, %v2434_v49  ;;  %v3989_v28 = vpop.f32.mrb[30].mxu1 }
 0x9b5   : > { %v2437_v14 = vpop.f32.mrb[31].mxu1  ;;  %v2457_v60 = vsel %vm2044_vm10, %v2450_v1, -inf  ;;  %v4286_v28 = vld [vmem:[%s4407_s29] sm:$0x7] }
 0x9b6   : > { %v2449_v31 = vmul.f32 0.17677669, %v2437_v14  ;;  %v2451_v11 = vsel %vm2044_vm10, %v2448_v12, -inf  ;;  %v1159_v14 = vrot.slane %v4286_v28, %v4746_v27 }
 0x9b7   : > { %2452 = vmax.xlane.f32.xlu1 %v2451_v11 }
 0x9b8   : > { %v2454_v32 = vsel %vm2044_vm10, %v2449_v31, -inf }
 0x9b9   : > { %2455 = vmax.xlane.f32.xlu0 %v2454_v32 }
 0x9bd   : > { %2458 = vmax.xlane.f32.xlu0 %v2457_v60 }
 0xa44   : > { %v2453_v53 = vpop.xlane.xlu1 %2452 }
 0xa45   : > { %v2460_v35 = vsub.f32 %v2448_v12, %v2453_v53 }
 0xa46   : > { %v2456_v30 = vpop.xlane.xlu0 %2455 }
 0xa47   : > { %v2461_v34 = vsub.f32 %v2449_v31, %v2456_v30  ;;  %v2463_v39 = vmul.f32 1.442695, %v2460_v35  ;;  %v1208_v31 = vadd.f32 %v4618_v47, %v1159_v14 }
 0xa49   : > { %v2465_v36 = vmul.f32 1.442695, %v2461_v34  ;;  %v2652_v32 = vrot.slane %v1208_v31, %v4626_v62 }
 0xa4a   : > { %v2459_v19 = vpop.xlane.xlu0 %2458 }
 0xa4b   : > { %4256 = vpow2.f32 %v2465_v36  ;;  %v2462_v38 = vsub.f32 %v2450_v1, %v2459_v19 }
 0xa4d   : > { %v2467_v41 = vmul.f32 1.442695, %v2462_v38  ;;  %v4288_v38 = vld [vmem:[%s4577_s10 + $0x8] sm:$0xff] }
 0xa4f   : > { %4258 = vpow2.f32 %v2467_v41 }
 0xa50   : > { %4260 = vpow2.f32 %v2463_v39 }
 0xa55   : > { %v4257_v42 = vpop.eup %4256 }
 0xa56   : > { %v2472_v43 = vsel %vm2044_vm10, %v4257_v42, 0.0 }
 0xa57   : > { %2473 = vadd.xlane.f32.xlu1 %v2472_v43 }
 0xa59   : > { %v4259_v21 = vpop.eup %4258 }
 0xa5a   : > { %v2475_v23 = vsel %vm2044_vm10, %v4259_v21, 0.0  ;;  %v4261_v29 = vpop.eup %4260 }
 0xa5b   : > { %2476 = vadd.xlane.f32.xlu0 %v2475_v23  ;;  %v2469_v45 = vsel %vm2044_vm10, %v4261_v29, 0.0 }
 0xa5f   : > { %2470 = vadd.xlane.f32.xlu0 %v2469_v45 }
 0xa68   : > { %2488 = vrot.lane.b32.xlu1 %v4765_v46, %s4368_s23 }
 0xa75   : > { %2490 = vrot.lane.b32.xlu0 %v4824_v7, %s4368_s23  ;;  %s5168_s23 = sld [smem:[#allocation8_spill]] }
 0xa7b   : > { %v3746_v11 = vld [vmem:[%s5168_s23] ss:$0 sm:$0xff]  ;;  %s5176_s23 = sld [smem:[#allocation17_spill]] }
 0xae4   : > { %v2474_v50 = vpop.xlane.xlu1 %2473 }
 0xae8   : > { %v2489_v52 = vpop.permute.xlu1 %2488  ;;  %v2477_v54 = vpop.xlane.xlu0 %2476 }
 0xae9   : > { %3990 = vmatprep.subr.bf16.mxu0 %v2489_v52  ;;  %4262 = vrcp.f32 %v2477_v54 }
 0xaea   : > { %3991 = vmatpush3.bf16.msra.mxu0 %v2489_v52  ;;  %4264 = vrcp.f32 %v2474_v50 }
 0xaec   : > { %v2471_v55 = vpop.xlane.xlu0 %2470 }
 0xaed   : > { %4266 = vrcp.f32 %v2471_v55 }
 0xaf0   : > { %v2491_v59 = vpop.permute.xlu0 %2490 }
 0xaf1   : > { %v2500_v61 = vsel %vm2088_vm9, %v2491_v59, 0  ;;  %4027 = vmatprep.subr.msk.bf16.mxu0 %vm2088_vm9, %v2491_v59  ;;  %v4152_v59 = vld [vmem:[%s5169_s28 + $0x4] ss:$8 sps:$4 sm:$0xff]  }
 0xaf2   : > { %3993 = vmatpush3.bf16.msra.mxu0 %v2500_v61  ;;  %v4150_v61 = vld [vmem:[%s5169_s28] ss:$8 sps:$4 sm:$0xff]   ;;  %2760 = vmatprep.subr.bf16.mxu1 %v4152_v59 }
 0xaf3   : > { %3998 = vmatprep.subr.bf16.mxu0 %v4364_v15  ;;  %v4263_v46 = vpop.eup %4262  ;;  %2761 = vmatpush1.bf16.msra.mxu1 %v4150_v61 }
 0xaf4   : > { %v4265_v7 = vpop.eup %4264  ;;  %v2483_v40 = vmul.f32 %v4263_v46, %v4259_v21  ;;  %v4155_v46 = vld [vmem:[%s5169_s28 + $0x14] ss:$8 sps:$4 sm:$0xff]  }
 0xaf5   : > { %v2482_v4 = vmul.f32 %v4265_v7, %v4257_v42  ;;  %v4153_v7 = vld [vmem:[%s5169_s28 + $0x10] ss:$8 sps:$4 sm:$0xff]   ;;  %2762 = vmatprep.subr.bf16.mxu1 %v4155_v46 }
 0xaf6   : > { %v2485_v8 = vpack.c.bf16 %v2483_v40, %v2483_v40  ;;  %v4156_v40 = vld [vmem:[%s5169_s28 + $0x20] ss:$8 sps:$4 sm:$0xff]  }
 0xaf7   : > { %v4267_v51 = vpop.eup %4266  ;;  %2763 = vmatpush1.bf16.msra.mxu1 %v4153_v7 }
 0xaf8   : > { %v2481_v3 = vmul.f32 %v4267_v51, %v4261_v29  ;;  %v4158_v51 = vld [vmem:[%s5169_s28 + $0x24] ss:$8 sps:$4 sm:$0xff]  }
 0xaf9   : > { %2764 = vmatprep.subr.bf16.mxu1 %v4158_v51 }
 0xafa   : > { %v2484_v6 = vpack.c.bf16 %v2482_v4, %v2481_v3  ;;  %v4161_v3 = vld [vmem:[%s5169_s28 + $0x34] ss:$8 sps:$4 sm:$0xff]   ;;  %v4159_v4 = vld [vmem:[%s5169_s28 + $0x30] ss:$8 sps:$4 sm:$0xff]  }
 0xafb   : > { %2765 = vmatpush1.bf16.msra.mxu1 %v4156_v40 }
 0xafc   : > { %3994 = vmatprep.mubr.msk.bf16.mxu0 %vm2044_vm10, %v2484_v6  ;;  %2766 = vmatprep.subr.bf16.mxu1 %v4161_v3 }
 0xafd   : > { %3995 = vmatmul.mubr.msk.bf16.vlgmr.msra.gmra.mrb[20].mxu0 %vm2044_vm10, %v2485_v8 }
 0xafe   : > { %4006 = vmatprep.mubr.msk.bf16.mxu0 %vm4365_vm1, %v4364_v15  ;;  %3999 = vmatpush3.bf16.msra.mxu0 %v4146_v13 }
 0xaff   : > { %4000 = vmatprep.subr.bf16.mxu0 %v4364_v15  ;;  %2767 = vmatpush1.bf16.msra.mxu1 %v4159_v4 }
 0xb00   : > { %4010 = vmatprep.subr.bf16.mxu1 %v4364_v15 }
 0xb02   : > { %4001 = vmatpush3.bf16.msra.mxu0 %v4147_v33 }
 0xb03   : > { %4002 = vmatprep.subr.bf16.mxu0 %v4364_v15 }
 0xb06   : > { %4003 = vmatpush3.bf16.msra.mxu0 %v4148_v37 }
 0xb07   : > { %4004 = vmatprep.subr.bf16.mxu0 %v4364_v15 }
 0xb0a   : > { %4005 = vmatpush3.bf16.msra.mxu0 %v4149_v44  ;;  %v1163_v44 = vrot.slane %v4286_v28, %v1162_v5 }
 0xbd0   : > { %v3996_v16 = vpop.f32.mrb[20].mxu0 }
 0xbd1   : > { %v2536_v17 = vpop.f32.mrb[21].mxu0 }
 0xbd2   : > { %v3997_v18 = vpop.f32.mrb[22].mxu0 }
 0xbd3   : > { %v2539_v20 = vpop.f32.mrb[23].mxu0 }
 0xbd4   : > { %v4085_v22 = vpack.i.bf16 %v3996_v16, %v2539_v20 }
 0xbd6   : > { %4086 = vrot.lane.b32.xlu1 %v4085_v22, %s4367_s22 }
 0xc48   : > { %v4087_v24 = vpop.permute.xlu1 %4086 }
 0xc49   : > { %v4089_v25 = vunpack.i.h.bf16 %v4087_v24  ;;  %v4088_v26 = vunpack.i.l.bf16 %v4087_v24 }
 0xc4b   : > { %v2564_v9 = vsel %vm1735_vm8, %v4947_v57, %v4089_v25  ;;  %v2563_v49 = vsel %vm1735_vm8, %v4952_v2, %v4088_v26  ;;  %v4287_v2 = vld [vmem:[%s4577_s10] sm:$0xff]  ;;  %s5170_s10 = sld [smem:[#allocation14_spill]] }
 0xc4c   : > { %v2573_v12 = vpack.c.bf16 %v2564_v9, %v2563_v49 }
 0xc4e   : > { %4007 = vmatmul.mubr.msk.bf16.vlgmr.msra.gmra.mrb[24].mxu0 %vm1167_vm0, %v2573_v12 }
 0xc51   : > { %v4162_v28 = vld [vmem:[%s5170_s10] sm:$0xff]   ;;  %v4164_v31 = vld [vmem:[%s5170_s10 + $0x10] sm:$0xff]  }
 0xd21   : > { %v2642_v1 = vpop.f32.mrb[24].mxu0 }
 0xd22   : > { %v2643_v60 = vadd.f32 %v3746_v11, %v2642_v1  ;;  %v4008_v53 = vpop.f32.mrb[25].mxu0  ;;  %v4165_v1 = vld [vmem:[%s5170_s10 + $0x18] sm:$0xff]  }
 0xd23   : > { %v2645_v57 = vpop.f32.mrb[26].mxu0 }
 0xd24   : > { %v2653_v30 = vmul.f32 %v2652_v32, %v2643_v60  ;;  %v2646_v34 = vadd.f32 %v3746_v11, %v2645_v57  ;;  %v4009_v35 = vpop.f32.mrb[27].mxu0 }
 0xd26   : > { %v5000_v36 = vadd.f32 %v4287_v2, %v2653_v30  ;;  %v2654_v19 = vmul.f32 %v2652_v32, %v2646_v34 }
 0xd28   : > { %v5003_v39 = vadd.f32 %v4288_v38, %v2654_v19  ;;  %v2658_v47 = vsel %vm1167_vm0, %v5000_v36, 0.0 }
 0xd29   : > { %2659 = vadd.xlane.f32.xlu1 %v2658_v47 }
 0xd2a   : > { %v2661_v41 = vsel %vm1167_vm0, %v5003_v39, 0.0 }
 0xd2b   : > { %2662 = vadd.xlane.f32.xlu0 %v2661_v41 }
 0xdb6   : > { %v2660_v42 = vpop.xlane.xlu1 %2659 }
 0xdb7   : > { %v2664_v43 = vmul.f32 0.015625, %v2660_v42 }
 0xdb8   : > { %v2663_v21 = vpop.xlane.xlu0 %2662 }
 0xdb9   : > { %v2666_v23 = vsub.f32 %v5000_v36, %v2664_v43  ;;  %v2665_v29 = vmul.f32 0.015625, %v2663_v21 }
 0xdbb   : > { %v2667_v45 = vsub.f32 %v5003_v39, %v2665_v29  ;;  %v2668_v50 = vmul.f32 %v2666_v23, %v2666_v23 }
 0xdbd   : > { %v2670_v52 = vsel %vm1167_vm0, %v2668_v50, 0.0  ;;  %v2669_v54 = vmul.f32 %v2667_v45, %v2667_v45 }
 0xdbe   : > { %2671 = vadd.xlane.f32.xlu0 %v2670_v52 }
 0xdbf   : > { %v2673_v55 = vsel %vm1167_vm0, %v2669_v54, 0.0 }
 0xdc0   : > { %2674 = vadd.xlane.f32.xlu1 %v2673_v55 }
 0xdd1   : > { %2553 = vrot.lane.b32.xlu1 %v2536_v17, %s4367_s22  ;;  %v5027_v17 = vadd.f32 %v4695_v63, %v1163_v44  ;;  %s5171_s22 = sld [smem:[#allocation11_spill]]  ;;  %v4163_v63 = vld [vmem:[%s5170_s10 + $0x8] sm:$0xff]  }
 0xdd3   : > { %v2657_v18 = vadd.f32 1.0, %v5027_v17 }
 0xdd4   : > { %2691 = vrot.lane.b32.xlu0 %v2652_v32, %s4363_s18 }
 0xdd5   : > { %v2687_v22 = vrot.slane %v2657_v18, %v4626_v62 }
 0xdd7   : > { %v4166_v53 = vld [vmem:[%s5171_s22 + $0x40] sm:$0xff]   ;;  %v4168_v30 = vld [vmem:[%s5171_s22 + $0x48] sm:$0xff]   ;;  %v4171_v34 = vld [vmem:[%s5171_s22 + $0x10] sm:$0xff]  }
 0xdd8   : > { %v4167_v57 = vld [vmem:[%s5171_s22] sm:$0xff]   ;;  %3861 = vmatprep.subr.bf16.mxu0 %v4166_v53  ;;  %v4173_v35 = vld [vmem:[%s5171_s22 + $0x18] sm:$0xff]   ;;  %v4176_v38 = vld [vmem:[%s5171_s22 + $0x68] sm:$0xff]  }
 0xdd9   : > { %3862 = vmatpush3.bf16.msra.mxu0 %v4167_v57  ;;  %v4174_v2 = vld [vmem:[%s5171_s22 + $0x60] sm:$0xff]   ;;  %v4177_v47 = vld [vmem:[%s5171_s22 + $0x28] sm:$0xff]   ;;  %v4178_v41 = vld [vmem:[%s5171_s22 + $0x70] sm:$0xff]  }
 0xdda   : > { %3863 = vmatprep.subr.bf16.mxu0 %v4168_v30  ;;  %v4175_v19 = vld [vmem:[%s5171_s22 + $0x20] sm:$0xff]   ;;  %v4179_v42 = vld [vmem:[%s5171_s22 + $0x30] sm:$0xff]   ;;  %v4180_v43 = vld [vmem:[%s5171_s22 + $0x78] sm:$0xff]  }
 0xddb   : > { %v4181_v21 = vld [vmem:[%s5171_s22 + $0x38] sm:$0xff]   ;;  %v4290_v57 = vld [vmem:[%s4582_s11] sm:$0xff]  ;;  %s5175_s11 = sld [smem:[#allocation12_spill]] }
 0xe4b   : > { %v2672_v6 = vpop.xlane.xlu0 %2671 }
 0xe4c   : > { %v2676_v8 = vmul.f32 0.015625, %v2672_v6 }
 0xe4d   : > { %v2675_v13 = vpop.xlane.xlu1 %2674 }
 0xe4e   : > { %v2678_v33 = vadd.f32 1e-06, %v2676_v8  ;;  %v2677_v37 = vmul.f32 0.015625, %v2675_v13 }
 0xe4f   : > { %v2692_v5 = vpop.permute.xlu0 %2691 }
 0xe50   : > { %4268 = vrsqrt.f32 %v2678_v33  ;;  %v2679_v16 = vadd.f32 1e-06, %v2677_v37 }
 0xe51   : > { %v2554_v11 = vpop.permute.xlu1 %2553 }
 0xe52   : > { %4270 = vrsqrt.f32 %v2679_v16  ;;  %v2562_v32 = vsel %vm1735_vm8, %v4949_v58, %v2554_v11  ;;  %v4170_v58 = vld [vmem:[%s5171_s22 + $0x50] sm:$0xff]   ;;  %v4289_v16 = vld [vmem:[%s4467_s12] sm:$0x7] }
 0xe53   : > { %v3049_v60 = vpack.c.bf16 %v2562_v32, %v2562_v32  ;;  %v1341_v18 = vrot.slane %v4289_v16, %v4746_v27 }
 0xe5a   : > { %v4269_v20 = vpop.eup %4268 }
 0xe5b   : > { %v2682_v24 = vmul.f32 %v4269_v20, %v2666_v23  ;;  %v2705_v23 = vld [vmem:[%s5172_s1] sm:$0x3]  ;;  %s1021_s1 = scalar_lea.vmem %s4522_s21, %s3812_s2  ;;  %s5177_s2 = sshll.u32 %s5179_s16, 3 }
 0xe5c   : > { %v4271_v25 = vpop.eup %4270  ;;  %v2710_v29 = vrot.slane %v2705_v23, %v4626_v62 }
 0xe5d   : > { %v2683_v26 = vmul.f32 %v4271_v25, %v2667_v45  ;;  %v2688_v9 = vmul.f32 %v2687_v22, %v2682_v24  ;;  %v2714_v45 = vrot.slane %v2705_v23, %v4746_v27 }
 0xe5f   : > { %v2689_v56 = vmul.f32 %v2687_v22, %v2683_v26  ;;  %v2694_v49 = vadd.f32 %v2692_v5, %v2688_v9 }
 0xe61   : > { %v2695_v12 = vadd.f32 %v2692_v5, %v2689_v56 }
 0xe63   : > { %v2704_v14 = vpack.c.bf16 %v2695_v12, %v2694_v49  ;;  %v1386_v49 = vadd.f32 %v4620_v48, %v1341_v18 }
 0xe65   : > { %3760 = vmatmul.mubr.msk.bf16.vlgmr.msra.gmra.mrb[32].mxu1 %vm1167_vm0, %v2704_v14 }
 0xe66   : > { %4011 = vmatpush3.bf16.msra.mxu1 %v4162_v28  ;;  %4018 = vmatprep.mubr.msk.bf16.mxu1 %vm4365_vm1, %v4364_v15  ;;  %v3778_v28 = vld [vmem:[%s5173_s0] ss:$0 sm:$0xff]  ;;  %s1025_s0 = scalar_lea.vmem %s4527_s6, %s5177_s2 }
 0xe67   : > { %4012 = vmatprep.subr.bf16.mxu1 %v4364_v15 }
 0xe6a   : > { %4013 = vmatpush3.bf16.msra.mxu1 %v4163_v63 }
 0xe6b   : > { %4014 = vmatprep.subr.bf16.mxu1 %v4364_v15 }
 0xe6e   : > { %4015 = vmatpush3.bf16.msra.mxu1 %v4164_v31  ;;  %v3127_v31 = vrot.slane %v1386_v49, %v4626_v62 }
 0xe6f   : > { %4016 = vmatprep.subr.bf16.mxu1 %v4364_v15  ;;  %v4169_v15 = vld [vmem:[%s5171_s22 + $0x8] sm:$0xff]  }
 0xe70   : > { %3864 = vmatpush3.bf16.msra.mxu0 %v4169_v15 }
 0xe71   : > { %3865 = vmatprep.subr.bf16.mxu0 %v4170_v58 }
 0xe72   : > { %4017 = vmatpush3.bf16.msra.mxu1 %v4165_v1 }
 0xe74   : > { %3866 = vmatpush3.bf16.msra.mxu0 %v4171_v34 }
 0xe75   : > { %4019 = vmatmul.mubr.msk.bf16.vlgmr.msra.gmra.mrb[36].mxu1 %vm1167_vm0, %v3049_v60 }
 0xe76   : > { %3250 = vmatprep.mubr.bf16.mxu1 %v4362_v0  ;;  %v4172_v0 = vld [vmem:[%s5171_s22 + $0x58] sm:$0xff]  }
 0xe77   : > { %3867 = vmatprep.subr.bf16.mxu0 %v4172_v0 }
 0xe78   : > { %3868 = vmatpush3.bf16.msra.mxu0 %v4173_v35 }
 0xe79   : > { %3869 = vmatprep.subr.bf16.mxu0 %v4174_v2 }
 0xe7c   : > { %3870 = vmatpush3.bf16.msra.mxu0 %v4175_v19 }
 0xe7d   : > { %3871 = vmatprep.subr.bf16.mxu0 %v4176_v38 }
 0xe80   : > { %3872 = vmatpush3.bf16.msra.mxu0 %v4177_v47 }
 0xe81   : > { %3873 = vmatprep.subr.bf16.mxu0 %v4178_v41 }
 0xe84   : > { %3874 = vmatpush3.bf16.msra.mxu0 %v4179_v42 }
 0xe85   : > { %3875 = vmatprep.subr.bf16.mxu0 %v4180_v43 }
 0xe88   : > { %3876 = vmatpush3.bf16.msra.mxu0 %v4181_v21 }
 0xf38   : > { %v2794_v50 = vpop.f32.mrb[32].mxu1 }
 0xf39   : > { %v2795_v52 = vadd.f32 %v2794_v50, %v2710_v29  ;;  %v2796_v54 = vpop.f32.mrb[33].mxu1 }
 0xf3a   : > { %v2797_v55 = vadd.f32 %v2796_v54, %v2714_v45  ;;  %v2798_v59 = vpop.f32.mrb[34].mxu1 }
 0xf3b   : > { %v2807_v61 = vmul.f32 0.044715, %v2795_v52  ;;  %v2799_v46 = vadd.f32 %v2798_v59, %v2710_v29  ;;  %v2800_v7 = vpop.f32.mrb[35].mxu1  ;;  %v2803_v19 = vmul.f32 0.5, %v2795_v52 }
 0xf3c   : > { %v2808_v51 = vmul.f32 0.044715, %v2797_v55  ;;  %v2801_v40 = vadd.f32 %v2800_v7, %v2714_v45  ;;  %v2804_v41 = vmul.f32 0.5, %v2797_v55  ;;  %v4184_v7 = vld [vmem:[%s5174_s26 + $0x4] ss:$8 sps:$4 sm:$0xff]  }
 0xf3d   : > { %v2811_v3 = vmul.f32 %v2807_v61, %v2795_v52  ;;  %v2809_v4 = vmul.f32 0.044715, %v2799_v46  ;;  %v2805_v38 = vmul.f32 0.5, %v2799_v46  ;;  %3218 = vmatprep.subr.bf16.mxu1 %v4184_v7 }
 0xf3e   : > { %v2812_v6 = vmul.f32 %v2808_v51, %v2797_v55  ;;  %v2810_v8 = vmul.f32 0.044715, %v2801_v40  ;;  %v2806_v42 = vmul.f32 0.5, %v2801_v40  ;;  %v4182_v51 = vld [vmem:[%s5174_s26] ss:$8 sps:$4 sm:$0xff]  }
 0xf3f   : > { %v2815_v13 = vmul.f32 %v2811_v3, %v2795_v52  ;;  %v2813_v33 = vmul.f32 %v2809_v4, %v2799_v46  ;;  %3219 = vmatpush1.bf16.msra.mxu1 %v4182_v51  ;;  %v4185_v3 = vld [vmem:[%s5174_s26 + $0x10] ss:$8 sps:$4 sm:$0xff]   ;;  %v4190_v4 = vld [vmem:[%s5174_s26 + $0x24] ss:$8 sps:$4 sm:$0xff]  }
 0xf40   : > { %v2816_v37 = vmul.f32 %v2812_v6, %v2797_v55  ;;  %v2814_v44 = vmul.f32 %v2810_v8, %v2801_v40  ;;  %v4188_v6 = vld [vmem:[%s5174_s26 + $0x20] ss:$8 sps:$4 sm:$0xff]   ;;  %v4193_v8 = vld [vmem:[%s5174_s26 + $0x34] ss:$8 sps:$4 sm:$0xff]  }
 0xf41   : > { %v2819_v20 = vadd.f32 %v2815_v13, %v2795_v52  ;;  %v2817_v22 = vmul.f32 %v2813_v33, %v2799_v46  ;;  %v4191_v13 = vld [vmem:[%s5174_s26 + $0x30] ss:$8 sps:$4 sm:$0xff]  }
 0xf42   : > { %v2818_v24 = vmul.f32 %v2814_v44, %v2801_v40  ;;  %v2820_v25 = vadd.f32 %v2816_v37, %v2797_v55  ;;  %v3761_v37 = vld [vmem:[%s5175_s11] ss:$0 sm:$0xff] }
 0xf43   : > { %v2823_v26 = vmul.f32 0.7978846, %v2819_v20  ;;  %v2821_v9 = vadd.f32 %v2817_v22, %v2799_v46 }
 0xf44   : > { %v2822_v56 = vadd.f32 %v2818_v24, %v2801_v40  ;;  %v2824_v5 = vmul.f32 0.7978846, %v2820_v25  ;;  %v4187_v40 = vld [vmem:[%s5174_s26 + $0x14] ss:$8 sps:$4 sm:$0xff]  }
 0xf45   : > { %4272 = vtanh.f32 %v2823_v26  ;;  %v2825_v12 = vmul.f32 0.7978846, %v2821_v9  ;;  %3220 = vmatprep.subr.bf16.mxu1 %v4187_v40 }
 0xf46   : > { %v2826_v14 = vmul.f32 0.7978846, %v2822_v56  ;;  %4274 = vtanh.f32 %v2824_v5  ;;  %3221 = vmatpush1.bf16.msra.mxu1 %v4185_v3  ;;  %v3130_v5 = vadd.f32 1.0, %v4703_v10 }
 0xf47   : > { %4276 = vtanh.f32 %v2825_v12  ;;  %3222 = vmatprep.subr.bf16.mxu1 %v4190_v4 }
 0xf48   : > { %v3118_v63 = vpop.f32.mrb[36].mxu1  ;;  %4278 = vtanh.f32 %v2826_v14 }
 0xf49   : > { %v3119_v11 = vadd.f32 %v3778_v28, %v3118_v63  ;;  %v4020_v1 = vpop.f32.mrb[37].mxu1  ;;  %v3147_v28 = vrot.slane %v3130_v5, %v4626_v62 }
 0xf4a   : > { %v3121_v32 = vpop.f32.mrb[38].mxu1  ;;  %3223 = vmatpush1.bf16.msra.mxu1 %v4188_v6  ;;  %v3020_v1 = vrot.slane %v5027_v17, %v4626_v62  ;;  %v4197_v17 = vld [vmem:[%s4512_s24 + $0x8] sm:$0xff]  }
 0xf4b   : > { %v3128_v60 = vmul.f32 %v3127_v31, %v3119_v11  ;;  %v4021_v53 = vpop.f32.mrb[39].mxu1  ;;  %3224 = vmatprep.subr.bf16.mxu1 %v4193_v8 }
 0xf4d   : > { %v5070_v30 = vadd.f32 %v4290_v57, %v3128_v60 }
 0xf4e   : > { %3225 = vmatpush1.bf16.msra.mxu1 %v4191_v13 }
 0xf4f   : > { %v4273_v15 = vpop.eup %4272  ;;  %v3131_v48 = vsel %vm1167_vm0, %v5070_v30, 0.0 }
 0xf50   : > { %v4275_v58 = vpop.eup %4274  ;;  %3132 = vadd.xlane.f32.xlu1 %v3131_v48  ;;  %v2831_v34 = vadd.f32 1.0, %v4273_v15  ;;  %v4194_v15 = vld [vmem:[%s4512_s24 + $0x40] sm:$0xff]  }
 0xf51   : > { %v4277_v0 = vpop.eup %4276  ;;  %v2832_v35 = vadd.f32 1.0, %v4275_v58  ;;  %v4195_v48 = vld [vmem:[%s4512_s24] sm:$0xff]   ;;  %3888 = vmatprep.subr.bf16.mxu0 %v4194_v15  ;;  %v4196_v58 = vld [vmem:[%s4512_s24 + $0x48] sm:$0xff]  }
 0xf52   : > { %v4279_v2 = vpop.eup %4278  ;;  %v2833_v47 = vadd.f32 1.0, %v4277_v0  ;;  %v2835_v21 = vmul.f32 %v2831_v34, %v2803_v19  ;;  %v4198_v34 = vld [vmem:[%s4512_s24 + $0x50] sm:$0xff]   ;;  %v4202_v19 = vld [vmem:[%s4512_s24 + $0x60] sm:$0xff]  }
 0xf53   : > { %v2834_v43 = vadd.f32 1.0, %v4279_v2  ;;  %v2836_v29 = vmul.f32 %v2832_v35, %v2804_v41  ;;  %v4199_v0 = vld [vmem:[%s4512_s24 + $0x10] sm:$0xff]   ;;  %v4200_v35 = vld [vmem:[%s4512_s24 + $0x58] sm:$0xff]   ;;  %v4205_v41 = vld [vmem:[%s4512_s24 + $0x28] sm:$0xff]  }
 0xf54   : > { %v2837_v23 = vmul.f32 %v2833_v47, %v2805_v38  ;;  %v4201_v2 = vld [vmem:[%s4512_s24 + $0x18] sm:$0xff]   ;;  %v4203_v38 = vld [vmem:[%s4512_s24 + $0x20] sm:$0xff]   ;;  %v4204_v47 = vld [vmem:[%s4512_s24 + $0x68] sm:$0xff]  }
 0xf55   : > { %v2838_v45 = vmul.f32 %v2834_v43, %v2806_v42  ;;  %v4206_v42 = vld [vmem:[%s4512_s24 + $0x70] sm:$0xff]  }
 0xf56   : > { %v2871_v50 = vpack.c.bf16 %v2837_v23, %v2835_v21  ;;  %v4207_v43 = vld [vmem:[%s4512_s24 + $0x30] sm:$0xff]   ;;  %v4208_v21 = vld [vmem:[%s4512_s24 + $0x78] sm:$0xff]  }
 0xf57   : > { %v2872_v54 = vpack.c.bf16 %v2838_v45, %v2836_v29  ;;  %v4209_v23 = vld [vmem:[%s4512_s24 + $0x38] sm:$0xff]  }
 0xf59   : > { %3008 = vmatprep.mubr.bf16.mxu0 %v2872_v54 }
 0xf5a   : > { %3009 = vmatmul.mubr.bf16.vlgmr.msra.gmra.mrb[28].mxu0 %v2871_v50 }
 0xf5b   : > { %3889 = vmatpush3.bf16.msra.mxu0 %v4195_v48 }
 0xf5c   : > { %3890 = vmatprep.subr.bf16.mxu0 %v4196_v58 }
 0xf5f   : > { %3891 = vmatpush3.bf16.msra.mxu0 %v4197_v17 }
 0xf60   : > { %3892 = vmatprep.subr.bf16.mxu0 %v4198_v34 }
 0xf63   : > { %3893 = vmatpush3.bf16.msra.mxu0 %v4199_v0 }
 0xf64   : > { %3894 = vmatprep.subr.bf16.mxu0 %v4200_v35 }
 0xf67   : > { %3895 = vmatpush3.bf16.msra.mxu0 %v4201_v2 }
 0xf68   : > { %3896 = vmatprep.subr.bf16.mxu0 %v4202_v19 }
 0xf6b   : > { %3897 = vmatpush3.bf16.msra.mxu0 %v4203_v38 }
 0xf6c   : > { %3898 = vmatprep.subr.bf16.mxu0 %v4204_v47 }
 0xf6f   : > { %3899 = vmatpush3.bf16.msra.mxu0 %v4205_v41 }
 0xf70   : > { %3900 = vmatprep.subr.bf16.mxu0 %v4206_v42 }
 0xf73   : > { %3901 = vmatpush3.bf16.msra.mxu0 %v4207_v43 }
 0xf74   : > { %3902 = vmatprep.subr.bf16.mxu0 %v4208_v21 }
 0xf77   : > { %3903 = vmatpush3.bf16.msra.mxu0 %v4209_v23 }
 0xfdd   : > { %v3133_v59 = vpop.xlane.xlu1 %3132 }
 0xfde   : > { %v3134_v52 = vmul.f32 0.015625, %v3133_v59  ;;  %v3163_v59 = vld [vmem:[%s5176_s23] sm:$0x3] }
 0xfe0   : > { %v3135_v55 = vsub.f32 %v5070_v30, %v3134_v52  ;;  %v3168_v52 = vrot.slane %v3163_v59, %v4626_v62 }
 0xfe2   : > { %v3136_v61 = vmul.f32 %v3135_v55, %v3135_v55 }
 0xfe4   : > { %v3137_v46 = vsel %vm1167_vm0, %v3136_v61, 0.0 }
 0xfe5   : > { %3138 = vadd.xlane.f32.xlu0 %v3137_v46 }
 0xffb   : > { %3150 = vrot.lane.b32.xlu0 %v3127_v31, %s4363_s18 }
0x102d   : > { %v3877_v33 = vpop.f32.mrb[28].mxu0 }
0x102e   : > { %v3878_v44 = vpop.f32.mrb[29].mxu0 }
0x102f   : > { %v3879_v16 = vadd.f32 %v3878_v44, %v3877_v33  ;;  %v3880_v18 = vpop.f32.mrb[30].mxu0 }
0x1030   : > { %v3881_v20 = vpop.f32.mrb[31].mxu0 }
0x1031   : > { %v3011_v22 = vadd.f32 %v3879_v16, %v3761_v37  ;;  %v3882_v24 = vadd.f32 %v3881_v20, %v3880_v18 }
0x1033   : > { %3023 = vrot.lane.b32.xlu1 %v3011_v22, %s4363_s18  ;;  %v3014_v25 = vadd.f32 %v3882_v24, %v3761_v37 }
0x1037   : > { %3025 = vrot.lane.b32.xlu1 %v3014_v25, %s4363_s18 }
0x1072   : > { %v3139_v26 = vpop.xlane.xlu0 %3138 }
0x1073   : > { %v3140_v9 = vmul.f32 0.015625, %v3139_v26 }
0x1075   : > { %v3141_v56 = vadd.f32 1e-06, %v3140_v9 }
0x1076   : > { %v3151_v63 = vpop.permute.xlu0 %3150 }
0x1077   : > { %4280 = vrsqrt.f32 %v3141_v56 }
0x1081   : > { %v4281_v49 = vpop.eup %4280 }
0x1082   : > { %v3143_v12 = vmul.f32 %v4281_v49, %v3135_v55  ;;  %v3172_v55 = vrot.slane %v3163_v59, %v4746_v27 }
0x1084   : > { %v3148_v14 = vmul.f32 %v3147_v28, %v3143_v12  ;;  %v3793_v12 = vld [vmem:[#allocation2] ss:$0 sm:$0xff] }
0x1086   : > { %v3153_v31 = vadd.f32 %v3151_v63, %v3148_v14 }
0x1088   : > { %v3162_v11 = vpack.c.bf16 %v3153_v31, %v3153_v31 }
0x108a   : > { %3792 = vmatmul.mubr.msk.bf16.vlgmr.msra.gmra.mrb[40].mxu1 %vm1167_vm0, %v3162_v11 }
0x10a5   : > { %v3024_v32 = vpop.permute.xlu1 %3023 }
0x10a6   : > { %v3029_v60 = vmul.f32 %v3024_v32, %v3020_v1 }
0x10a8   : > { %3033 = vrot.lane.b32.xlu1 %v3029_v60, %s4363_s18 }
0x10a9   : > { %v3026_v53 = vpop.permute.xlu1 %3025 }
0x10aa   : > { %v3030_v57 = vmul.f32 %v3026_v53, %v3020_v1  ;;  %v3457_v1 = vrot.slane %v4703_v10, %v4626_v62 }
0x10ac   : > { %3035 = vrot.lane.b32.xlu0 %v3030_v57, %s4363_s18 }
0x111a   : > { %v3034_v29 = vpop.permute.xlu1 %3033 }
0x111b   : > { %v3039_v45 = vadd.f32 %v3034_v29, %v5000_v36 }
0x111d   : > { %3468 = vst.msk [vmem:[%s1021_s1] sm:$0xff] %vm1167_vm0, %v3039_v45 }
0x111e   : > { %v3036_v50 = vpop.permute.xlu0 %3035 }
0x111f   : > { %v3040_v54 = vadd.f32 %v3036_v50, %v5003_v39 }
0x1121   : > { %3469 = vst.msk [vmem:[%s1021_s1 + $0x8] sm:$0xff] %vm1167_vm0, %v3040_v54 }
0x115d   : > { %v3252_v61 = vpop.f32.mrb[40].mxu1 }
0x115e   : > { %v3253_v46 = vadd.f32 %v3252_v61, %v3168_v52  ;;  %v3254_v7 = vpop.f32.mrb[41].mxu1 }
0x115f   : > { %v3255_v51 = vadd.f32 %v3254_v7, %v3172_v55  ;;  %v3256_v40 = vpop.f32.mrb[42].mxu1 }
0x1160   : > { %v3261_v3 = vmul.f32 0.044715, %v3253_v46  ;;  %v3257_v4 = vpop.f32.mrb[43].mxu1  ;;  %v3259_v20 = vmul.f32 0.5, %v3253_v46 }
0x1161   : > { %v3262_v36 = vmul.f32 0.044715, %v3255_v51  ;;  %v3260_v24 = vmul.f32 0.5, %v3255_v51 }
0x1162   : > { %v3263_v6 = vmul.f32 %v3261_v3, %v3253_v46 }
0x1163   : > { %v3264_v8 = vmul.f32 %v3262_v36, %v3255_v51 }
0x1164   : > { %v3265_v13 = vmul.f32 %v3263_v6, %v3253_v46 }
0x1165   : > { %v3266_v33 = vmul.f32 %v3264_v8, %v3255_v51 }
0x1166   : > { %v3267_v39 = vadd.f32 %v3265_v13, %v3253_v46 }
0x1167   : > { %v3268_v37 = vadd.f32 %v3266_v33, %v3255_v51 }
0x1168   : > { %v3269_v44 = vmul.f32 0.7978846, %v3267_v39 }
0x1169   : > { %v3270_v16 = vmul.f32 0.7978846, %v3268_v37 }
0x116a   : > { %4282 = vtanh.f32 %v3269_v44 }
0x116b   : > { %4284 = vtanh.f32 %v3270_v16 }
0x1174   : > { %v4283_v18 = vpop.eup %4282 }
0x1175   : > { %v4285_v27 = vpop.eup %4284  ;;  %v3273_v22 = vadd.f32 1.0, %v4283_v18 }
0x1176   : > { %v3274_v25 = vadd.f32 1.0, %v4285_v27 }
0x1177   : > { %v3275_v26 = vmul.f32 %v3273_v22, %v3259_v20 }
0x1178   : > { %v3276_v9 = vmul.f32 %v3274_v25, %v3260_v24 }
0x1179   : > { %v3309_v5 = vpack.c.bf16 %v3275_v26, %v3275_v26 }
0x117a   : > { %v3310_v56 = vpack.c.bf16 %v3276_v9, %v3276_v9 }
0x117c   : > { %3446 = vmatprep.mubr.bf16.mxu0 %v3310_v56 }
0x117d   : > { %3447 = vmatmul.mubr.bf16.vlgmr.msra.gmra.mrb[32].mxu0 %v3309_v5 }
0x1250   : > { %v3904_v49 = vpop.f32.mrb[32].mxu0 }
0x1251   : > { %v3905_v28 = vpop.f32.mrb[33].mxu0 }
0x1252   : > { %v3906_v14 = vadd.f32 %v3905_v28, %v3904_v49  ;;  %v3907_v63 = vpop.f32.mrb[34].mxu0 }
0x1253   : > { %v3908_v31 = vpop.f32.mrb[35].mxu0 }
0x1254   : > { %v3449_v11 = vadd.f32 %v3906_v14, %v3793_v12 }
0x1256   : > { %3459 = vrot.lane.b32.xlu1 %v3449_v11, %s4363_s18 }
0x12c8   : > { %v3460_v32 = vpop.permute.xlu1 %3459 }
0x12c9   : > { %v3462_v60 = vmul.f32 %v3460_v32, %v3457_v1 }
0x12cb   : > { %3464 = vrot.lane.b32.xlu0 %v3462_v60, %s4363_s18 }
0x133d   : > { %v3465_v53 = vpop.permute.xlu0 %3464 }
0x133e   : > { %v3467_v57 = vadd.f32 %v3465_v53, %v5070_v30 }
0x1340   : > { %3470 = vst.msk [vmem:[%s1025_s0] sm:$0xff] %vm1167_vm0, %v3467_v57 }
0x1341 PF: > { %s73_s15 = sadd.s32 1, %s4329_s15  }
0x1342   : > { %p70_p2 = scmp.ge.s32.totalorder %s73_s15, 4  }
0x1344   :  { %72 = sbr.rel (!%p70_p2) target bundleno = 47 (0x2f), region = 225 }
0x134b   :  { %3506 = vsyncpa [#allocation3], 1 }
0x134c   :  { %3508 = vsyncpa [#allocation3 + $0x1], 1 }

// kernel: flux_forward.10
= control target key start
LH: loop header
LB: loop body
LE: loop exit
PB: predicated region body
PF: predicated region fallthrough
CT: control target
= control target key end

     0   :  { %s2740_s18 = smov 0   ;;  %s3286_s0 = inlined_call_operand.vmem [shape: f32[2,24,64], index: 0, kind: input, shape index: {}]   ;;  %s3287_s1 = inlined_call_operand.vmem [shape: f32[2,1,64], index: 1, kind: input, shape index: {}]   ;;  %s3288_s2 = inlined_call_operand.vmem [shape: f32[2,24,32], index: 2, kind: input, shape index: {}]   ;;  %s3289_s3 = inlined_call_operand.vmem [shape: f32[2,24,32], index: 3, kind: input, shape index: {}]   ;;  %s3290_s4 = inlined_call_operand.vmem [shape: bf16[64,192], index: 4, kind: input, shape index: {}]   ;;  %s3291_s5 = inlined_call_operand.vmem [shape: f32[1,192], index: 5, kind: input, shape index: {}]   ;;  %s3292_s6 = inlined_call_operand.vmem [shape: bf16[64,192], index: 6, kind: input, shape index: {}]   ;;  %s3293_s7 = inlined_call_operand.vmem [shape: f32[1,192], index: 7, kind: input, shape index: {}]   ;;  %s3294_s8 = inlined_call_operand.vmem [shape: bf16[64,256], index: 8, kind: input, shape index: {}]   ;;  %s3295_s9 = inlined_call_operand.vmem [shape: f32[1,256], index: 9, kind: input, shape index: {}]   ;;  %s3296_s10 = inlined_call_operand.vmem [shape: f32[1,32], index: 10, kind: input, shape index: {}]   ;;  %s3297_s11 = inlined_call_operand.vmem [shape: f32[1,32], index: 11, kind: input, shape index: {}]   ;;  %s3298_s12 = inlined_call_operand.vmem [shape: bf16[64,64], index: 12, kind: input, shape index: {}]   ;;  %s3299_s13 = inlined_call_operand.vmem [shape: bf16[256,64], index: 13, kind: input, shape index: {}]   ;;  %s3300_s14 = inlined_call_operand.vmem [shape: f32[1,64], index: 14, kind: input, shape index: {}]   ;;  %s3301_s15 = inlined_call_operand.vmem [shape: f32[2,24,64], index: 15, kind: output, shape index: {}]  }
   0x1 LB: > { %s2249_s19 = sadd.s32 4294967295, %s2653_s18   ;;  %p2253_p0 = scmp.ge.s32.totalorder %s2653_s18, 1  ;;  %s2653_s18 = sphi %s2740_s18, %s25_s18  }
   0x2   : > { %p465_p1 = scmp.lt.s32.totalorder %s2653_s18, 3 }
   0x4   : > { %p466_p2 = pnand %p2253_p0, %p465_p1 }
   0x5   : > { %p526_p3 = scmp.lt.s32.totalorder (!%p466_p2), %s2249_s19, 1  ;;  %v2518_v0 = vld [vmem:[%s3290_s4 + $0x4] ss:$8 sps:$4 sm:$0xff] (!%p466_p2)   ;;  %v2520_v1 = vld [vmem:[%s3290_s4] ss:$8 sps:$4 sm:$0xff] (!%p466_p2)   ;;  %v2655_v3 = vmov (!%p466_p2), 0   ;;  %v560_v37 = vlaneseq (!%p466_p2) }
   0x6   : > { %469 = sbr.rel (%p466_p2) target bundleno = 3342 (0xd0e), region = 80  ;;  %657 = vmatprep.subr.bf16.mxu0 (!%p466_p2), %v2518_v0  ;;  %v2521_v2 = vld [vmem:[%s3290_s4 + $0x14] ss:$8 sps:$4 sm:$0xff] (!%p466_p2)   ;;  %689 = vmatprep.mubr.bf16.mxu0 (!%p466_p2), %v2655_v3  ;;  %v2523_v4 = vld [vmem:[%s3290_s4 + $0x10] ss:$8 sps:$4 sm:$0xff] (!%p466_p2)   ;;  %vm653_vm0 = vcmask (!%p466_p2), 523264  }
   0x7   : > { %658 = vmatpush1.bf16.msra.mxu0 (!%p466_p2), %v2520_v1  ;;  %875 = vmatprep.mubr.bf16.mxu1 (!%p466_p2), %v2655_v3  ;;  %v2524_v5 = vld [vmem:[%s3290_s4 + $0x24] ss:$8 sps:$4 sm:$0xff] (!%p466_p2)   ;;  %v2526_v6 = vld [vmem:[%s3290_s4 + $0x20] ss:$8 sps:$4 sm:$0xff] (!%p466_p2)   ;;  %v2527_v8 = vld [vmem:[%s3290_s4 + $0x34] ss:$8 sps:$4 sm:$0xff] (!%p466_p2)  }
   0x8   : > { %659 = vmatprep.subr.bf16.mxu0 (!%p466_p2), %v2521_v2  ;;  %v2529_v15 = vld [vmem:[%s3290_s4 + $0x30] ss:$8 sps:$4 sm:$0xff] (!%p466_p2)   ;;  %v2797_v38 = vshrl.u32 (!%p466_p2), %v560_v37, 7  ;;  %v601_v40 = vld [vmem:[%s3291_s5] sm:$0x3] (!%p466_p2)  ;;  %s2656_s17 = smov (!%p466_p2), 64  }
   0x9   : > { %v2530_v0 = vld [vmem:[%s3292_s6 + $0x4] ss:$8 sps:$4 sm:$0xff] (!%p466_p2)   ;;  %v2532_v1 = vld [vmem:[%s3294_s8] ss:$8 sps:$4 sm:$0xff] (!%p466_p2)   ;;  %vm1009_vm1 = vcmask (!%p466_p2), 261120   ;;  %s2659_s29 = smov (!%p466_p2), 96  }
   0xa   : > { %v2800_v39 = vsub.s32 (!%p466_p2), 1, %v2797_v38  ;;  %v2809_v55 = vsub.s32 (!%p466_p2), 0, %v2797_v38  ;;  %v2534_v2 = vld [vmem:[%s3294_s8 + $0x4] ss:$8 sps:$4 sm:$0xff] (!%p466_p2)   ;;  %843 = vmatprep.subr.bf16.mxu1 (!%p466_p2), %v2530_v0  ;;  %vm1345_vm8 = vcmask (!%p466_p2), 1043456   ;;  %vm1301_vm9 = vcmask (!%p466_p2), 195584  }
   0xb   : > { %660 = vmatpush1.bf16.msra.mxu0 (!%p466_p2), %v2523_v4  ;;  %v2535_v4 = vld [vmem:[%s3292_s6] ss:$8 sps:$4 sm:$0xff] (!%p466_p2)  }
   0xc   : > { %661 = vmatprep.subr.bf16.mxu0 (!%p466_p2), %v2524_v5  ;;  %v650_v41 = vrot.slane (!%p466_p2), %v601_v40, %v2800_v39  ;;  %v646_v58 = vrot.slane (!%p466_p2), %v601_v40, %v2809_v55  ;;  %v2536_v5 = vld [vmem:[%s3292_s6 + $0x14] ss:$8 sps:$4 sm:$0xff] (!%p466_p2)   ;;  %844 = vmatpush1.bf16.msra.mxu1 (!%p466_p2), %v2535_v4 }
   0xd   : > { %s3307_s19 = smov (!%p526_p3, %s2249_s19), 1  ;;  %845 = vmatprep.subr.bf16.mxu1 %v2536_v5 }
   0xe   : > { %s2762_s28 = smul.u32 24, %s3307_s19  ;;  %s533_s20 = scalar_lea.vmem %s3287_s1, %s3307_s19 }
   0xf   : > { %v553_v7 = vld [vmem:[%s533_s20] sm:$0x1]  ;;  %662 = vmatpush1.bf16.msra.mxu0 %v2526_v6  ;;  %s2658_s19 = smov 32  }
  0x10   : > { %s2777_s25 = scalar_lea.vmem %s3286_s0, %s2762_s28  ;;  %v2262_v9 = vmul.f32 -1.442695, %v553_v7  ;;  %663 = vmatprep.subr.bf16.mxu0 %v2527_v8  ;;  %v2541_v8 = vld [vmem:[%s3292_s6 + $0x10] ss:$8 sps:$4 sm:$0xff]   ;;  %s543_s16 = scalar_lea.vmem %s3289_s3, %s2762_s28 }
  0x11   : > { %v550_v10 = vld [vmem:[%s2777_s25] sm:$0xff]  ;;  %v552_v11 = vld [vmem:[%s2777_s25 + $0x10] sm:$0xff]  ;;  %v551_v12 = vld [vmem:[%s2777_s25 + $0x8] sm:$0xff]  ;;  %846 = vmatpush1.bf16.msra.mxu1 %v2541_v8  ;;  %s538_s22 = scalar_lea.vmem %s3288_s2, %s2762_s28 }
  0x12   : > { %v699_v13 = vsel %vm653_vm0, %v550_v10, 0.0  ;;  %v705_v14 = vsel %vm653_vm0, %v552_v11, 0.0  ;;  %2574 = vpow2.f32 %v2262_v9  ;;  %v702_v16 = vsel %vm653_vm0, %v551_v12, 0.0  ;;  %v2538_v9 = vld [vmem:[%s3294_s8 + $0x10] ss:$8 sps:$4 sm:$0xff]  }
  0x13   : > { %700 = vadd.xlane.f32.xlu0 %v699_v13  ;;  %706 = vadd.xlane.f32.xlu1 %v705_v14  ;;  %v2547_v13 = vld [vmem:[%s3292_s6 + $0x20] ss:$8 sps:$4 sm:$0xff]  }
  0x14   : > { %664 = vmatpush1.bf16.msra.mxu0 %v2529_v15  ;;  %v2544_v14 = vld [vmem:[%s3294_s8 + $0x20] ss:$8 sps:$4 sm:$0xff]   ;;  %v2548_v15 = vld [vmem:[%s3292_s6 + $0x34] ss:$8 sps:$4 sm:$0xff]  }
  0x15   : > { %954 = vmatprep.subr.bf16.mxu0 %v2534_v2 }
  0x17   : > { %703 = vadd.xlane.f32.xlu0 %v702_v16  ;;  %v2552_v16 = vld [vmem:[%s3294_s8 + $0x34] ss:$8 sps:$4 sm:$0xff]  }
  0x1c   : > { %v2575_v17 = vpop.eup %2574 }
  0x1d   : > { %v588_v18 = vadd.f32 1.0, %v2575_v17  ;;  %v2553_v17 = vld [vmem:[%s3292_s6 + $0x30] ss:$8 sps:$4 sm:$0xff]  }
  0x1f   : > { %2576 = vrcp.f32 %v588_v18  ;;  %v2550_v18 = vld [vmem:[%s3294_s8 + $0x30] ss:$8 sps:$4 sm:$0xff]  }
  0x29   : > { %v2577_v19 = vpop.eup %2576 }
  0x2a   : > { %v591_v20 = vmul.f32 %v2577_v19, %v553_v7  ;;  %v2540_v7 = vld [vmem:[%s3294_s8 + $0x14] ss:$8 sps:$4 sm:$0xff]  }
  0x2c   : > { %v600_v21 = vpack.c.bf16 %v591_v20, %v591_v20 }
  0x2e   : > { %2271 = vmatmul.mubr.msk.bf16.vlgmr.msra.gmra.mrb[0].mxu0 %vm653_vm0, %v600_v21 }
  0x2f   : > { %986 = vmatprep.mubr.bf16.mxu0 %v2655_v3  ;;  %955 = vmatpush1.bf16.msra.mxu0 %v2532_v1 }
  0x30   : > { %956 = vmatprep.subr.bf16.mxu0 %v2540_v7 }
  0x33   : > { %957 = vmatpush1.bf16.msra.mxu0 %v2538_v9 }
  0xa0   : > { %v701_v22 = vpop.xlane.xlu0 %700  ;;  %v707_v23 = vpop.xlane.xlu1 %706 }
  0xa1   : > { %v709_v24 = vmul.f32 0.015625, %v701_v22  ;;  %v711_v25 = vmul.f32 0.015625, %v707_v23 }
  0xa3   : > { %v712_v26 = vsub.f32 %v550_v10, %v709_v24  ;;  %v714_v27 = vsub.f32 %v552_v11, %v711_v25  ;;  %v2542_v10 = vld [vmem:[%s3292_s6 + $0x24] ss:$8 sps:$4 sm:$0xff]  }
  0xa4   : > { %v704_v28 = vpop.xlane.xlu0 %703  ;;  %847 = vmatprep.subr.bf16.mxu1 %v2542_v10 }
  0xa5   : > { %v710_v29 = vmul.f32 0.015625, %v704_v28  ;;  %v715_v30 = vmul.f32 %v712_v26, %v712_v26  ;;  %v717_v31 = vmul.f32 %v714_v27, %v714_v27  ;;  %848 = vmatpush1.bf16.msra.mxu1 %v2547_v13 }
  0xa6   : > { %849 = vmatprep.subr.bf16.mxu1 %v2548_v15 }
  0xa7   : > { %v713_v32 = vsub.f32 %v551_v12, %v710_v29  ;;  %v718_v33 = vsel %vm653_vm0, %v715_v30, 0.0  ;;  %v724_v34 = vsel %vm653_vm0, %v717_v31, 0.0  ;;  %v2546_v12 = vld [vmem:[%s3294_s8 + $0x24] ss:$8 sps:$4 sm:$0xff]  }
  0xa8   : > { %719 = vadd.xlane.f32.xlu1 %v718_v33  ;;  %958 = vmatprep.subr.bf16.mxu0 %v2546_v12 }
  0xa9   : > { %v716_v35 = vmul.f32 %v713_v32, %v713_v32  ;;  %959 = vmatpush1.bf16.msra.mxu0 %v2544_v14  ;;  %850 = vmatpush1.bf16.msra.mxu1 %v2553_v17 }
  0xaa   : > { %960 = vmatprep.subr.bf16.mxu0 %v2552_v16 }
  0xab   : > { %v721_v36 = vsel %vm653_vm0, %v716_v35, 0.0  ;;  %v779_v35 = vld [vmem:[%s3293_s7] sm:$0x3] }
  0xac   : > { %725 = vadd.xlane.f32.xlu1 %v724_v34  ;;  %722 = vadd.xlane.f32.xlu0 %v721_v36  ;;  %v902_v36 = vld [vmem:[%s3295_s9] sm:$0x3]  ;;  %v784_v40 = vrot.slane %v779_v35, %v2809_v55 }
  0xad   : > { %961 = vmatpush1.bf16.msra.mxu0 %v2550_v18 }
 0x101   : > { %v691_v42 = vpop.f32.mrb[0].mxu0 }
 0x102   : > { %v693_v43 = vpop.f32.mrb[1].mxu0  ;;  %v692_v60 = vadd.f32 %v691_v42, %v646_v58 }
 0x103   : > { %v2806_v44 = vadd.f32 %v693_v43, %v650_v41  ;;  %v695_v45 = vpop.f32.mrb[2].mxu0  ;;  %v2882_v41 = vrot.slane %v902_v36, %v2809_v55 }
 0x104   : > { %v696_v46 = vpop.f32.mrb[3].mxu0  ;;  %v761_v63 = vrot.slane %v692_v60, %v2809_v55  ;;  %v698_v19 = vadd.f32 1.0, %v692_v60  ;;  %v2888_v45 = vrot.slane %v779_v35, %v2800_v39 }
 0x106   : > { %v742_v22 = vrot.slane %v698_v19, %v2809_v55 }
 0x135   : > { %v720_v47 = vpop.xlane.xlu1 %719 }
 0x136   : > { %v727_v48 = vmul.f32 0.015625, %v720_v47 }
 0x138   : > { %v730_v49 = vadd.f32 1e-06, %v727_v48 }
 0x139   : > { %v723_v50 = vpop.xlane.xlu0 %722  ;;  %v726_v51 = vpop.xlane.xlu1 %725 }
 0x13a   : > { %2578 = vrsqrt.f32 %v730_v49  ;;  %v728_v52 = vmul.f32 0.015625, %v723_v50  ;;  %v729_v54 = vmul.f32 0.015625, %v726_v51 }
 0x13c   : > { %v731_v53 = vadd.f32 1e-06, %v728_v52  ;;  %v732_v56 = vadd.f32 1e-06, %v729_v54 }
 0x13e   : > { %2580 = vrsqrt.f32 %v731_v53 }
 0x13f   : > { %2582 = vrsqrt.f32 %v732_v56 }
 0x144   : > { %v2579_v57 = vpop.eup %2578 }
 0x145   : > { %v736_v59 = vmul.f32 %v2579_v57, %v712_v26 }
 0x147   : > { %746 = vrot.lane.b32.xlu0 %v736_v59, %s2656_s17 }
 0x148   : > { %v2581_v61 = vpop.eup %2580 }
 0x149   : > { %v737_v62 = vmul.f32 %v2581_v61, %v713_v32  ;;  %v2583_v6 = vpop.eup %2582 }
 0x14a   : > { %v738_v11 = vmul.f32 %v2583_v6, %v714_v27 }
 0x14b   : > { %748 = vrot.lane.b32.xlu1 %v737_v62, %s2656_s17 }
 0x14f   : > { %763 = vrot.lane.b32.xlu1 %v761_v63, %s2656_s17 }
 0x153   : > { %750 = vrot.lane.b32.xlu1 %v738_v11, %s2656_s17 }
 0x1b9   : > { %v747_v20 = vpop.permute.xlu0 %746 }
 0x1ba   : > { %v755_v23 = vmul.f32 %v747_v20, %v742_v22 }
 0x1bd   : > { %v749_v21 = vpop.permute.xlu1 %748 }
 0x1be   : > { %v756_v24 = vmul.f32 %v749_v21, %v742_v22 }
 0x1c1   : > { %v764_v25 = vpop.permute.xlu1 %763 }
 0x1c2   : > { %v766_v26 = vadd.f32 %v764_v25, %v755_v23  ;;  %v767_v27 = vadd.f32 %v764_v25, %v756_v24 }
 0x1c4   : > { %v777_v28 = vpack.c.bf16 %v767_v27, %v766_v26 }
 0x1c5   : > { %v751_v29 = vpop.permute.xlu1 %750 }
 0x1c6   : > { %v757_v30 = vmul.f32 %v751_v29, %v742_v22  ;;  %793 = vrot.lane.b32.xlu0 %v777_v28, %s2656_s17 }
 0x1c8   : > { %v768_v31 = vadd.f32 %v764_v25, %v757_v30 }
 0x1ca   : > { %v778_v32 = vpack.c.bf16 %v768_v31, %v768_v31 }
 0x1cc   : > { %795 = vrot.lane.b32.xlu1 %v778_v32, %s2656_s17 }
 0x238   : > { %v794_v33 = vpop.permute.xlu0 %793 }
 0x239   : > { %2280 = vmatmul.mubr.msk.bf16.vlgmr.msra.gmra.mrb[0].mxu1 %vm653_vm0, %v794_v33  ;;  %2290 = vmatmul.mubr.msk.bf16.vlgmr.msra.gmra.mrb[4].mxu0 %vm653_vm0, %v794_v33 }
 0x23a   : > { %885 = vmatprep.mubr.bf16.mxu1 %v2655_v3  ;;  %996 = vmatprep.mubr.bf16.mxu0 %v2655_v3  ;;  %v2885_v3 = vrot.slane %v902_v36, %v2800_v39 }
 0x23e   : > { %v796_v34 = vpop.permute.xlu1 %795 }
 0x241   : > { %2281 = vmatmul.mubr.msk.bf16.gmra.mrb[4].mxu1 %vm653_vm0, %v796_v34  ;;  %2291 = vmatmul.mubr.msk.bf16.gmra.mrb[8].mxu0 %vm653_vm0, %v796_v34 }
 0x30c   : > { %v877_v42 = vpop.f32.mrb[0].mxu1  ;;  %v988_v43 = vpop.f32.mrb[4].mxu0 }
 0x30d   : > { %v2890_v46 = vadd.f32 %v877_v42, %v784_v40  ;;  %v989_v47 = vadd.f32 %v988_v43, %v2882_v41  ;;  %v879_v48 = vpop.f32.mrb[1].mxu1  ;;  %v990_v49 = vpop.f32.mrb[5].mxu0 }
 0x30e   : > { %v991_v50 = vadd.f32 %v990_v49, %v2885_v3  ;;  %v881_v51 = vpop.f32.mrb[2].mxu1  ;;  %v992_v52 = vpop.f32.mrb[6].mxu0  ;;  %v880_v59 = vadd.f32 %v879_v48, %v2888_v45 }
 0x30f   : > { %v1832_v53 = vmul.f32 0.044715, %v989_v47  ;;  %v2894_v54 = vadd.f32 %v881_v51, %v784_v40  ;;  %v993_v56 = vadd.f32 %v992_v52, %v2882_v41  ;;  %v883_v57 = vpop.f32.mrb[3].mxu1  ;;  %v994_v58 = vpop.f32.mrb[7].mxu0  ;;  %v2899_v39 = vmul.f32 %v2890_v46, %v2890_v46 }
 0x310   : > { %v1833_v60 = vmul.f32 0.044715, %v991_v50  ;;  %v884_v61 = vadd.f32 %v883_v57, %v2888_v45  ;;  %v995_v62 = vadd.f32 %v994_v58, %v2885_v3  ;;  %v1826_v36 = vmul.f32 0.5, %v989_v47 }
 0x311   : > { %v1838_v63 = vmul.f32 %v1832_v53, %v989_v47  ;;  %v1834_v0 = vmul.f32 0.044715, %v993_v56  ;;  %1045 = vrot.lane.b32.xlu0 %v2899_v39, %s2656_s17  ;;  %v2908_v1 = vmul.f32 %v2894_v54, %v2894_v54  ;;  %v1827_v43 = vmul.f32 0.5, %v991_v50 }
 0x312   : > { %v1839_v2 = vmul.f32 %v1833_v60, %v991_v50  ;;  %v2910_v4 = vpack.c.bf16 %v884_v61, %v880_v59  ;;  %v1835_v5 = vmul.f32 0.044715, %v995_v62  ;;  %v1829_v48 = vmul.f32 0.5, %v995_v62 }
 0x313   : > { %v1844_v6 = vmul.f32 %v1838_v63, %v989_v47  ;;  %v1840_v7 = vmul.f32 %v1834_v0, %v993_v56  ;;  %1047 = vrot.lane.b32.xlu1 %v2908_v1, %s2656_s17  ;;  %v1010_v61 = vsel %vm1009_vm1, %v2899_v39, 0.0  ;;  %v1013_v0 = vsel %vm1009_vm1, %v2908_v1, 0.0 }
 0x314   : > { %v1845_v8 = vmul.f32 %v1839_v2, %v991_v50  ;;  %v1841_v9 = vmul.f32 %v1835_v5, %v995_v62  ;;  %v887_v10 = vpop.f32.mrb[4].mxu1  ;;  %v2914_v11 = vpop.f32.mrb[8].mxu0  ;;  %v2952_v5 = vld [vmem:[%s3297_s11] ss:$0 sm:$0xff] }
 0x315   : > { %v1850_v12 = vadd.f32 %v1844_v6, %v989_v47  ;;  %v1846_v13 = vmul.f32 %v1840_v7, %v993_v56  ;;  %v2916_v14 = vadd.f32 %v887_v10, %v784_v40  ;;  %v2918_v15 = vpop.f32.mrb[5].mxu1  ;;  %v2920_v16 = vpop.f32.mrb[9].mxu0  ;;  %v1828_v40 = vmul.f32 0.5, %v993_v56 }
 0x316   : > { %v1847_v17 = vmul.f32 %v1841_v9, %v995_v62  ;;  %v891_v18 = vpop.f32.mrb[6].mxu1  ;;  %v1002_v19 = vpop.f32.mrb[10].mxu0  ;;  %v1851_v20 = vadd.f32 %v1845_v8, %v991_v50  ;;  %v562_v6 = vadd.s32 8, %v2797_v38  ;;  %v566_v7 = vand.u32 127, %v560_v37 }
 0x317   : > { %v1856_v21 = vmul.f32 0.7978846, %v1850_v12  ;;  %v1852_v22 = vadd.f32 %v1846_v13, %v993_v56  ;;  %v892_v23 = vpop.f32.mrb[7].mxu1  ;;  %v1003_v24 = vpop.f32.mrb[11].mxu0  ;;  %v2924_v25 = vmul.f32 %v2916_v14, %v2916_v14  ;;  %v567_v8 = vxor.u32 1, %v2797_v38 }
 0x318   : > { %v1853_v26 = vadd.f32 %v1847_v17, %v995_v62  ;;  %v1857_v27 = vmul.f32 0.7978846, %v1851_v20  ;;  %v568_v9 = vxor.u32 1, %v562_v6  ;;  %v563_v10 = vadd.s32 16, %v2797_v38  ;;  %v2992_v6 = vld [vmem:[%s3296_s10] ss:$0 sm:$0xff] }
 0x319   : > { %2584 = vtanh.f32 %v1856_v21  ;;  %v1858_v28 = vmul.f32 0.7978846, %v1852_v22  ;;  %1049 = vrot.lane.b32.xlu0 %v2924_v25, %s2656_s17  ;;  %v1016_v2 = vsel %vm1009_vm1, %v2924_v25, 0.0  ;;  %vm571_vm2 = vcmp.eq.s32.totalorder %v567_v8, %v566_v7 }
 0x31a   : > { %v1859_v29 = vmul.f32 0.7978846, %v1853_v26  ;;  %2586 = vtanh.f32 %v1857_v27  ;;  %vm572_vm3 = vcmp.eq.s32.totalorder %v568_v9, %v566_v7  ;;  %v564_v12 = vadd.s32 24, %v2797_v38 }
 0x31b   : > { %2588 = vtanh.f32 %v1858_v28  ;;  %vm2961_vm4 = vmpackc.low %vm572_vm3, %vm571_vm2  ;;  %v2657_v17 = vmov 1.0|1.0   ;;  %v569_v18 = vxor.u32 1, %v563_v10 }
 0x31c   : > { %2590 = vtanh.f32 %v1859_v29  ;;  %2417 = vmatprep.subr.msk.bf16.mxu1 %vm2961_vm4, %v2657_v17  ;;  %v570_v37 = vxor.u32 1, %v564_v12 }
 0x31d   : > { %2418 = vmatpush3.bf16.msk.msra.mxu1 %vm2961_vm4, %v2657_v17  ;;  %vm573_vm5 = vcmp.eq.s32.totalorder %v569_v18, %v566_v7 }
 0x31e   : > { %vm574_vm6 = vcmp.eq.s32.totalorder %v570_v37, %v566_v7 }
 0x31f   : > { %vm2971_vm7 = vmpackc.low %vm574_vm6, %vm573_vm5 }
 0x320   : > { %2419 = vmatprep.subr.msk.bf16.mxu1 %vm2971_vm7, %v2657_v17 }
 0x321   : > { %2420 = vmatpush3.bf16.msk.msra.mxu1 %vm2971_vm7, %v2657_v17 }
 0x322   : > { %2425 = vmatprep.subr.msk.bf16.mxu1 %vm2961_vm4, %v2657_v17 }
 0x323   : > { %v2585_v30 = vpop.eup %2584 }
 0x324   : > { %v2587_v31 = vpop.eup %2586  ;;  %v1868_v32 = vadd.f32 1.0, %v2585_v30 }
 0x325   : > { %v2589_v33 = vpop.eup %2588  ;;  %v1869_v34 = vadd.f32 1.0, %v2587_v31 }
 0x326   : > { %v2591_v35 = vpop.eup %2590  ;;  %v1870_v42 = vadd.f32 1.0, %v2589_v33  ;;  %v2928_v51 = vmul.f32 %v1868_v32, %v1826_v36 }
 0x327   : > { %v1871_v49 = vadd.f32 1.0, %v2591_v35  ;;  %v2932_v53 = vmul.f32 %v1869_v34, %v1827_v43 }
 0x328   : > { %v2930_v52 = vmul.f32 %v1870_v42, %v1828_v40 }
 0x329   : > { %v2934_v57 = vmul.f32 %v1871_v49, %v1829_v48 }
 0x32a   : > { %v1912_v58 = vpack.c.bf16 %v2930_v52, %v2928_v51  ;;  %v2572_v51 = vld [vmem:[%s3298_s12 + $0x10] sm:$0xff]   ;;  %v2573_v52 = vld [vmem:[%s3298_s12 + $0x18] sm:$0xff]  }
 0x32b   : > { %v1913_v59 = vpack.c.bf16 %v2934_v57, %v2932_v53  ;;  %v2560_v53 = vld [vmem:[%s3299_s13 + $0x58] sm:$0xff]  }
 0x383   : > { %v1046_v47 = vpop.permute.xlu0 %1045 }
 0x384   : > { %v1054_v50 = vsel %vm1009_vm1, %v1046_v47, 0.0 }
 0x385   : > { %v1048_v56 = vpop.permute.xlu1 %1047  ;;  %1055 = vadd.xlane.f32.xlu1 %v1054_v50 }
 0x386   : > { %v1057_v60 = vsel %vm1009_vm1, %v1048_v56, 0.0 }
 0x387   : > { %1058 = vadd.xlane.f32.xlu0 %v1057_v60 }
 0x389   : > { %1011 = vadd.xlane.f32.xlu1 %v1010_v61 }
 0x38b   : > { %v1050_v62 = vpop.permute.xlu0 %1049 }
 0x38c   : > { %v1060_v63 = vsel %vm1009_vm1, %v1050_v62, 0.0 }
 0x38d   : > { %1061 = vadd.xlane.f32.xlu0 %v1060_v63  ;;  %1014 = vadd.xlane.f32.xlu1 %v1013_v0 }
 0x391   : > { %1017 = vadd.xlane.f32.xlu1 %v1016_v2 }
 0x3a3   : > { %1080 = vrot.lane.b32.xlu0 %v2952_v5, %s2656_s17 }
 0x412   : > { %v1056_v38 = vpop.xlane.xlu1 %1055 }
 0x413   : > { %v1063_v20 = vmul.f32 0.03125, %v1056_v38 }
 0x414   : > { %v1059_v21 = vpop.xlane.xlu0 %1058 }
 0x415   : > { %v1066_v22 = vadd.f32 1e-06, %v1063_v20  ;;  %v1064_v23 = vmul.f32 0.03125, %v1059_v21 }
 0x416   : > { %v1012_v24 = vpop.xlane.xlu1 %1011 }
 0x417   : > { %2592 = vrsqrt.f32 %v1066_v22  ;;  %v1067_v26 = vadd.f32 1e-06, %v1064_v23  ;;  %v1020_v27 = vmul.f32 0.03125, %v1012_v24  ;;  %v3054_v24 = vld [vmem:[%s543_s16] sm:$0xff] }
 0x419   : > { %2594 = vrsqrt.f32 %v1067_v26  ;;  %v1023_v28 = vadd.f32 1e-06, %v1020_v27  ;;  %v3056_v27 = vld [vmem:[%s538_s22 + $0x8] sm:$0xff] }
 0x41a   : > { %v1062_v29 = vpop.xlane.xlu0 %1061  ;;  %v1015_v30 = vpop.xlane.xlu1 %1014 }
 0x41b   : > { %v1065_v31 = vmul.f32 0.03125, %v1062_v29  ;;  %v1021_v32 = vmul.f32 0.03125, %v1015_v30  ;;  %2596 = vrsqrt.f32 %v1023_v28 }
 0x41d   : > { %v1068_v33 = vadd.f32 1e-06, %v1065_v31  ;;  %v1024_v34 = vadd.f32 1e-06, %v1021_v32  ;;  %v3060_v31 = vld [vmem:[%s543_s16 + $0x8] sm:$0xff] }
 0x41e   : > { %v1018_v35 = vpop.xlane.xlu1 %1017  ;;  %v1081_v49 = vpop.permute.xlu0 %1080 }
 0x41f   : > { %2598 = vrsqrt.f32 %v1068_v33  ;;  %v1022_v36 = vmul.f32 0.03125, %v1018_v35 }
 0x420   : > { %2600 = vrsqrt.f32 %v1024_v34 }
 0x421   : > { %v2593_v40 = vpop.eup %2592  ;;  %v1025_v42 = vadd.f32 1e-06, %v1022_v36 }
 0x422   : > { %v1072_v43 = vmul.f32 %v2593_v40, %v2890_v46 }
 0x423   : > { %v2595_v48 = vpop.eup %2594  ;;  %2602 = vrsqrt.f32 %v1025_v42 }
 0x424   : > { %v1073_v47 = vmul.f32 %v2595_v48, %v2894_v54  ;;  %v1083_v56 = vmul.f32 %v1081_v49, %v1072_v43 }
 0x425   : > { %v2597_v50 = vpop.eup %2596 }
 0x426   : > { %v1084_v60 = vmul.f32 %v1081_v49, %v1073_v47  ;;  %v1029_v63 = vmul.f32 %v2597_v50, %v2890_v46 }
 0x428   : > { %v1166_v61 = vpack.c.bf16 %v1084_v60, %v1083_v56  ;;  %v1038_v10 = vmul.f32 %v2992_v6, %v1029_v63 }
 0x429   : > { %v2599_v62 = vpop.eup %2598 }
 0x42a   : > { %v2601_v0 = vpop.eup %2600  ;;  %v1074_v2 = vmul.f32 %v2599_v62, %v2916_v14  ;;  %1170 = vrot.lane.b32.xlu1 %v1166_v61, %s2656_s17 }
 0x42b   : > { %v1030_v7 = vmul.f32 %v2601_v0, %v2894_v54 }
 0x42c   : > { %v1085_v8 = vmul.f32 %v1081_v49, %v1074_v2 }
 0x42d   : > { %v2603_v9 = vpop.eup %2602  ;;  %v1039_v12 = vmul.f32 %v2992_v6, %v1030_v7 }
 0x42e   : > { %v1031_v18 = vmul.f32 %v2603_v9, %v2916_v14  ;;  %1156 = vrot.lane.b32.xlu1 %v1084_v60, %s2656_s17  ;;  %v1167_v37 = vpack.c.bf16 %v1085_v8, %v1085_v8 }
 0x42f   : > { %v1089_v38 = vpack.c.bf16 %v1039_v12, %v1038_v10  ;;  %v1087_v42 = vmul.f32 %v1039_v12, %v3056_v27 }
 0x430   : > { %1172 = vrot.lane.b32.xlu0 %v1167_v37, %s2656_s17  ;;  %v1040_v20 = vmul.f32 %v2992_v6, %v1031_v18 }
 0x431   : > { %2421 = vmatprep.mubr.msk.bf16.mxu1 %vm1009_vm1, %v1089_v38 }
 0x432   : > { %1433 = vrot.lane.b32.xlu1 %v2899_v39, %s2658_s19  ;;  %v1090_v21 = vpack.c.bf16 %v1040_v20, %v1040_v20 }
 0x434   : > { %1154 = vrot.lane.b32.xlu0 %v1083_v56, %s2656_s17  ;;  %2422 = vmatmul.mubr.msk.bf16.vlgmr.msra.gmra.mrb[8].mxu1 %vm1009_vm1, %v1090_v21 }
 0x435   : > { %2426 = vmatpush3.bf16.msk.msra.mxu1 %vm2961_vm4, %v2657_v17 }
 0x436   : > { %1437 = vrot.lane.b32.xlu1 %v2924_v25, %s2658_s19  ;;  %2427 = vmatprep.subr.msk.bf16.mxu1 %vm2971_vm7, %v2657_v17 }
 0x438   : > { %1158 = vrot.lane.b32.xlu0 %v1085_v8, %s2656_s17 }
 0x439   : > { %2428 = vmatpush3.bf16.msk.msra.mxu1 %vm2971_vm7, %v2657_v17 }
 0x43a   : > { %1399 = vrot.lane.b32.xlu1 %v2908_v1, %s2659_s29  ;;  %2457 = vmatprep.subr.msk.bf16.mxu1 %vm2961_vm4, %v2657_v17 }
 0x43c   : > { %1435 = vrot.lane.b32.xlu0 %v2908_v1, %s2658_s19  ;;  %v3050_v1 = vld [vmem:[%s543_s16 + $0x10] sm:$0xff] }
 0x440   : > { %1397 = vrot.lane.b32.xlu0 %v2899_v39, %s2659_s29  ;;  %v3048_v39 = vld [vmem:[%s538_s22 + $0x10] sm:$0xff] }
 0x441   : > { %v1088_v28 = vmul.f32 %v1040_v20, %v3048_v39 }
 0x444   : > { %1401 = vrot.lane.b32.xlu0 %v2924_v25, %s2659_s29  ;;  %v3052_v25 = vld [vmem:[%s538_s22] sm:$0xff]  ;;  %s548_s22 = scalar_lea.vmem %s3301_s15, %s2762_s28 }
 0x445   : > { %v1086_v32 = vmul.f32 %v1038_v10, %v3052_v25 }
 0x49c   : > { %v1171_v22 = vpop.permute.xlu1 %1170 }
 0x49d   : > { %2429 = vmatprep.mubr.msk.bf16.mxu1 %vm1009_vm1, %v1171_v22 }
 0x4a0   : > { %v1157_v50 = vpop.permute.xlu1 %1156 }
 0x4a1   : > { %v1164_v7 = vmul.f32 %v1157_v50, %v3056_v27 }
 0x4a2   : > { %v1173_v23 = vpop.permute.xlu0 %1172 }
 0x4a3   : > { %2430 = vmatmul.mubr.msk.bf16.vlgmr.msra.gmra.mrb[12].mxu1 %vm1009_vm1, %v1173_v23  ;;  %v890_v23 = vadd.f32 %v2918_v15, %v2888_v45 }
 0x4a4   : > { %2458 = vmatpush3.bf16.msk.msra.mxu1 %vm2961_vm4, %v2657_v17 }
 0x4a5   : > { %2459 = vmatprep.subr.msk.bf16.mxu1 %vm2971_vm7, %v2657_v17 }
 0x4a6   : > { %v1155_v47 = vpop.permute.xlu0 %1154 }
 0x4a7   : > { %v1163_v8 = vmul.f32 %v1155_v47, %v3052_v25 }
 0x4a8   : > { %2460 = vmatpush3.bf16.msk.msra.mxu1 %vm2971_vm7, %v2657_v17 }
 0x4aa   : > { %v1159_v60 = vpop.permute.xlu0 %1158 }
 0x4ab   : > { %v1165_v9 = vmul.f32 %v1159_v60, %v3048_v39 }
 0x4ae   : > { %v1436_v15 = vpop.permute.xlu0 %1435 }
 0x507   : > { %v2423_v26 = vpop.f32.mrb[8].mxu1 }
 0x508   : > { %v1147_v29 = vmul.f32 %v2423_v26, %v3050_v1  ;;  %v1131_v30 = vpop.f32.mrb[9].mxu1 }
 0x509   : > { %v1145_v33 = vmul.f32 %v1131_v30, %v3054_v24  ;;  %v2424_v34 = vpop.f32.mrb[10].mxu1 }
 0x50a   : > { %v1150_v35 = vadd.f32 %v1147_v29, %v1088_v28  ;;  %v1134_v36 = vpop.f32.mrb[11].mxu1  ;;  %v3080_v28 = vpack.c.bf16 %v890_v23, %v890_v23 }
 0x50b   : > { %v1148_v40 = vadd.f32 %v1145_v33, %v1086_v32  ;;  %v1146_v43 = vmul.f32 %v1134_v36, %v3060_v31 }
 0x50c   : > { %v1235_v26 = vpack.c.bf16 %v1150_v35, %v1150_v35  ;;  %v1347_v29 = vsel %vm1345_vm8, %v3080_v28, 0 }
 0x50d   : > { %v1149_v48 = vadd.f32 %v1146_v43, %v1087_v42  ;;  %v1434_v43 = vpop.permute.xlu1 %1433 }
 0x50f   : > { %v1234_v49 = vpack.c.bf16 %v1149_v48, %v1148_v40  ;;  %v1398_v48 = vpop.permute.xlu0 %1397 }
 0x510   : > { %v1406_v50 = vsel %vm1009_vm1, %v1398_v48, 0.0 }
 0x511   : > { %2437 = vmatprep.mubr.msk.bf16.mxu0 %vm1009_vm1, %v1234_v49  ;;  %v1445_v49 = vsel %vm1009_vm1, %v1436_v15, 0.0 }
 0x513   : > { %v1402_v60 = vpop.permute.xlu0 %1401 }
 0x576   : > { %v2431_v56 = vpop.f32.mrb[12].mxu1 }
 0x577   : > { %v1214_v61 = vpop.f32.mrb[13].mxu1  ;;  %v1230_v62 = vmul.f32 %v2431_v56, %v3050_v1  ;;  %v1438_v56 = vpop.permute.xlu1 %1437 }
 0x578   : > { %v1228_v63 = vmul.f32 %v1214_v61, %v3054_v24  ;;  %v2432_v0 = vpop.f32.mrb[14].mxu1  ;;  %v1442_v61 = vsel %vm1009_vm1, %v1434_v43, 0.0 }
 0x579   : > { %v1217_v2 = vpop.f32.mrb[15].mxu1  ;;  %v1233_v12 = vadd.f32 %v1230_v62, %v1165_v9  ;;  %v1412_v62 = vsel %vm1009_vm1, %v1402_v60, 0.0 }
 0x57a   : > { %v1229_v10 = vmul.f32 %v1217_v2, %v3060_v31  ;;  %v1231_v18 = vadd.f32 %v1228_v63, %v1163_v8  ;;  %v1448_v63 = vsel %vm1009_vm1, %v1438_v56, 0.0 }
 0x57b   : > { %v1237_v20 = vpack.c.bf16 %v1233_v12, %v1233_v12  ;;  %v1400_v0 = vpop.permute.xlu1 %1399 }
 0x57c   : > { %v1232_v37 = vadd.f32 %v1229_v10, %v1164_v7  ;;  %v1409_v2 = vsel %vm1009_vm1, %v1400_v0, 0.0 }
 0x57d   : > { %v1248_v22 = vsel %vm1009_vm1, %v1237_v20, 0 }
 0x57e   : > { %v1236_v38 = vpack.c.bf16 %v1232_v37, %v1231_v18 }
 0x580   : > { %2493 = vmatprep.subr.msk.bf16.mxu0 %vm1009_vm1, %v1236_v38  ;;  %v1245_v21 = vsel %vm1009_vm1, %v1236_v38, 0 }
 0x581   : > { %2434 = vmatpush3.bf16.xpose.msra.mxu0 %v1245_v21 }
 0x582   : > { %2494 = vmatprep.subr.msk.bf16.mxu0 %vm1009_vm1, %v1237_v20 }
 0x589   : > { %2436 = vmatpush3.bf16.xpose.msra.mxu0 %v1248_v22 }
 0x58a   : > { %2441 = vmatprep.subr.bf16.mxu0 %v2910_v4 }
 0x590   : > { %2438 = vmatmul.mubr.msk.bf16.vlgmr.msra.gmra.mrb[12].mxu0 %vm1009_vm1, %v1235_v26 }
 0x591   : > { %2442 = vmatpush3.bf16.msra.mxu0 %v2910_v4 }
 0x592   : > { %2495 = vmatprep.subr.msk.bf16.mxu0 %vm1345_vm8, %v3080_v28 }
 0x595   : > { %2444 = vmatpush3.bf16.msra.mxu0 %v1347_v29 }
 0x596   : > { %2449 = vmatprep.subr.msk.bf16.mxu0 %vm2961_vm4, %v2657_v17 }
 0x663   : > { %v2439_v45 = vpop.f32.mrb[12].mxu0 }
 0x664   : > { %v1284_v30 = vpop.f32.mrb[13].mxu0  ;;  %v1300_v40 = vmul.f32 0.17677669, %v2439_v45 }
 0x665   : > { %v3091_v32 = vmul.f32 0.17677669, %v1284_v30  ;;  %v2440_v33 = vpop.f32.mrb[14].mxu0 }
 0x666   : > { %v1287_v34 = vpop.f32.mrb[15].mxu0  ;;  %v1308_v47 = vsel %vm1301_vm9, %v1300_v40, -inf }
 0x667   : > { %v1299_v35 = vmul.f32 0.17677669, %v1287_v34  ;;  %v1302_v36 = vsel %vm1301_vm9, %v3091_v32, -inf }
 0x668   : > { %1303 = vmax.xlane.f32.xlu1 %v1302_v36 }
 0x669   : > { %v1305_v42 = vsel %vm1301_vm9, %v1299_v35, -inf }
 0x66a   : > { %1306 = vmax.xlane.f32.xlu0 %v1305_v42 }
 0x66c   : > { %1446 = vadd.xlane.f32.xlu1 %v1445_v49 }
 0x66e   : > { %1309 = vmax.xlane.f32.xlu0 %v1308_v47 }
 0x670   : > { %1407 = vadd.xlane.f32.xlu1 %v1406_v50 }
 0x672   : > { %1443 = vadd.xlane.f32.xlu0 %v1442_v61 }
 0x674   : > { %1413 = vadd.xlane.f32.xlu1 %v1412_v62 }
 0x676   : > { %1449 = vadd.xlane.f32.xlu0 %v1448_v63 }
 0x67a   : > { %1410 = vadd.xlane.f32.xlu0 %v1409_v2 }
 0x685   : > { %1427 = vrot.lane.b32.xlu1 %v2992_v6, %s2658_s19 }
 0x690   : > { %1463 = vrot.lane.b32.xlu0 %v2952_v5, %s2659_s29 }
 0x6f5   : > { %v1304_v7 = vpop.xlane.xlu1 %1303 }
 0x6f7   : > { %v1307_v8 = vpop.xlane.xlu0 %1306 }
 0x6f8   : > { %v1312_v10 = vsub.f32 %v1299_v35, %v1307_v8 }
 0x6f9   : > { %v1447_v9 = vpop.xlane.xlu1 %1446 }
 0x6fa   : > { %v1452_v12 = vmul.f32 0.03125, %v1447_v9  ;;  %v1316_v20 = vmul.f32 1.442695, %v1312_v10  ;;  %v1311_v9 = vsub.f32 %v3091_v32, %v1304_v7 }
 0x6fb   : > { %v1310_v18 = vpop.xlane.xlu0 %1309 }
 0x6fc   : > { %v1455_v37 = vadd.f32 1e-06, %v1452_v12  ;;  %v1313_v38 = vsub.f32 %v1300_v40, %v1310_v18  ;;  %v1314_v18 = vmul.f32 1.442695, %v1311_v9 }
 0x6fd   : > { %v1408_v40 = vpop.xlane.xlu1 %1407 }
 0x6fe   : > { %v1318_v21 = vmul.f32 1.442695, %v1313_v38  ;;  %2604 = vrsqrt.f32 %v1455_v37  ;;  %v1415_v50 = vmul.f32 0.03125, %v1408_v40 }
 0x6ff   : > { %v1444_v22 = vpop.xlane.xlu0 %1443 }
 0x700   : > { %2606 = vpow2.f32 %v1318_v21  ;;  %v1451_v23 = vmul.f32 0.03125, %v1444_v22  ;;  %v1418_v61 = vadd.f32 1e-06, %v1415_v50 }
 0x701   : > { %2608 = vpow2.f32 %v1316_v20  ;;  %v1414_v60 = vpop.xlane.xlu1 %1413 }
 0x702   : > { %v1454_v26 = vadd.f32 1e-06, %v1451_v23  ;;  %v1417_v62 = vmul.f32 0.03125, %v1414_v60 }
 0x703   : > { %v1450_v6 = vpop.xlane.xlu0 %1449 }
 0x704   : > { %2610 = vrsqrt.f32 %v1454_v26  ;;  %v1453_v29 = vmul.f32 0.03125, %v1450_v6  ;;  %v1420_v0 = vadd.f32 1e-06, %v1417_v62 }
 0x705   : > { %v1428_v20 = vpop.permute.xlu1 %1427 }
 0x706   : > { %v1456_v30 = vadd.f32 1e-06, %v1453_v29 }
 0x707   : > { %v1411_v5 = vpop.xlane.xlu0 %1410 }
 0x708   : > { %v2605_v45 = vpop.eup %2604  ;;  %2612 = vrsqrt.f32 %v1456_v30  ;;  %v1416_v21 = vmul.f32 0.03125, %v1411_v5 }
 0x709   : > { %v1461_v35 = vmul.f32 %v2605_v45, %v2894_v54  ;;  %2614 = vrsqrt.f32 %v1418_v61 }
 0x70a   : > { %v3107_v15 = vpop.eup %2606  ;;  %2616 = vrsqrt.f32 %v1420_v0  ;;  %v1419_v26 = vadd.f32 1e-06, %v1416_v21 }
 0x70b   : > { %v1326_v33 = vsel %vm1301_vm9, %v3107_v15, 0.0  ;;  %v3111_v34 = vpop.eup %2608  ;;  %v1464_v42 = vpop.permute.xlu0 %1463  ;;  %2618 = vpow2.f32 %v1314_v18 }
 0x70c   : > { %1327 = vadd.xlane.f32.xlu0 %v1326_v33  ;;  %v1323_v48 = vsel %vm1301_vm9, %v3111_v34, 0.0  ;;  %v1467_v47 = vmul.f32 %v1464_v42, %v1461_v35  ;;  %2620 = vrsqrt.f32 %v1419_v26 }
 0x70e   : > { %v2611_v36 = vpop.eup %2610 }
 0x70f   : > { %v1460_v43 = vmul.f32 %v2611_v36, %v2890_v46 }
 0x710   : > { %1324 = vadd.xlane.f32.xlu0 %v1323_v48 }
 0x711   : > { %v1466_v49 = vmul.f32 %v1464_v42, %v1460_v43 }
 0x712   : > { %v2613_v63 = vpop.eup %2612 }
 0x713   : > { %v1567_v56 = vpack.c.bf16 %v1467_v47, %v1466_v49  ;;  %v1462_v2 = vmul.f32 %v2613_v63, %v2916_v14  ;;  %v2615_v12 = vpop.eup %2614 }
 0x714   : > { %v1424_v37 = vmul.f32 %v2615_v12, %v2890_v46  ;;  %v2617_v38 = vpop.eup %2616 }
 0x715   : > { %1571 = vrot.lane.b32.xlu1 %v1567_v56, %s2658_s19  ;;  %v1468_v8 = vmul.f32 %v1464_v42, %v1462_v2  ;;  %v1426_v22 = vmul.f32 %v2617_v38, %v2916_v14  ;;  %v2619_v7 = vpop.eup %2618 }
 0x716   : > { %v1430_v23 = vmul.f32 %v1428_v20, %v1424_v37  ;;  %v1320_v6 = vsel %vm1301_vm9, %v2619_v7, 0.0  ;;  %v2621_v46 = vpop.eup %2620 }
 0x717   : > { %v1568_v10 = vpack.c.bf16 %v1468_v8, %v1468_v8  ;;  %v1432_v32 = vmul.f32 %v1428_v20, %v1426_v22  ;;  %v1425_v29 = vmul.f32 %v2621_v46, %v2894_v54 }
 0x719   : > { %v1431_v45 = vmul.f32 %v1428_v20, %v1425_v29  ;;  %v1485_v14 = vpack.c.bf16 %v1432_v32, %v1432_v32 }
 0x71b   : > { %v1484_v30 = vpack.c.bf16 %v1431_v45, %v1430_v23 }
 0x726   : > { %1573 = vrot.lane.b32.xlu0 %v1568_v10, %s2658_s19 }
 0x72a   : > { %1557 = vrot.lane.b32.xlu0 %v1467_v47, %s2658_s19 }
 0x72e   : > { %1472 = vrot.lane.b32.xlu0 %v1430_v23, %s2659_s29 }
 0x732   : > { %1476 = vrot.lane.b32.xlu0 %v1432_v32, %s2659_s29 }
 0x739   : > { %1321 = vadd.xlane.f32.xlu1 %v1320_v6 }
 0x74a   : > { %1488 = vrot.lane.b32.xlu1 %v1484_v30, %s2659_s29 }
 0x74e   : > { %1490 = vrot.lane.b32.xlu1 %v1485_v14, %s2659_s29 }
 0x752   : > { %1555 = vrot.lane.b32.xlu1 %v1466_v49, %s2658_s19 }
 0x756   : > { %1559 = vrot.lane.b32.xlu1 %v1468_v8, %s2658_s19 }
 0x75a   : > { %1474 = vrot.lane.b32.xlu1 %v1431_v45, %s2659_s29 }
 0x787   : > { %v1572_v5 = vpop.permute.xlu1 %1571 }
 0x788   : > { %2461 = vmatprep.mubr.msk.bf16.mxu1 %vm1009_vm1, %v1572_v5 }
 0x799   : > { %v1328_v33 = vpop.xlane.xlu0 %1327 }
 0x79a   : > { %2622 = vrcp.f32 %v1328_v33 }
 0x79d   : > { %v1325_v35 = vpop.xlane.xlu0 %1324 }
 0x79e   : > { %2624 = vrcp.f32 %v1325_v35 }
 0x7a1   : > { %v1574_v36 = vpop.permute.xlu0 %1573 }
 0x7a2   : > { %2462 = vmatmul.mubr.msk.bf16.vlgmr.msra.gmra.mrb[16].mxu1 %vm1009_vm1, %v1574_v36 }
 0x7a4   : > { %v2623_v40 = vpop.eup %2622 }
 0x7a5   : > { %v1334_v48 = vmul.f32 %v2623_v40, %v3107_v15  ;;  %v1558_v61 = vpop.permute.xlu0 %1557 }
 0x7a6   : > { %v1565_v10 = vmul.f32 %v1558_v61, %v3056_v27 }
 0x7a7   : > { %v1336_v56 = vpack.c.bf16 %v1334_v48, %v1334_v48 }
 0x7a8   : > { %v2625_v42 = vpop.eup %2624 }
 0x7a9   : > { %v1333_v47 = vmul.f32 %v2625_v42, %v3111_v34 }
 0x7c6   : > { %v1322_v54 = vpop.xlane.xlu1 %1321 }
 0x7c7   : > { %2626 = vrcp.f32 %v1322_v54 }
 0x7ca   : > { %v1489_v60 = vpop.permute.xlu1 %1488 }
 0x7ce   : > { %v1491_v15 = vpop.permute.xlu1 %1490 }
 0x7d1   : > { %v2627_v43 = vpop.eup %2626 }
 0x7d2   : > { %v1332_v49 = vmul.f32 %v2627_v43, %v2619_v7  ;;  %v1556_v34 = vpop.permute.xlu1 %1555  ;;  %v1473_v7 = vpop.permute.xlu0 %1472 }
 0x7d3   : > { %v1564_v12 = vmul.f32 %v1556_v34, %v3052_v25  ;;  %v1481_v40 = vmul.f32 %v1473_v7, %v3052_v25 }
 0x7d4   : > { %v1335_v50 = vpack.c.bf16 %v1333_v47, %v1332_v49 }
 0x7d6   : > { %2445 = vmatprep.mubr.msk.bf16.mxu0 %vm1301_vm9, %v1335_v50  ;;  %v1560_v63 = vpop.permute.xlu1 %1559  ;;  %v1477_v29 = vpop.permute.xlu0 %1476 }
 0x7d7   : > { %2446 = vmatmul.mubr.msk.bf16.vlgmr.msra.gmra.mrb[16].mxu0 %vm1301_vm9, %v1336_v56  ;;  %v1483_v36 = vmul.f32 %v1477_v29, %v3048_v39  ;;  %v2554_v29 = vld [vmem:[%s3299_s13 + $0x40] sm:$0xff]  }
 0x7d8   : > { %2450 = vmatpush3.bf16.msk.msra.mxu0 %vm2961_vm4, %v2657_v17  ;;  %2453 = vmatprep.mubr.msk.bf16.mxu0 %vm1009_vm1, %v1489_v60 }
 0x7d9   : > { %2451 = vmatprep.subr.msk.bf16.mxu0 %vm2971_vm7, %v2657_v17 }
 0x7da   : > { %v1475_v30 = vpop.permute.xlu1 %1474 }
 0x7db   : > { %v1482_v42 = vmul.f32 %v1475_v30, %v3056_v27 }
 0x7dc   : > { %2452 = vmatpush3.bf16.msk.msra.mxu0 %vm2971_vm7, %v2657_v17  ;;  %v1566_v17 = vmul.f32 %v1560_v63, %v3048_v39 }
 0x7df   : > { %2454 = vmatmul.mubr.msk.bf16.vlgmr.msra.gmra.mrb[20].mxu0 %vm1009_vm1, %v1491_v15 }
 0x875   : > { %v2463_v62 = vpop.f32.mrb[16].mxu1 }
 0x876   : > { %v1615_v0 = vpop.f32.mrb[17].mxu1  ;;  %v1631_v13 = vmul.f32 %v2463_v62, %v3050_v1 }
 0x877   : > { %v1629_v2 = vmul.f32 %v1615_v0, %v3054_v24  ;;  %v2464_v8 = vpop.f32.mrb[18].mxu1 }
 0x878   : > { %v1618_v9 = vpop.f32.mrb[19].mxu1  ;;  %v1634_v18 = vadd.f32 %v1631_v13, %v1566_v17 }
 0x879   : > { %v1630_v19 = vmul.f32 %v1618_v9, %v3060_v31  ;;  %v1632_v37 = vadd.f32 %v1629_v2, %v1564_v12 }
 0x87a   : > { %v1638_v21 = vpack.c.bf16 %v1634_v18, %v1634_v18 }
 0x87b   : > { %v1633_v38 = vadd.f32 %v1630_v19, %v1565_v10 }
 0x87c   : > { %v1649_v23 = vsel %vm1009_vm1, %v1638_v21, 0 }
 0x87d   : > { %v1637_v20 = vpack.c.bf16 %v1633_v38, %v1632_v37 }
 0x87f   : > { %2496 = vmatprep.subr.msk.bf16.mxu0 %vm1009_vm1, %v1637_v20  ;;  %v1646_v22 = vsel %vm1009_vm1, %v1637_v20, 0 }
 0x880   : > { %2466 = vmatpush3.bf16.xpose.msra.mxu0 %v1646_v22 }
 0x881   : > { %2497 = vmatprep.subr.msk.bf16.mxu0 %vm1009_vm1, %v1638_v21 }
 0x888   : > { %2468 = vmatpush3.bf16.xpose.msra.mxu0 %v1649_v23 }
 0x8aa   : > { %v3160_v26 = vpop.f32.mrb[16].mxu0 }
 0x8ab   : > { %v3162_v32 = vpop.f32.mrb[17].mxu0 }
 0x8ac   : > { %v2448_v6 = vpop.f32.mrb[18].mxu0 }
 0x8ad   : > { %v3164_v46 = vpop.f32.mrb[19].mxu0  ;;  %v1001_v6 = vadd.f32 %v2920_v16, %v2885_v3 }
 0x8b2   : > { %v2455_v45 = vpop.f32.mrb[20].mxu0 }
 0x8b3   : > { %v1548_v14 = vmul.f32 %v2455_v45, %v3050_v1  ;;  %v1532_v5 = vpop.f32.mrb[21].mxu0 }
 0x8b4   : > { %v1546_v33 = vmul.f32 %v1532_v5, %v3054_v24  ;;  %v2456_v35 = vpop.f32.mrb[22].mxu0  ;;  %v999_v5 = vadd.f32 %v2914_v11, %v2882_v41  ;;  %v2557_v11 = vld [vmem:[%s3299_s13 + $0x8] sm:$0xff]  }
 0x8b5   : > { %v1535_v54 = vpop.f32.mrb[23].mxu0  ;;  %v1551_v48 = vadd.f32 %v1548_v14, %v1483_v36 }
 0x8b6   : > { %v1547_v43 = vmul.f32 %v1535_v54, %v3060_v31  ;;  %v1549_v49 = vadd.f32 %v1546_v33, %v1481_v40  ;;  %v1836_v54 = vmul.f32 0.044715, %v999_v5 }
 0x8b7   : > { %v1636_v56 = vpack.c.bf16 %v1551_v48, %v1551_v48  ;;  %v2556_v48 = vld [vmem:[%s3299_s13 + $0x48] sm:$0xff]  }
 0x8b8   : > { %v1550_v47 = vadd.f32 %v1547_v43, %v1482_v42  ;;  %v2555_v42 = vld [vmem:[%s3299_s13] sm:$0xff]   ;;  %v1842_v41 = vmul.f32 %v1836_v54, %v999_v5 }
 0x8ba   : > { %v1635_v50 = vpack.c.bf16 %v1550_v47, %v1549_v49  ;;  %v2558_v47 = vld [vmem:[%s3299_s13 + $0x50] sm:$0xff]  }
 0x8bc   : > { %2469 = vmatprep.mubr.msk.bf16.mxu0 %vm1009_vm1, %v1635_v50 }
 0x8bd   : > { %2470 = vmatmul.mubr.msk.bf16.vlgmr.msra.gmra.mrb[24].mxu0 %vm1009_vm1, %v1636_v56  ;;  %v2559_v56 = vld [vmem:[%s3299_s13 + $0x10] sm:$0xff]  }
 0x990   : > { %v2471_v1 = vpop.f32.mrb[24].mxu0 }
 0x991   : > { %v1685_v24 = vpop.f32.mrb[25].mxu0  ;;  %v1701_v27 = vmul.f32 0.17677669, %v2471_v1  ;;  %v1848_v1 = vmul.f32 %v1842_v41, %v999_v5 }
 0x992   : > { %v1699_v60 = vmul.f32 0.17677669, %v1685_v24  ;;  %v2472_v39 = vpop.f32.mrb[26].mxu0 }
 0x993   : > { %v1688_v15 = vpop.f32.mrb[27].mxu0  ;;  %v1708_v61 = vsel %vm1301_vm9, %v1701_v27, -inf  ;;  %v1854_v24 = vadd.f32 %v1848_v1, %v999_v5  ;;  %v2563_v39 = vld [vmem:[%s3299_s13 + $0x20] sm:$0xff]  }
 0x994   : > { %v1700_v34 = vmul.f32 0.17677669, %v1688_v15  ;;  %v1702_v25 = vsel %vm1301_vm9, %v1699_v60, -inf }
 0x995   : > { %1703 = vmax.xlane.f32.xlu1 %v1702_v25  ;;  %v1860_v15 = vmul.f32 0.7978846, %v1854_v24  ;;  %v2565_v25 = vld [vmem:[%s3299_s13 + $0x28] sm:$0xff]  }
 0x996   : > { %v1705_v31 = vsel %vm1301_vm9, %v1700_v34, -inf }
 0x997   : > { %1706 = vmax.xlane.f32.xlu0 %v1705_v31 }
 0x99b   : > { %1709 = vmax.xlane.f32.xlu0 %v1708_v61  ;;  %v2567_v61 = vld [vmem:[%s3299_s13 + $0x30] sm:$0xff]  }
 0xa22   : > { %v1704_v62 = vpop.xlane.xlu1 %1703 }
 0xa23   : > { %v1711_v13 = vsub.f32 %v1699_v60, %v1704_v62  ;;  %v2562_v60 = vld [vmem:[%s3299_s13 + $0x60] sm:$0xff]   ;;  %v2568_v62 = vld [vmem:[%s3299_s13 + $0x78] sm:$0xff]  }
 0xa24   : > { %v1707_v63 = vpop.xlane.xlu0 %1706 }
 0xa25   : > { %v1712_v0 = vsub.f32 %v1700_v34, %v1707_v63  ;;  %v1714_v10 = vmul.f32 1.442695, %v1711_v13  ;;  %v2564_v34 = vld [vmem:[%s3299_s13 + $0x68] sm:$0xff]   ;;  %v1831_v13 = vmul.f32 0.5, %v1001_v6 }
 0xa27   : > { %v1716_v2 = vmul.f32 1.442695, %v1712_v0  ;;  %v2569_v0 = vld [vmem:[%s3299_s13 + $0x38] sm:$0xff]  }
 0xa28   : > { %v1710_v8 = vpop.xlane.xlu0 %1709 }
 0xa29   : > { %2628 = vpow2.f32 %v1716_v2  ;;  %v1713_v9 = vsub.f32 %v1701_v27, %v1710_v8  ;;  %v2566_v27 = vld [vmem:[%s3299_s13 + $0x70] sm:$0xff]  }
 0xa2b   : > { %v1718_v12 = vmul.f32 1.442695, %v1713_v9 }
 0xa2d   : > { %2630 = vpow2.f32 %v1718_v12  ;;  %v1830_v12 = vmul.f32 0.5, %v999_v5 }
 0xa2e   : > { %2632 = vpow2.f32 %v1714_v10 }
 0xa33   : > { %v2629_v17 = vpop.eup %2628 }
 0xa34   : > { %v1723_v19 = vsel %vm1301_vm9, %v2629_v17, 0.0 }
 0xa35   : > { %1724 = vadd.xlane.f32.xlu1 %v1723_v19 }
 0xa37   : > { %v2631_v18 = vpop.eup %2630 }
 0xa38   : > { %v1726_v37 = vsel %vm1301_vm9, %v2631_v18, 0.0  ;;  %v2633_v38 = vpop.eup %2632 }
 0xa39   : > { %1727 = vadd.xlane.f32.xlu0 %v1726_v37  ;;  %v1720_v20 = vsel %vm1301_vm9, %v2633_v38, 0.0  ;;  %v2571_v37 = vld [vmem:[%s3298_s12 + $0x8] sm:$0xff]  }
 0xa3d   : > { %1721 = vadd.xlane.f32.xlu0 %v1720_v20 }
 0xa46   : > { %1739 = vrot.lane.b32.xlu1 %v2910_v4, %s2659_s29 }
 0xa53   : > { %1741 = vrot.lane.b32.xlu0 %v3080_v28, %s2659_s29  ;;  %v1837_v28 = vmul.f32 0.044715, %v1001_v6 }
 0xa55   : > { %v1843_v35 = vmul.f32 %v1837_v28, %v1001_v6 }
 0xa57   : > { %v1849_v49 = vmul.f32 %v1843_v35, %v1001_v6 }
 0xa59   : > { %v1855_v50 = vadd.f32 %v1849_v49, %v1001_v6 }
 0xa5b   : > { %v1861_v57 = vmul.f32 0.7978846, %v1855_v50 }
 0xac2   : > { %v1725_v21 = vpop.xlane.xlu1 %1724 }
 0xac6   : > { %v1740_v22 = vpop.permute.xlu1 %1739  ;;  %v1728_v23 = vpop.xlane.xlu0 %1727 }
 0xac7   : > { %2473 = vmatprep.subr.bf16.mxu1 %v1740_v22  ;;  %2634 = vrcp.f32 %v1728_v23 }
 0xac8   : > { %2474 = vmatpush3.bf16.msra.mxu1 %v1740_v22  ;;  %2636 = vrcp.f32 %v1725_v21 }
 0xaca   : > { %v1722_v7 = vpop.xlane.xlu0 %1721 }
 0xacb   : > { %2638 = vrcp.f32 %v1722_v7 }
 0xacc   : > { %2640 = vtanh.f32 %v1861_v57 }
 0xacd   : > { %2642 = vtanh.f32 %v1860_v15  ;;  %v2645_v15 = vld [vmem:[%s2777_s25] sm:$0xff] }
 0xace   : > { %v1742_v4 = vpop.permute.xlu0 %1741 }
 0xacf   : > { %v1751_v45 = vsel %vm1345_vm8, %v1742_v4, 0  ;;  %2498 = vmatprep.subr.msk.bf16.mxu1 %vm1345_vm8, %v1742_v4 }
 0xad0   : > { %2476 = vmatpush3.bf16.msra.mxu1 %v1751_v45 }
 0xad1   : > { %2383 = vmatprep.subr.bf16.mxu1 %v2554_v29  ;;  %v2635_v30 = vpop.eup %2634 }
 0xad2   : > { %v2637_v14 = vpop.eup %2636  ;;  %v1734_v3 = vmul.f32 %v2635_v30, %v2631_v18  ;;  %v2570_v18 = vld [vmem:[%s3298_s12] sm:$0xff]  }
 0xad3   : > { %v1733_v36 = vmul.f32 %v2637_v14, %v2629_v17  ;;  %2481 = vmatprep.subr.bf16.mxu0 %v2570_v18 }
 0xad4   : > { %v1736_v43 = vpack.c.bf16 %v1734_v3, %v1734_v3  ;;  %2482 = vmatpush3.bf16.msra.mxu0 %v2570_v18 }
 0xad5   : > { %v2639_v33 = vpop.eup %2638  ;;  %2483 = vmatprep.subr.bf16.mxu0 %v2571_v37 }
 0xad6   : > { %v1732_v16 = vmul.f32 %v2639_v33, %v2633_v38  ;;  %v2641_v31 = vpop.eup %2640 }
 0xad7   : > { %v1873_v63 = vadd.f32 1.0, %v2641_v31  ;;  %v2643_v2 = vpop.eup %2642 }
 0xad8   : > { %v1735_v40 = vpack.c.bf16 %v1733_v36, %v1732_v16  ;;  %v1872_v9 = vadd.f32 1.0, %v2643_v2  ;;  %2484 = vmatpush3.bf16.msra.mxu0 %v2571_v37 }
 0xad9   : > { %v1879_v8 = vmul.f32 %v1873_v63, %v1831_v13  ;;  %2485 = vmatprep.subr.bf16.mxu0 %v2572_v51 }
 0xada   : > { %2477 = vmatprep.mubr.msk.bf16.mxu1 %vm1301_vm9, %v1735_v40  ;;  %v1878_v17 = vmul.f32 %v1872_v9, %v1830_v12 }
 0xadb   : > { %2478 = vmatmul.mubr.msk.bf16.vlgmr.msra.gmra.mrb[20].mxu1 %vm1301_vm9, %v1736_v43  ;;  %v1915_v10 = vpack.c.bf16 %v1879_v8, %v1879_v8 }
 0xadc   : > { %2384 = vmatpush3.bf16.msra.mxu1 %v2555_v42  ;;  %2044 = vmatprep.mubr.bf16.mxu1 %v1913_v59  ;;  %v2561_v59 = vld [vmem:[%s3299_s13 + $0x18] sm:$0xff]   ;;  %v1914_v19 = vpack.c.bf16 %v1878_v17, %v1878_v17 }
 0xadd   : > { %2385 = vmatprep.subr.bf16.mxu1 %v2556_v48  ;;  %2486 = vmatpush3.bf16.msra.mxu0 %v2572_v51 }
 0xade   : > { %2487 = vmatprep.subr.bf16.mxu0 %v2573_v52 }
 0xae0   : > { %2386 = vmatpush3.bf16.msra.mxu1 %v2557_v11 }
 0xae1   : > { %2387 = vmatprep.subr.bf16.mxu1 %v2558_v47  ;;  %2488 = vmatpush3.bf16.msra.mxu0 %v2573_v52 }
 0xae4   : > { %2388 = vmatpush3.bf16.msra.mxu1 %v2559_v56 }
 0xae5   : > { %2389 = vmatprep.subr.bf16.mxu1 %v2560_v53 }
 0xae8   : > { %2390 = vmatpush3.bf16.msra.mxu1 %v2561_v59 }
 0xae9   : > { %2391 = vmatprep.subr.bf16.mxu1 %v2562_v60  ;;  %v2644_v60 = vld [vmem:[%s2777_s25 + $0x10] sm:$0xff] }
 0xaec   : > { %2392 = vmatpush3.bf16.msra.mxu1 %v2563_v39 }
 0xaed   : > { %2393 = vmatprep.subr.bf16.mxu1 %v2564_v34 }
 0xaf0   : > { %2394 = vmatpush3.bf16.msra.mxu1 %v2565_v25 }
 0xaf1   : > { %2395 = vmatprep.subr.bf16.mxu1 %v2566_v27 }
 0xaf4   : > { %2396 = vmatpush3.bf16.msra.mxu1 %v2567_v61 }
 0xaf5   : > { %2397 = vmatprep.subr.bf16.mxu1 %v2568_v62 }
 0xaf8   : > { %2398 = vmatpush3.bf16.msra.mxu1 %v2569_v0 }
 0xafb   : > { %2045 = vmatmul.mubr.bf16.vlgmr.msra.gmra.mrb[24].mxu1 %v1912_v58 }
 0xafc   : > { %2052 = vmatprep.mubr.bf16.mxu1 %v1915_v10 }
 0xb03   : > { %2053 = vmatmul.mubr.bf16.gmra.mrb[28].mxu1 %v1914_v19 }
 0xbae   : > { %v2479_v58 = vpop.f32.mrb[20].mxu1 }
 0xbaf   : > { %v1787_v38 = vpop.f32.mrb[21].mxu1 }
 0xbb0   : > { %v2480_v20 = vpop.f32.mrb[22].mxu1 }
 0xbb1   : > { %v1790_v21 = vpop.f32.mrb[23].mxu1 }
 0xbb2   : > { %v2513_v22 = vpack.i.bf16 %v1790_v21, %v1787_v38 }
 0xbb4   : > { %2514 = vrot.lane.b32.xlu1 %v2513_v22, %s2658_s19 }
 0xbb8   : > { %1808 = vrot.lane.b32.xlu1 %v2479_v58, %s2658_s19 }
 0xbce   : > { %v2399_v23 = vpop.f32.mrb[24].mxu1 }
 0xbcf   : > { %v2400_v7 = vpop.f32.mrb[25].mxu1 }
 0xbd0   : > { %v2401_v6 = vadd.f32 %v2400_v7, %v2399_v23  ;;  %v2402_v29 = vpop.f32.mrb[26].mxu1 }
 0xbd1   : > { %v2403_v4 = vpop.f32.mrb[27].mxu1 }
 0xbd2   : > { %v2404_v45 = vadd.f32 %v2403_v4, %v2402_v29 }
 0xbd6   : > { %v2405_v28 = vpop.f32.mrb[28].mxu1 }
 0xbd7   : > { %v2406_v30 = vpop.f32.mrb[29].mxu1 }
 0xbd8   : > { %v2407_v14 = vadd.f32 %v2406_v30, %v2405_v28  ;;  %v2408_v5 = vpop.f32.mrb[30].mxu1 }
 0xbd9   : > { %v2409_v33 = vpop.f32.mrb[31].mxu1 }
 0xc26   : > { %v2515_v35 = vpop.permute.xlu1 %2514 }
 0xc27   : > { %v2517_v3 = vunpack.i.h.bf16 %v2515_v35  ;;  %v2516_v16 = vunpack.i.l.bf16 %v2515_v35 }
 0xc29   : > { %v1814_v36 = vsel %vm1009_vm1, %v3164_v46, %v2517_v3  ;;  %v1813_v54 = vsel %vm1009_vm1, %v3162_v32, %v2516_v16  ;;  %v2348_v46 = vld [vmem:[%s3300_s14] ss:$0 sm:$0xff] }
 0xc2a   : > { %v1824_v40 = vpack.c.bf16 %v1814_v36, %v1813_v54  ;;  %v1809_v42 = vpop.permute.xlu1 %1808 }
 0xc2b   : > { %v1815_v43 = vsel %vm1009_vm1, %v3160_v26, %v1809_v42  ;;  %v2151_v26 = vrot.slane %v2806_v44, %v2809_v55  ;;  %v2646_v44 = vld [vmem:[%s2777_s25 + $0x8] sm:$0xff] }
 0xc2c   : > { %v1825_v48 = vpack.c.bf16 %v1815_v43, %v1815_v43  ;;  %2489 = vmatprep.mubr.msk.bf16.mxu0 %vm653_vm0, %v1824_v40 }
 0xc2e   : > { %2490 = vmatmul.mubr.msk.bf16.vlgmr.msra.gmra.mrb[28].mxu0 %vm653_vm0, %v1825_v48 }
 0xd01   : > { %v2491_v49 = vpop.f32.mrb[28].mxu0 }
 0xd02   : > { %v2133_v41 = vadd.f32 %v2491_v49, %v2407_v14  ;;  %v2124_v32 = vpop.f32.mrb[29].mxu0 }
 0xd03   : > { %v2125_v11 = vadd.f32 %v2401_v6, %v2124_v32  ;;  %v2492_v47 = vpop.f32.mrb[30].mxu0 }
 0xd04   : > { %v2147_v50 = vadd.f32 %v2348_v46, %v2133_v41  ;;  %v2127_v56 = vpop.f32.mrb[31].mxu0 }
 0xd05   : > { %v2145_v1 = vadd.f32 %v2348_v46, %v2125_v11  ;;  %v2128_v53 = vadd.f32 %v2404_v45, %v2127_v56 }
 0xd06   : > { %v2154_v57 = vmul.f32 %v2151_v26, %v2147_v50 }
 0xd07   : > { %v2152_v59 = vmul.f32 %v2151_v26, %v2145_v1  ;;  %v2146_v24 = vadd.f32 %v2348_v46, %v2128_v53 }
 0xd08   : > { %v2157_v39 = vadd.f32 %v2644_v60, %v2154_v57 }
 0xd09   : > { %v2155_v34 = vadd.f32 %v2645_v15, %v2152_v59  ;;  %v2153_v25 = vmul.f32 %v2151_v26, %v2146_v24 }
 0xd0a   : > { %2160 = vst.msk [vmem:[%s548_s22 + $0x10] sm:$0xff] %vm653_vm0, %v2157_v39 }
 0xd0b   : > { %2158 = vst.msk [vmem:[%s548_s22] sm:$0xff] %vm653_vm0, %v2155_v34  ;;  %v2156_v55 = vadd.f32 %v2646_v44, %v2153_v25 }
 0xd0d   : > { %2159 = vst.msk [vmem:[%s548_s22 + $0x8] sm:$0xff] %vm653_vm0, %v2156_v55 }
 0xd0e PF: > { %s25_s18 = sadd.s32 1, %s2653_s18  }
 0xd0f   : > { %p22_p4 = scmp.ge.s32.totalorder %s25_s18, 4  }
 0xd11   :  { %24 = sbr.rel (!%p22_p4) target bundleno = 1 (0x1), region = 119 }

</bundles_post_ra>
